<compile_context>
chip_gen: v7x
topology: tpu7x:2x2x1
jax: 0.10.0
libtpu: 0.0.40
codegen_flags: <defaults>
</compile_context>

<pallas_src>
import functools

import jax
import jax.numpy as jnp
from jax import lax
from jax.experimental import pallas as pl
from jax.experimental.pallas import tpu as pltpu

H = 100          # logical hidden / embedding size (fixed by the module)
HP = 128         # padded hidden size (lane-aligned)
G4 = 4 * HP      # fused gate width: [i | f | g | o], each a 128-wide slab


def _round_up(x, m):
    return (x + m - 1) // m * m


def _lstm_kernel(ids_ref, xg_ref, whh_ref, wp_ref, bp_ref, out_ref, gx_sc,
                 *, t_total, bp):
    # ids_ref: (T*BP,) int32 in SMEM (scalar prefetch)
    # xg_ref : (vsize, 1, G4) f32   precomputed gate inputs per token
    # whh_ref: (HP, G4)      bf16   fused recurrent weights
    # wp_ref : (HP, NP)      bf16   projection weights
    # bp_ref : (1, NP)       f32    projection bias
    # gx_sc  : (BP, G4)      f32    gathered gate inputs for the current step

    def step(t, carry):
        h, c = carry
        base = t * bp
        # In-kernel gather of precomputed gate inputs for this timestep
        # (dynamic index on the leading, untiled axis of the table).
        for b in range(bp):                        # bp is small and static
            tok = ids_ref[base + b]                # SMEM scalar read
            gx_sc[pl.ds(b, 1), :] = xg_ref[tok]    # (1, G4) row
        # Recurrent projection: bf16 operands, f32 accumulation.  W_hh is read
        # inside the step so its live range is confined to this matmul.
        gates = gx_sc[...] + jnp.dot(h.astype(jnp.bfloat16), whh_ref[...],
                                     preferred_element_type=jnp.float32)
        # PyTorch gate order i, f, g, o.  sigmoid(x) = 0.5*tanh(0.5*x)+0.5:
        # one EUP op + cheap VALU instead of exp + divide.
        i_g = 0.5 * jnp.tanh(0.5 * gates[:, 0 * HP:1 * HP]) + 0.5
        f_g = 0.5 * jnp.tanh(0.5 * gates[:, 1 * HP:2 * HP]) + 0.5
        g_g = jnp.tanh(gates[:, 2 * HP:3 * HP])
        o_g = 0.5 * jnp.tanh(0.5 * gates[:, 3 * HP:4 * HP]) + 0.5
        c_new = f_g * c + i_g * g_g
        h_new = o_g * jnp.tanh(c_new)
        return h_new, c_new

    h0 = jnp.zeros((bp, HP), jnp.float32)
    c0 = jnp.zeros((bp, HP), jnp.float32)
    # Static trip count (T is a Python int) + partial unroll for LLO visibility.
    unroll = max(1, min(8, t_total))
    h_f, _ = lax.fori_loop(0, t_total, step, (h0, c0), unroll=unroll)

    # proj(h[-1]): (BP, HP) @ (HP, NP) + (1, NP) — lane-dense output slab.
    out_ref[...] = (jnp.dot(h_f.astype(jnp.bfloat16), wp_ref[...],
                            preferred_element_type=jnp.float32)
                    + bp_ref[...]).astype(out_ref.dtype)


def model_forward(input_ids, params, *, ncls):
    """input_ids: (T, B) int32 (time-major, like PyTorch LSTM default).
    Returns (B, ncls) float32."""
    T, B = input_ids.shape
    vsize = params["xg_table_p"].shape[0]
    NP = params["proj_w_p"].shape[-1]
    BP = max(8, _round_up(B, 8))          # sublane-aligned batch

    # Pad batch to a sublane multiple; padded rows run a token-0 trajectory
    # that is sliced away at the end.  Ids are flattened 1-D for SMEM (2-D
    # SMEM arrays pad the last dim to 128 words).  Assumes T*BP ids fit SMEM.
    ids = jnp.zeros((T, BP), jnp.int32).at[:, :B].set(input_ids)
    ids_flat = ids.reshape(T * BP)

    kernel = functools.partial(_lstm_kernel, t_total=T, bp=BP)
    grid_spec = pltpu.PrefetchScalarGridSpec(
        num_scalar_prefetch=1,            # ids -> SMEM, passed to index_maps
        grid=(1,),
        in_specs=[
            pl.BlockSpec((vsize, 1, G4), lambda c, ids: (0, 0, 0)),  # gate table
            pl.BlockSpec((HP, G4), lambda c, ids: (0, 0)),           # W_hh fused (bf16)
            pl.BlockSpec((HP, NP), lambda c, ids: (0, 0)),           # proj weight (bf16)
            pl.BlockSpec((1, NP), lambda c, ids: (0, 0)),            # proj bias (f32)
        ],
        out_specs=pl.BlockSpec((BP, NP), lambda c, ids: (0, 0)),
        scratch_shapes=[pltpu.VMEM((BP, G4), jnp.float32)],          # per-step gather buf
    )
    out_p = pl.pallas_call(
        kernel,
        out_shape=jax.ShapeDtypeStruct((BP, NP), jnp.float32),
        grid_spec=grid_spec,
        compiler_params=pltpu.CompilerParams(
            dimension_semantics=("arbitrary",),      # serial recurrence
            vmem_limit_bytes=32 * 1024 * 1024),
    )(ids_flat, params["xg_table_p"], params["whh_p"],
      params["proj_w_p"], params["proj_b_p"])

    return out_p[:B, :ncls]


def init_params(key, vsize, ncls):
    """Deterministic synthetic parameters matching nn.Embedding/nn.LSTM/nn.Linear
    shapes.  Returns (packed params for the kernel, raw PyTorch-layout weights)."""
    ks = jax.random.split(key, 7)
    s = 1.0 / jnp.sqrt(H)
    emb = jax.random.normal(ks[0], (vsize, H), jnp.float32)
    # PyTorch LSTM weights: W_ih (4H, H), W_hh (4H, H), b_ih (4H,), b_hh (4H,)
    w_ih = jax.random.uniform(ks[1], (4 * H, H), jnp.float32, -s, s)
    w_hh = jax.random.uniform(ks[2], (4 * H, H), jnp.float32, -s, s)
    b_ih = jax.random.uniform(ks[3], (4 * H,), jnp.float32, -s, s)
    b_hh = jax.random.uniform(ks[4], (4 * H,), jnp.float32, -s, s)
    # Linear: weight (ncls, H), bias (ncls,)
    proj_w = jax.random.uniform(ks[5], (ncls, H), jnp.float32, -s, s)
    proj_b = jax.random.uniform(ks[6], (ncls,), jnp.float32, -s, s)

    NP = _round_up(ncls, 128)

    # Fuse the 4 gates into one lane-aligned (HP, 4*HP) weight, gate order
    # i, f, g, o, each gate in its own 128-wide slab; padded rows/cols are zero
    # so padded hidden lanes stay exactly zero through the recurrence.
    def fuse(w):                              # w: (4H, H) PyTorch layout
        wg = w.reshape(4, H, H)               # (gate, out, in)
        out = jnp.zeros((HP, G4), jnp.float32)
        for g in range(4):
            out = out.at[:H, g * HP:g * HP + H].set(wg[g].T)
        return out

    wih_f = fuse(w_ih)
    whh_f = fuse(w_hh)
    bias = (b_ih + b_hh).reshape(4, H)
    bias_f = jnp.zeros((1, G4), jnp.float32)
    for g in range(4):
        bias_f = bias_f.at[0, g * HP:g * HP + H].set(bias[g])

    # Algebraic fold (f32): per-token gate inputs = emb @ W_ih_fused + bias.
    emb_p = jnp.zeros((vsize, HP), jnp.float32).at[:, :H].set(emb)
    xg_table = emb_p @ wih_f + bias_f                 # (vsize, G4)
    xg_table_p = xg_table.reshape(vsize, 1, G4)       # leading axis gathered in-kernel

    proj_w_p = (jnp.zeros((HP, NP), jnp.float32)
                .at[:H, :ncls].set(proj_w.T).astype(jnp.bfloat16))
    proj_b_p = jnp.zeros((1, NP), jnp.float32).at[0, :ncls].set(proj_b)

    packed = {
        "xg_table_p": xg_table_p,
        "whh_p": whh_f.astype(jnp.bfloat16),
        "proj_w_p": proj_w_p,
        "proj_b_p": proj_b_p,
    }
    raw = {"emb": emb, "w_ih": w_ih, "w_hh": w_hh, "b_ih": b_ih, "b_hh": b_hh,
           "proj_w": proj_w, "proj_b": proj_b}
    return packed, raw


def reference_forward(input_ids, raw):
    """Pure-JAX f32 reference matching PyTorch nn.LSTM + nn.Linear semantics."""
    x = raw["emb"][input_ids]                               # (T, B, H)

    def cell(carry, x_t):
        h, c = carry
        z = (x_t @ raw["w_ih"].T + raw["b_ih"]
             + h @ raw["w_hh"].T + raw["b_hh"])
        i, f, g, o = jnp.split(z, 4, axis=-1)
        c = jax.nn.sigmoid(f) * c + jax.nn.sigmoid(i) * jnp.tanh(g)
        h = jax.nn.sigmoid(o) * jnp.tanh(c)
        return (h, c), None

    B = x.shape[1]
    h0 = jnp.zeros((B, H), jnp.float32)
    c0 = jnp.zeros((B, H), jnp.float32)
    (h, _), _ = lax.scan(cell, (h0, c0), x)
    return h @ raw["proj_w"].T + raw["proj_b"]


if __name__ == "__main__":
    vsize, ncls = 50, 5
    T, B = 8, 2

    key = jax.random.PRNGKey(0)
    k_params, k_ids = jax.random.split(key)
    params, raw = init_params(k_params, vsize, ncls)
    input_ids = jax.random.randint(k_ids, (T, B), 0, vsize, dtype=jnp.int32)

    fwd = jax.jit(functools.partial(model_forward, ncls=ncls))
    out = fwd(input_ids, params)
    jax.block_until_ready(out)

    assert out.shape == (B, ncls) and out.dtype == jnp.float32
    ref = reference_forward(input_ids, raw)
    # bf16 W_hh / proj weights => slightly looser tolerance than a pure-f32 run.
    err = float(jnp.max(jnp.abs(out - ref)))
    assert jnp.allclose(out, ref, atol=2e-2, rtol=2e-2), err

    print("KERNEL_OK")
</pallas_src>

<mosaic_0001>
module attributes {stable_mosaic.version = 11 : i64} {
  func.func @_lstm_kernel(%arg0: i32, %arg1: memref<64xi32, #tpu.memory_space<smem>>, %arg2: memref<50x1x512xf32, #tpu.memory_space<vmem>>, %arg3: memref<128x512xbf16, #tpu.memory_space<vmem>>, %arg4: memref<128x128xbf16, #tpu.memory_space<vmem>>, %arg5: memref<1x128xf32, #tpu.memory_space<vmem>>, %arg6: memref<8x128xf32, #tpu.memory_space<vmem>>, %arg7: memref<8x512xf32, #tpu.memory_space<vmem>>) attributes {dimension_semantics = [#tpu.dimension_semantics<arbitrary>], iteration_bounds = array<i64: 1>, scalar_prefetch = 1 : i64, scratch_operands = 1 : i64, tpu.core_type = #tpu.core_type<tc>, window_params = [{pipeline_mode = #tpu.pipeline_mode<synchronous>, transform_indices = @transform_0, window_bounds = array<i64: 50, 1, 512>}, {pipeline_mode = #tpu.pipeline_mode<synchronous>, transform_indices = @transform_1, window_bounds = array<i64: 128, 512>}, {pipeline_mode = #tpu.pipeline_mode<synchronous>, transform_indices = @transform_2, window_bounds = array<i64: 128, 128>}, {pipeline_mode = #tpu.pipeline_mode<synchronous>, transform_indices = @transform_3, window_bounds = array<i64: 1, 128>}, {pipeline_mode = #tpu.pipeline_mode<synchronous>, transform_indices = @transform_4, window_bounds = array<i64: 8, 128>}]} {
    %cst = arith.constant 0.000000e+00 : f32
    %0 = vector.broadcast %cst : f32 to vector<8x128xf32>
    %cst_0 = arith.constant 0.000000e+00 : f32
    %1 = vector.broadcast %cst_0 : f32 to vector<8x128xf32>
    %c0_i32 = arith.constant 0 : i32
    %c8_i32 = arith.constant 8 : i32
    %2 = arith.muli %c0_i32, %c8_i32 : i32
    %c0_i32_1 = arith.constant 0 : i32
    %3 = arith.addi %2, %c0_i32_1 : i32
    %4 = arith.index_cast %3 : i32 to index
    %5 = memref.load %arg1[%4] : memref<64xi32, #tpu.memory_space<smem>>
    %6 = arith.index_cast %5 : i32 to index
    %c0 = arith.constant 0 : index
    %c0_2 = arith.constant 0 : index
    %7 = vector.load %arg2[%6, %c0, %c0_2] : memref<50x1x512xf32, #tpu.memory_space<vmem>>, vector<1x1x512xf32>
    %8 = vector.shape_cast %7 : vector<1x1x512xf32> to vector<1x512xf32>
    %c0_3 = arith.constant 0 : index
    %c0_4 = arith.constant 0 : index
    %9 = vector.load %arg7[%c0_3, %c0_4] : memref<8x512xf32, #tpu.memory_space<vmem>>, vector<1x512xf32>
    tpu.vector_store %arg7[%c0_3, %c0_4], %8 {strides = array<i32>} : memref<8x512xf32, #tpu.memory_space<vmem>>, vector<1x512xf32>,
    %c1_i32 = arith.constant 1 : i32
    %10 = arith.addi %2, %c1_i32 : i32
    %11 = arith.index_cast %10 : i32 to index
    %12 = memref.load %arg1[%11] : memref<64xi32, #tpu.memory_space<smem>>
    %13 = arith.index_cast %12 : i32 to index
    %c0_5 = arith.constant 0 : index
    %c0_6 = arith.constant 0 : index
    %14 = vector.load %arg2[%13, %c0_5, %c0_6] : memref<50x1x512xf32, #tpu.memory_space<vmem>>, vector<1x1x512xf32>
    %15 = vector.shape_cast %14 : vector<1x1x512xf32> to vector<1x512xf32>
    %c1 = arith.constant 1 : index
    %c0_7 = arith.constant 0 : index
    %16 = vector.load %arg7[%c1, %c0_7] : memref<8x512xf32, #tpu.memory_space<vmem>>, vector<1x512xf32>
    tpu.vector_store %arg7[%c1, %c0_7], %15 {strides = array<i32>} : memref<8x512xf32, #tpu.memory_space<vmem>>, vector<1x512xf32>,
    %c2_i32 = arith.constant 2 : i32
    %17 = arith.addi %2, %c2_i32 : i32
    %18 = arith.index_cast %17 : i32 to index
    %19 = memref.load %arg1[%18] : memref<64xi32, #tpu.memory_space<smem>>
    %20 = arith.index_cast %19 : i32 to index
    %c0_8 = arith.constant 0 : index
    %c0_9 = arith.constant 0 : index
    %21 = vector.load %arg2[%20, %c0_8, %c0_9] : memref<50x1x512xf32, #tpu.memory_space<vmem>>, vector<1x1x512xf32>
    %22 = vector.shape_cast %21 : vector<1x1x512xf32> to vector<1x512xf32>
    %c2 = arith.constant 2 : index
    %c0_10 = arith.constant 0 : index
    %23 = vector.load %arg7[%c2, %c0_10] : memref<8x512xf32, #tpu.memory_space<vmem>>, vector<1x512xf32>
    tpu.vector_store %arg7[%c2, %c0_10], %22 {strides = array<i32>} : memref<8x512xf32, #tpu.memory_space<vmem>>, vector<1x512xf32>,
    %c3_i32 = arith.constant 3 : i32
    %24 = arith.addi %2, %c3_i32 : i32
    %25 = arith.index_cast %24 : i32 to index
    %26 = memref.load %arg1[%25] : memref<64xi32, #tpu.memory_space<smem>>
    %27 = arith.index_cast %26 : i32 to index
    %c0_11 = arith.constant 0 : index
    %c0_12 = arith.constant 0 : index
    %28 = vector.load %arg2[%27, %c0_11, %c0_12] : memref<50x1x512xf32, #tpu.memory_space<vmem>>, vector<1x1x512xf32>
    %29 = vector.shape_cast %28 : vector<1x1x512xf32> to vector<1x512xf32>
    %c3 = arith.constant 3 : index
    %c0_13 = arith.constant 0 : index
    %30 = vector.load %arg7[%c3, %c0_13] : memref<8x512xf32, #tpu.memory_space<vmem>>, vector<1x512xf32>
    tpu.vector_store %arg7[%c3, %c0_13], %29 {strides = array<i32>} : memref<8x512xf32, #tpu.memory_space<vmem>>, vector<1x512xf32>,
    %c4_i32 = arith.constant 4 : i32
    %31 = arith.addi %2, %c4_i32 : i32
    %32 = arith.index_cast %31 : i32 to index
    %33 = memref.load %arg1[%32] : memref<64xi32, #tpu.memory_space<smem>>
    %34 = arith.index_cast %33 : i32 to index
    %c0_14 = arith.constant 0 : index
    %c0_15 = arith.constant 0 : index
    %35 = vector.load %arg2[%34, %c0_14, %c0_15] : memref<50x1x512xf32, #tpu.memory_space<vmem>>, vector<1x1x512xf32>
    %36 = vector.shape_cast %35 : vector<1x1x512xf32> to vector<1x512xf32>
    %c4 = arith.constant 4 : index
    %c0_16 = arith.constant 0 : index
    %37 = vector.load %arg7[%c4, %c0_16] : memref<8x512xf32, #tpu.memory_space<vmem>>, vector<1x512xf32>
    tpu.vector_store %arg7[%c4, %c0_16], %36 {strides = array<i32>} : memref<8x512xf32, #tpu.memory_space<vmem>>, vector<1x512xf32>,
    %c5_i32 = arith.constant 5 : i32
    %38 = arith.addi %2, %c5_i32 : i32
    %39 = arith.index_cast %38 : i32 to index
    %40 = memref.load %arg1[%39] : memref<64xi32, #tpu.memory_space<smem>>
    %41 = arith.index_cast %40 : i32 to index
    %c0_17 = arith.constant 0 : index
    %c0_18 = arith.constant 0 : index
    %42 = vector.load %arg2[%41, %c0_17, %c0_18] : memref<50x1x512xf32, #tpu.memory_space<vmem>>, vector<1x1x512xf32>
    %43 = vector.shape_cast %42 : vector<1x1x512xf32> to vector<1x512xf32>
    %c5 = arith.constant 5 : index
    %c0_19 = arith.constant 0 : index
    %44 = vector.load %arg7[%c5, %c0_19] : memref<8x512xf32, #tpu.memory_space<vmem>>, vector<1x512xf32>
    tpu.vector_store %arg7[%c5, %c0_19], %43 {strides = array<i32>} : memref<8x512xf32, #tpu.memory_space<vmem>>, vector<1x512xf32>,
    %c6_i32 = arith.constant 6 : i32
    %45 = arith.addi %2, %c6_i32 : i32
    %46 = arith.index_cast %45 : i32 to index
    %47 = memref.load %arg1[%46] : memref<64xi32, #tpu.memory_space<smem>>
    %48 = arith.index_cast %47 : i32 to index
    %c0_20 = arith.constant 0 : index
    %c0_21 = arith.constant 0 : index
    %49 = vector.load %arg2[%48, %c0_20, %c0_21] : memref<50x1x512xf32, #tpu.memory_space<vmem>>, vector<1x1x512xf32>
    %50 = vector.shape_cast %49 : vector<1x1x512xf32> to vector<1x512xf32>
    %c6 = arith.constant 6 : index
    %c0_22 = arith.constant 0 : index
    %51 = vector.load %arg7[%c6, %c0_22] : memref<8x512xf32, #tpu.memory_space<vmem>>, vector<1x512xf32>
    tpu.vector_store %arg7[%c6, %c0_22], %50 {strides = array<i32>} : memref<8x512xf32, #tpu.memory_space<vmem>>, vector<1x512xf32>,
    %c7_i32 = arith.constant 7 : i32
    %52 = arith.addi %2, %c7_i32 : i32
    %53 = arith.index_cast %52 : i32 to index
    %54 = memref.load %arg1[%53] : memref<64xi32, #tpu.memory_space<smem>>
    %55 = arith.index_cast %54 : i32 to index
    %c0_23 = arith.constant 0 : index
    %c0_24 = arith.constant 0 : index
    %56 = vector.load %arg2[%55, %c0_23, %c0_24] : memref<50x1x512xf32, #tpu.memory_space<vmem>>, vector<1x1x512xf32>
    %57 = vector.shape_cast %56 : vector<1x1x512xf32> to vector<1x512xf32>
    %c7 = arith.constant 7 : index
    %c0_25 = arith.constant 0 : index
    %58 = vector.load %arg7[%c7, %c0_25] : memref<8x512xf32, #tpu.memory_space<vmem>>, vector<1x512xf32>
    tpu.vector_store %arg7[%c7, %c0_25], %57 {strides = array<i32>} : memref<8x512xf32, #tpu.memory_space<vmem>>, vector<1x512xf32>,
    %c0_26 = arith.constant 0 : index
    %c0_27 = arith.constant 0 : index
    %59 = vector.load %arg7[%c0_26, %c0_27] : memref<8x512xf32, #tpu.memory_space<vmem>>, vector<8x512xf32>
    %60 = arith.truncf %0 : vector<8x128xf32> to vector<8x128xbf16>
    %c0_28 = arith.constant 0 : index
    %c0_29 = arith.constant 0 : index
    %61 = vector.load %arg3[%c0_28, %c0_29] : memref<128x512xbf16, #tpu.memory_space<vmem>>, vector<128x512xbf16>
    %cst_30 = arith.constant dense<0.000000e+00> : vector<8x512xf32>
    %62 = tpu.matmul %60, %61, %cst_30 {dimension_numbers = #tpu.dot_dimension_numbers<[1], [0], [0], [1], [0, 0, 1, 1], [], []>} : vector<8x128xbf16>, vector<128x512xbf16>, vector<8x512xf32> -> vector<8x512xf32>
    %63 = arith.addf %59, %62 : vector<8x512xf32>
    %64 = vector.extract_strided_slice %63 {offsets = [0, 0], sizes = [8, 128], strides = [1, 1]} : vector<8x512xf32> to vector<8x128xf32>
    %cst_31 = arith.constant 5.000000e-01 : f32
    %65 = vector.broadcast %cst_31 : f32 to vector<8x128xf32>
    %66 = arith.mulf %65, %64 : vector<8x128xf32>
    %67 = math.tanh %66 : vector<8x128xf32>
    %cst_32 = arith.constant 5.000000e-01 : f32
    %68 = vector.broadcast %cst_32 : f32 to vector<8x128xf32>
    %69 = arith.mulf %68, %67 : vector<8x128xf32>
    %cst_33 = arith.constant 5.000000e-01 : f32
    %70 = vector.broadcast %cst_33 : f32 to vector<8x128xf32>
    %71 = arith.addf %69, %70 : vector<8x128xf32>
    %72 = vector.extract_strided_slice %63 {offsets = [0, 128], sizes = [8, 128], strides = [1, 1]} : vector<8x512xf32> to vector<8x128xf32>
    %cst_34 = arith.constant 5.000000e-01 : f32
    %73 = vector.broadcast %cst_34 : f32 to vector<8x128xf32>
    %74 = arith.mulf %73, %72 : vector<8x128xf32>
    %75 = math.tanh %74 : vector<8x128xf32>
    %cst_35 = arith.constant 5.000000e-01 : f32
    %76 = vector.broadcast %cst_35 : f32 to vector<8x128xf32>
    %77 = arith.mulf %76, %75 : vector<8x128xf32>
    %cst_36 = arith.constant 5.000000e-01 : f32
    %78 = vector.broadcast %cst_36 : f32 to vector<8x128xf32>
    %79 = arith.addf %77, %78 : vector<8x128xf32>
    %80 = vector.extract_strided_slice %63 {offsets = [0, 256], sizes = [8, 128], strides = [1, 1]} : vector<8x512xf32> to vector<8x128xf32>
    %81 = math.tanh %80 : vector<8x128xf32>
    %82 = vector.extract_strided_slice %63 {offsets = [0, 384], sizes = [8, 128], strides = [1, 1]} : vector<8x512xf32> to vector<8x128xf32>
    %cst_37 = arith.constant 5.000000e-01 : f32
    %83 = vector.broadcast %cst_37 : f32 to vector<8x128xf32>
    %84 = arith.mulf %83, %82 : vector<8x128xf32>
    %85 = math.tanh %84 : vector<8x128xf32>
    %cst_38 = arith.constant 5.000000e-01 : f32
    %86 = vector.broadcast %cst_38 : f32 to vector<8x128xf32>
    %87 = arith.mulf %86, %85 : vector<8x128xf32>
    %cst_39 = arith.constant 5.000000e-01 : f32
    %88 = vector.broadcast %cst_39 : f32 to vector<8x128xf32>
    %89 = arith.addf %87, %88 : vector<8x128xf32>
    %90 = arith.mulf %79, %1 : vector<8x128xf32>
    %91 = arith.mulf %71, %81 : vector<8x128xf32>
    %92 = arith.addf %90, %91 : vector<8x128xf32>
    %93 = math.tanh %92 : vector<8x128xf32>
    %94 = arith.mulf %89, %93 : vector<8x128xf32>
    %c1_i32_40 = arith.constant 1 : i32
    %c8_i32_41 = arith.constant 8 : i32
    %95 = arith.muli %c1_i32_40, %c8_i32_41 : i32
    %c0_i32_42 = arith.constant 0 : i32
    %96 = arith.addi %95, %c0_i32_42 : i32
    %97 = arith.index_cast %96 : i32 to index
    %98 = memref.load %arg1[%97] : memref<64xi32, #tpu.memory_space<smem>>
    %99 = arith.index_cast %98 : i32 to index
    %c0_43 = arith.constant 0 : index
    %c0_44 = arith.constant 0 : index
    %100 = vector.load %arg2[%99, %c0_43, %c0_44] : memref<50x1x512xf32, #tpu.memory_space<vmem>>, vector<1x1x512xf32>
    %101 = vector.shape_cast %100 : vector<1x1x512xf32> to vector<1x512xf32>
    %c0_45 = arith.constant 0 : index
    %c0_46 = arith.constant 0 : index
    %102 = vector.load %arg7[%c0_45, %c0_46] : memref<8x512xf32, #tpu.memory_space<vmem>>, vector<1x512xf32>
    tpu.vector_store %arg7[%c0_45, %c0_46], %101 {strides = array<i32>} : memref<8x512xf32, #tpu.memory_space<vmem>>, vector<1x512xf32>,
    %c1_i32_47 = arith.constant 1 : i32
    %103 = arith.addi %95, %c1_i32_47 : i32
    %104 = arith.index_cast %103 : i32 to index
    %105 = memref.load %arg1[%104] : memref<64xi32, #tpu.memory_space<smem>>
    %106 = arith.index_cast %105 : i32 to index
    %c0_48 = arith.constant 0 : index
    %c0_49 = arith.constant 0 : index
    %107 = vector.load %arg2[%106, %c0_48, %c0_49] : memref<50x1x512xf32, #tpu.memory_space<vmem>>, vector<1x1x512xf32>
    %108 = vector.shape_cast %107 : vector<1x1x512xf32> to vector<1x512xf32>
    %c1_50 = arith.constant 1 : index
    %c0_51 = arith.constant 0 : index
    %109 = vector.load %arg7[%c1_50, %c0_51] : memref<8x512xf32, #tpu.memory_space<vmem>>, vector<1x512xf32>
    tpu.vector_store %arg7[%c1_50, %c0_51], %108 {strides = array<i32>} : memref<8x512xf32, #tpu.memory_space<vmem>>, vector<1x512xf32>,
    %c2_i32_52 = arith.constant 2 : i32
    %110 = arith.addi %95, %c2_i32_52 : i32
    %111 = arith.index_cast %110 : i32 to index
    %112 = memref.load %arg1[%111] : memref<64xi32, #tpu.memory_space<smem>>
    %113 = arith.index_cast %112 : i32 to index
    %c0_53 = arith.constant 0 : index
    %c0_54 = arith.constant 0 : index
    %114 = vector.load %arg2[%113, %c0_53, %c0_54] : memref<50x1x512xf32, #tpu.memory_space<vmem>>, vector<1x1x512xf32>
    %115 = vector.shape_cast %114 : vector<1x1x512xf32> to vector<1x512xf32>
    %c2_55 = arith.constant 2 : index
    %c0_56 = arith.constant 0 : index
    %116 = vector.load %arg7[%c2_55, %c0_56] : memref<8x512xf32, #tpu.memory_space<vmem>>, vector<1x512xf32>
    tpu.vector_store %arg7[%c2_55, %c0_56], %115 {strides = array<i32>} : memref<8x512xf32, #tpu.memory_space<vmem>>, vector<1x512xf32>,
    %c3_i32_57 = arith.constant 3 : i32
    %117 = arith.addi %95, %c3_i32_57 : i32
    %118 = arith.index_cast %117 : i32 to index
    %119 = memref.load %arg1[%118] : memref<64xi32, #tpu.memory_space<smem>>
    %120 = arith.index_cast %119 : i32 to index
    %c0_58 = arith.constant 0 : index
    %c0_59 = arith.constant 0 : index
    %121 = vector.load %arg2[%120, %c0_58, %c0_59] : memref<50x1x512xf32, #tpu.memory_space<vmem>>, vector<1x1x512xf32>
    %122 = vector.shape_cast %121 : vector<1x1x512xf32> to vector<1x512xf32>
    %c3_60 = arith.constant 3 : index
    %c0_61 = arith.constant 0 : index
    %123 = vector.load %arg7[%c3_60, %c0_61] : memref<8x512xf32, #tpu.memory_space<vmem>>, vector<1x512xf32>
    tpu.vector_store %arg7[%c3_60, %c0_61], %122 {strides = array<i32>} : memref<8x512xf32, #tpu.memory_space<vmem>>, vector<1x512xf32>,
    %c4_i32_62 = arith.constant 4 : i32
    %124 = arith.addi %95, %c4_i32_62 : i32
    %125 = arith.index_cast %124 : i32 to index
    %126 = memref.load %arg1[%125] : memref<64xi32, #tpu.memory_space<smem>>
    %127 = arith.index_cast %126 : i32 to index
    %c0_63 = arith.constant 0 : index
    %c0_64 = arith.constant 0 : index
    %128 = vector.load %arg2[%127, %c0_63, %c0_64] : memref<50x1x512xf32, #tpu.memory_space<vmem>>, vector<1x1x512xf32>
    %129 = vector.shape_cast %128 : vector<1x1x512xf32> to vector<1x512xf32>
    %c4_65 = arith.constant 4 : index
    %c0_66 = arith.constant 0 : index
    %130 = vector.load %arg7[%c4_65, %c0_66] : memref<8x512xf32, #tpu.memory_space<vmem>>, vector<1x512xf32>
    tpu.vector_store %arg7[%c4_65, %c0_66], %129 {strides = array<i32>} : memref<8x512xf32, #tpu.memory_space<vmem>>, vector<1x512xf32>,
    %c5_i32_67 = arith.constant 5 : i32
    %131 = arith.addi %95, %c5_i32_67 : i32
    %132 = arith.index_cast %131 : i32 to index
    %133 = memref.load %arg1[%132] : memref<64xi32, #tpu.memory_space<smem>>
    %134 = arith.index_cast %133 : i32 to index
    %c0_68 = arith.constant 0 : index
    %c0_69 = arith.constant 0 : index
    %135 = vector.load %arg2[%134, %c0_68, %c0_69] : memref<50x1x512xf32, #tpu.memory_space<vmem>>, vector<1x1x512xf32>
    %136 = vector.shape_cast %135 : vector<1x1x512xf32> to vector<1x512xf32>
    %c5_70 = arith.constant 5 : index
    %c0_71 = arith.constant 0 : index
    %137 = vector.load %arg7[%c5_70, %c0_71] : memref<8x512xf32, #tpu.memory_space<vmem>>, vector<1x512xf32>
    tpu.vector_store %arg7[%c5_70, %c0_71], %136 {strides = array<i32>} : memref<8x512xf32, #tpu.memory_space<vmem>>, vector<1x512xf32>,
    %c6_i32_72 = arith.constant 6 : i32
    %138 = arith.addi %95, %c6_i32_72 : i32
    %139 = arith.index_cast %138 : i32 to index
    %140 = memref.load %arg1[%139] : memref<64xi32, #tpu.memory_space<smem>>
    %141 = arith.index_cast %140 : i32 to index
    %c0_73 = arith.constant 0 : index
    %c0_74 = arith.constant 0 : index
    %142 = vector.load %arg2[%141, %c0_73, %c0_74] : memref<50x1x512xf32, #tpu.memory_space<vmem>>, vector<1x1x512xf32>
    %143 = vector.shape_cast %142 : vector<1x1x512xf32> to vector<1x512xf32>
    %c6_75 = arith.constant 6 : index
    %c0_76 = arith.constant 0 : index
    %144 = vector.load %arg7[%c6_75, %c0_76] : memref<8x512xf32, #tpu.memory_space<vmem>>, vector<1x512xf32>
    tpu.vector_store %arg7[%c6_75, %c0_76], %143 {strides = array<i32>} : memref<8x512xf32, #tpu.memory_space<vmem>>, vector<1x512xf32>,
    %c7_i32_77 = arith.constant 7 : i32
    %145 = arith.addi %95, %c7_i32_77 : i32
    %146 = arith.index_cast %145 : i32 to index
    %147 = memref.load %arg1[%146] : memref<64xi32, #tpu.memory_space<smem>>
    %148 = arith.index_cast %147 : i32 to index
    %c0_78 = arith.constant 0 : index
    %c0_79 = arith.constant 0 : index
    %149 = vector.load %arg2[%148, %c0_78, %c0_79] : memref<50x1x512xf32, #tpu.memory_space<vmem>>, vector<1x1x512xf32>
    %150 = vector.shape_cast %149 : vector<1x1x512xf32> to vector<1x512xf32>
    %c7_80 = arith.constant 7 : index
    %c0_81 = arith.constant 0 : index
    %151 = vector.load %arg7[%c7_80, %c0_81] : memref<8x512xf32, #tpu.memory_space<vmem>>, vector<1x512xf32>
    tpu.vector_store %arg7[%c7_80, %c0_81], %150 {strides = array<i32>} : memref<8x512xf32, #tpu.memory_space<vmem>>, vector<1x512xf32>,
    %c0_82 = arith.constant 0 : index
    %c0_83 = arith.constant 0 : index
    %152 = vector.load %arg7[%c0_82, %c0_83] : memref<8x512xf32, #tpu.memory_space<vmem>>, vector<8x512xf32>
    %153 = arith.truncf %94 : vector<8x128xf32> to vector<8x128xbf16>
    %c0_84 = arith.constant 0 : index
    %c0_85 = arith.constant 0 : index
    %154 = vector.load %arg3[%c0_84, %c0_85] : memref<128x512xbf16, #tpu.memory_space<vmem>>, vector<128x512xbf16>
    %cst_86 = arith.constant dense<0.000000e+00> : vector<8x512xf32>
    %155 = tpu.matmul %153, %154, %cst_86 {dimension_numbers = #tpu.dot_dimension_numbers<[1], [0], [0], [1], [0, 0, 1, 1], [], []>} : vector<8x128xbf16>, vector<128x512xbf16>, vector<8x512xf32> -> vector<8x512xf32>
    %156 = arith.addf %152, %155 : vector<8x512xf32>
    %157 = vector.extract_strided_slice %156 {offsets = [0, 0], sizes = [8, 128], strides = [1, 1]} : vector<8x512xf32> to vector<8x128xf32>
    %cst_87 = arith.constant 5.000000e-01 : f32
    %158 = vector.broadcast %cst_87 : f32 to vector<8x128xf32>
    %159 = arith.mulf %158, %157 : vector<8x128xf32>
    %160 = math.tanh %159 : vector<8x128xf32>
    %cst_88 = arith.constant 5.000000e-01 : f32
    %161 = vector.broadcast %cst_88 : f32 to vector<8x128xf32>
    %162 = arith.mulf %161, %160 : vector<8x128xf32>
    %cst_89 = arith.constant 5.000000e-01 : f32
    %163 = vector.broadcast %cst_89 : f32 to vector<8x128xf32>
    %164 = arith.addf %162, %163 : vector<8x128xf32>
    %165 = vector.extract_strided_slice %156 {offsets = [0, 128], sizes = [8, 128], strides = [1, 1]} : vector<8x512xf32> to vector<8x128xf32>
    %cst_90 = arith.constant 5.000000e-01 : f32
    %166 = vector.broadcast %cst_90 : f32 to vector<8x128xf32>
    %167 = arith.mulf %166, %165 : vector<8x128xf32>
    %168 = math.tanh %167 : vector<8x128xf32>
    %cst_91 = arith.constant 5.000000e-01 : f32
    %169 = vector.broadcast %cst_91 : f32 to vector<8x128xf32>
    %170 = arith.mulf %169, %168 : vector<8x128xf32>
    %cst_92 = arith.constant 5.000000e-01 : f32
    %171 = vector.broadcast %cst_92 : f32 to vector<8x128xf32>
    %172 = arith.addf %170, %171 : vector<8x128xf32>
    %173 = vector.extract_strided_slice %156 {offsets = [0, 256], sizes = [8, 128], strides = [1, 1]} : vector<8x512xf32> to vector<8x128xf32>
    %174 = math.tanh %173 : vector<8x128xf32>
    %175 = vector.extract_strided_slice %156 {offsets = [0, 384], sizes = [8, 128], strides = [1, 1]} : vector<8x512xf32> to vector<8x128xf32>
    %cst_93 = arith.constant 5.000000e-01 : f32
    %176 = vector.broadcast %cst_93 : f32 to vector<8x128xf32>
    %177 = arith.mulf %176, %175 : vector<8x128xf32>
    %178 = math.tanh %177 : vector<8x128xf32>
    %cst_94 = arith.constant 5.000000e-01 : f32
    %179 = vector.broadcast %cst_94 : f32 to vector<8x128xf32>
    %180 = arith.mulf %179, %178 : vector<8x128xf32>
    %cst_95 = arith.constant 5.000000e-01 : f32
    %181 = vector.broadcast %cst_95 : f32 to vector<8x128xf32>
    %182 = arith.addf %180, %181 : vector<8x128xf32>
    %183 = arith.mulf %172, %92 : vector<8x128xf32>
    %184 = arith.mulf %164, %174 : vector<8x128xf32>
    %185 = arith.addf %183, %184 : vector<8x128xf32>
    %186 = math.tanh %185 : vector<8x128xf32>
    %187 = arith.mulf %182, %186 : vector<8x128xf32>
    %c2_i32_96 = arith.constant 2 : i32
    %c8_i32_97 = arith.constant 8 : i32
    %188 = arith.muli %c2_i32_96, %c8_i32_97 : i32
    %c0_i32_98 = arith.constant 0 : i32
    %189 = arith.addi %188, %c0_i32_98 : i32
    %190 = arith.index_cast %189 : i32 to index
    %191 = memref.load %arg1[%190] : memref<64xi32, #tpu.memory_space<smem>>
    %192 = arith.index_cast %191 : i32 to index
    %c0_99 = arith.constant 0 : index
    %c0_100 = arith.constant 0 : index
    %193 = vector.load %arg2[%192, %c0_99, %c0_100] : memref<50x1x512xf32, #tpu.memory_space<vmem>>, vector<1x1x512xf32>
    %194 = vector.shape_cast %193 : vector<1x1x512xf32> to vector<1x512xf32>
    %c0_101 = arith.constant 0 : index
    %c0_102 = arith.constant 0 : index
    %195 = vector.load %arg7[%c0_101, %c0_102] : memref<8x512xf32, #tpu.memory_space<vmem>>, vector<1x512xf32>
    tpu.vector_store %arg7[%c0_101, %c0_102], %194 {strides = array<i32>} : memref<8x512xf32, #tpu.memory_space<vmem>>, vector<1x512xf32>,
    %c1_i32_103 = arith.constant 1 : i32
    %196 = arith.addi %188, %c1_i32_103 : i32
    %197 = arith.index_cast %196 : i32 to index
    %198 = memref.load %arg1[%197] : memref<64xi32, #tpu.memory_space<smem>>
    %199 = arith.index_cast %198 : i32 to index
    %c0_104 = arith.constant 0 : index
    %c0_105 = arith.constant 0 : index
    %200 = vector.load %arg2[%199, %c0_104, %c0_105] : memref<50x1x512xf32, #tpu.memory_space<vmem>>, vector<1x1x512xf32>
    %201 = vector.shape_cast %200 : vector<1x1x512xf32> to vector<1x512xf32>
    %c1_106 = arith.constant 1 : index
    %c0_107 = arith.constant 0 : index
    %202 = vector.load %arg7[%c1_106, %c0_107] : memref<8x512xf32, #tpu.memory_space<vmem>>, vector<1x512xf32>
    tpu.vector_store %arg7[%c1_106, %c0_107], %201 {strides = array<i32>} : memref<8x512xf32, #tpu.memory_space<vmem>>, vector<1x512xf32>,
    %c2_i32_108 = arith.constant 2 : i32
    %203 = arith.addi %188, %c2_i32_108 : i32
    %204 = arith.index_cast %203 : i32 to index
    %205 = memref.load %arg1[%204] : memref<64xi32, #tpu.memory_space<smem>>
    %206 = arith.index_cast %205 : i32 to index
    %c0_109 = arith.constant 0 : index
    %c0_110 = arith.constant 0 : index
    %207 = vector.load %arg2[%206, %c0_109, %c0_110] : memref<50x1x512xf32, #tpu.memory_space<vmem>>, vector<1x1x512xf32>
    %208 = vector.shape_cast %207 : vector<1x1x512xf32> to vector<1x512xf32>
    %c2_111 = arith.constant 2 : index
    %c0_112 = arith.constant 0 : index
    %209 = vector.load %arg7[%c2_111, %c0_112] : memref<8x512xf32, #tpu.memory_space<vmem>>, vector<1x512xf32>
    tpu.vector_store %arg7[%c2_111, %c0_112], %208 {strides = array<i32>} : memref<8x512xf32, #tpu.memory_space<vmem>>, vector<1x512xf32>,
    %c3_i32_113 = arith.constant 3 : i32
    %210 = arith.addi %188, %c3_i32_113 : i32
    %211 = arith.index_cast %210 : i32 to index
    %212 = memref.load %arg1[%211] : memref<64xi32, #tpu.memory_space<smem>>
    %213 = arith.index_cast %212 : i32 to index
    %c0_114 = arith.constant 0 : index
    %c0_115 = arith.constant 0 : index
    %214 = vector.load %arg2[%213, %c0_114, %c0_115] : memref<50x1x512xf32, #tpu.memory_space<vmem>>, vector<1x1x512xf32>
    %215 = vector.shape_cast %214 : vector<1x1x512xf32> to vector<1x512xf32>
    %c3_116 = arith.constant 3 : index
    %c0_117 = arith.constant 0 : index
    %216 = vector.load %arg7[%c3_116, %c0_117] : memref<8x512xf32, #tpu.memory_space<vmem>>, vector<1x512xf32>
    tpu.vector_store %arg7[%c3_116, %c0_117], %215 {strides = array<i32>} : memref<8x512xf32, #tpu.memory_space<vmem>>, vector<1x512xf32>,
    %c4_i32_118 = arith.constant 4 : i32
    %217 = arith.addi %188, %c4_i32_118 : i32
    %218 = arith.index_cast %217 : i32 to index
    %219 = memref.load %arg1[%218] : memref<64xi32, #tpu.memory_space<smem>>
    %220 = arith.index_cast %219 : i32 to index
    %c0_119 = arith.constant 0 : index
    %c0_120 = arith.constant 0 : index
    %221 = vector.load %arg2[%220, %c0_119, %c0_120] : memref<50x1x512xf32, #tpu.memory_space<vmem>>, vector<1x1x512xf32>
    %222 = vector.shape_cast %221 : vector<1x1x512xf32> to vector<1x512xf32>
    %c4_121 = arith.constant 4 : index
    %c0_122 = arith.constant 0 : index
    %223 = vector.load %arg7[%c4_121, %c0_122] : memref<8x512xf32, #tpu.memory_space<vmem>>, vector<1x512xf32>
    tpu.vector_store %arg7[%c4_121, %c0_122], %222 {strides = array<i32>} : memref<8x512xf32, #tpu.memory_space<vmem>>, vector<1x512xf32>,
    %c5_i32_123 = arith.constant 5 : i32
    %224 = arith.addi %188, %c5_i32_123 : i32
    %225 = arith.index_cast %224 : i32 to index
    %226 = memref.load %arg1[%225] : memref<64xi32, #tpu.memory_space<smem>>
    %227 = arith.index_cast %226 : i32 to index
    %c0_124 = arith.constant 0 : index
    %c0_125 = arith.constant 0 : index
    %228 = vector.load %arg2[%227, %c0_124, %c0_125] : memref<50x1x512xf32, #tpu.memory_space<vmem>>, vector<1x1x512xf32>
    %229 = vector.shape_cast %228 : vector<1x1x512xf32> to vector<1x512xf32>
    %c5_126 = arith.constant 5 : index
    %c0_127 = arith.constant 0 : index
    %230 = vector.load %arg7[%c5_126, %c0_127] : memref<8x512xf32, #tpu.memory_space<vmem>>, vector<1x512xf32>
    tpu.vector_store %arg7[%c5_126, %c0_127], %229 {strides = array<i32>} : memref<8x512xf32, #tpu.memory_space<vmem>>, vector<1x512xf32>,
    %c6_i32_128 = arith.constant 6 : i32
    %231 = arith.addi %188, %c6_i32_128 : i32
    %232 = arith.index_cast %231 : i32 to index
    %233 = memref.load %arg1[%232] : memref<64xi32, #tpu.memory_space<smem>>
    %234 = arith.index_cast %233 : i32 to index
    %c0_129 = arith.constant 0 : index
    %c0_130 = arith.constant 0 : index
    %235 = vector.load %arg2[%234, %c0_129, %c0_130] : memref<50x1x512xf32, #tpu.memory_space<vmem>>, vector<1x1x512xf32>
    %236 = vector.shape_cast %235 : vector<1x1x512xf32> to vector<1x512xf32>
    %c6_131 = arith.constant 6 : index
    %c0_132 = arith.constant 0 : index
    %237 = vector.load %arg7[%c6_131, %c0_132] : memref<8x512xf32, #tpu.memory_space<vmem>>, vector<1x512xf32>
    tpu.vector_store %arg7[%c6_131, %c0_132], %236 {strides = array<i32>} : memref<8x512xf32, #tpu.memory_space<vmem>>, vector<1x512xf32>,
    %c7_i32_133 = arith.constant 7 : i32
    %238 = arith.addi %188, %c7_i32_133 : i32
    %239 = arith.index_cast %238 : i32 to index
    %240 = memref.load %arg1[%239] : memref<64xi32, #tpu.memory_space<smem>>
    %241 = arith.index_cast %240 : i32 to index
    %c0_134 = arith.constant 0 : index
    %c0_135 = arith.constant 0 : index
    %242 = vector.load %arg2[%241, %c0_134, %c0_135] : memref<50x1x512xf32, #tpu.memory_space<vmem>>, vector<1x1x512xf32>
    %243 = vector.shape_cast %242 : vector<1x1x512xf32> to vector<1x512xf32>
    %c7_136 = arith.constant 7 : index
    %c0_137 = arith.constant 0 : index
    %244 = vector.load %arg7[%c7_136, %c0_137] : memref<8x512xf32, #tpu.memory_space<vmem>>, vector<1x512xf32>
    tpu.vector_store %arg7[%c7_136, %c0_137], %243 {strides = array<i32>} : memref<8x512xf32, #tpu.memory_space<vmem>>, vector<1x512xf32>,
    %c0_138 = arith.constant 0 : index
    %c0_139 = arith.constant 0 : index
    %245 = vector.load %arg7[%c0_138, %c0_139] : memref<8x512xf32, #tpu.memory_space<vmem>>, vector<8x512xf32>
    %246 = arith.truncf %187 : vector<8x128xf32> to vector<8x128xbf16>
    %c0_140 = arith.constant 0 : index
    %c0_141 = arith.constant 0 : index
    %247 = vector.load %arg3[%c0_140, %c0_141] : memref<128x512xbf16, #tpu.memory_space<vmem>>, vector<128x512xbf16>
    %cst_142 = arith.constant dense<0.000000e+00> : vector<8x512xf32>
    %248 = tpu.matmul %246, %247, %cst_142 {dimension_numbers = #tpu.dot_dimension_numbers<[1], [0], [0], [1], [0, 0, 1, 1], [], []>} : vector<8x128xbf16>, vector<128x512xbf16>, vector<8x512xf32> -> vector<8x512xf32>
    %249 = arith.addf %245, %248 : vector<8x512xf32>
    %250 = vector.extract_strided_slice %249 {offsets = [0, 0], sizes = [8, 128], strides = [1, 1]} : vector<8x512xf32> to vector<8x128xf32>
    %cst_143 = arith.constant 5.000000e-01 : f32
    %251 = vector.broadcast %cst_143 : f32 to vector<8x128xf32>
    %252 = arith.mulf %251, %250 : vector<8x128xf32>
    %253 = math.tanh %252 : vector<8x128xf32>
    %cst_144 = arith.constant 5.000000e-01 : f32
    %254 = vector.broadcast %cst_144 : f32 to vector<8x128xf32>
    %255 = arith.mulf %254, %253 : vector<8x128xf32>
    %cst_145 = arith.constant 5.000000e-01 : f32
    %256 = vector.broadcast %cst_145 : f32 to vector<8x128xf32>
    %257 = arith.addf %255, %256 : vector<8x128xf32>
    %258 = vector.extract_strided_slice %249 {offsets = [0, 128], sizes = [8, 128], strides = [1, 1]} : vector<8x512xf32> to vector<8x128xf32>
    %cst_146 = arith.constant 5.000000e-01 : f32
    %259 = vector.broadcast %cst_146 : f32 to vector<8x128xf32>
    %260 = arith.mulf %259, %258 : vector<8x128xf32>
    %261 = math.tanh %260 : vector<8x128xf32>
    %cst_147 = arith.constant 5.000000e-01 : f32
    %262 = vector.broadcast %cst_147 : f32 to vector<8x128xf32>
    %263 = arith.mulf %262, %261 : vector<8x128xf32>
    %cst_148 = arith.constant 5.000000e-01 : f32
    %264 = vector.broadcast %cst_148 : f32 to vector<8x128xf32>
    %265 = arith.addf %263, %264 : vector<8x128xf32>
    %266 = vector.extract_strided_slice %249 {offsets = [0, 256], sizes = [8, 128], strides = [1, 1]} : vector<8x512xf32> to vector<8x128xf32>
    %267 = math.tanh %266 : vector<8x128xf32>
    %268 = vector.extract_strided_slice %249 {offsets = [0, 384], sizes = [8, 128], strides = [1, 1]} : vector<8x512xf32> to vector<8x128xf32>
    %cst_149 = arith.constant 5.000000e-01 : f32
    %269 = vector.broadcast %cst_149 : f32 to vector<8x128xf32>
    %270 = arith.mulf %269, %268 : vector<8x128xf32>
    %271 = math.tanh %270 : vector<8x128xf32>
    %cst_150 = arith.constant 5.000000e-01 : f32
    %272 = vector.broadcast %cst_150 : f32 to vector<8x128xf32>
    %273 = arith.mulf %272, %271 : vector<8x128xf32>
    %cst_151 = arith.constant 5.000000e-01 : f32
    %274 = vector.broadcast %cst_151 : f32 to vector<8x128xf32>
    %275 = arith.addf %273, %274 : vector<8x128xf32>
    %276 = arith.mulf %265, %185 : vector<8x128xf32>
    %277 = arith.mulf %257, %267 : vector<8x128xf32>
    %278 = arith.addf %276, %277 : vector<8x128xf32>
    %279 = math.tanh %278 : vector<8x128xf32>
    %280 = arith.mulf %275, %279 : vector<8x128xf32>
    %c3_i32_152 = arith.constant 3 : i32
    %c8_i32_153 = arith.constant 8 : i32
    %281 = arith.muli %c3_i32_152, %c8_i32_153 : i32
    %c0_i32_154 = arith.constant 0 : i32
    %282 = arith.addi %281, %c0_i32_154 : i32
    %283 = arith.index_cast %282 : i32 to index
    %284 = memref.load %arg1[%283] : memref<64xi32, #tpu.memory_space<smem>>
    %285 = arith.index_cast %284 : i32 to index
    %c0_155 = arith.constant 0 : index
    %c0_156 = arith.constant 0 : index
    %286 = vector.load %arg2[%285, %c0_155, %c0_156] : memref<50x1x512xf32, #tpu.memory_space<vmem>>, vector<1x1x512xf32>
    %287 = vector.shape_cast %286 : vector<1x1x512xf32> to vector<1x512xf32>
    %c0_157 = arith.constant 0 : index
    %c0_158 = arith.constant 0 : index
    %288 = vector.load %arg7[%c0_157, %c0_158] : memref<8x512xf32, #tpu.memory_space<vmem>>, vector<1x512xf32>
    tpu.vector_store %arg7[%c0_157, %c0_158], %287 {strides = array<i32>} : memref<8x512xf32, #tpu.memory_space<vmem>>, vector<1x512xf32>,
    %c1_i32_159 = arith.constant 1 : i32
    %289 = arith.addi %281, %c1_i32_159 : i32
    %290 = arith.index_cast %289 : i32 to index
    %291 = memref.load %arg1[%290] : memref<64xi32, #tpu.memory_space<smem>>
    %292 = arith.index_cast %291 : i32 to index
    %c0_160 = arith.constant 0 : index
    %c0_161 = arith.constant 0 : index
    %293 = vector.load %arg2[%292, %c0_160, %c0_161] : memref<50x1x512xf32, #tpu.memory_space<vmem>>, vector<1x1x512xf32>
    %294 = vector.shape_cast %293 : vector<1x1x512xf32> to vector<1x512xf32>
    %c1_162 = arith.constant 1 : index
    %c0_163 = arith.constant 0 : index
    %295 = vector.load %arg7[%c1_162, %c0_163] : memref<8x512xf32, #tpu.memory_space<vmem>>, vector<1x512xf32>
    tpu.vector_store %arg7[%c1_162, %c0_163], %294 {strides = array<i32>} : memref<8x512xf32, #tpu.memory_space<vmem>>, vector<1x512xf32>,
    %c2_i32_164 = arith.constant 2 : i32
    %296 = arith.addi %281, %c2_i32_164 : i32
    %297 = arith.index_cast %296 : i32 to index
    %298 = memref.load %arg1[%297] : memref<64xi32, #tpu.memory_space<smem>>
    %299 = arith.index_cast %298 : i32 to index
    %c0_165 = arith.constant 0 : index
    %c0_166 = arith.constant 0 : index
    %300 = vector.load %arg2[%299, %c0_165, %c0_166] : memref<50x1x512xf32, #tpu.memory_space<vmem>>, vector<1x1x512xf32>
    %301 = vector.shape_cast %300 : vector<1x1x512xf32> to vector<1x512xf32>
    %c2_167 = arith.constant 2 : index
    %c0_168 = arith.constant 0 : index
    %302 = vector.load %arg7[%c2_167, %c0_168] : memref<8x512xf32, #tpu.memory_space<vmem>>, vector<1x512xf32>
    tpu.vector_store %arg7[%c2_167, %c0_168], %301 {strides = array<i32>} : memref<8x512xf32, #tpu.memory_space<vmem>>, vector<1x512xf32>,
    %c3_i32_169 = arith.constant 3 : i32
    %303 = arith.addi %281, %c3_i32_169 : i32
    %304 = arith.index_cast %303 : i32 to index
    %305 = memref.load %arg1[%304] : memref<64xi32, #tpu.memory_space<smem>>
    %306 = arith.index_cast %305 : i32 to index
    %c0_170 = arith.constant 0 : index
    %c0_171 = arith.constant 0 : index
    %307 = vector.load %arg2[%306, %c0_170, %c0_171] : memref<50x1x512xf32, #tpu.memory_space<vmem>>, vector<1x1x512xf32>
    %308 = vector.shape_cast %307 : vector<1x1x512xf32> to vector<1x512xf32>
    %c3_172 = arith.constant 3 : index
    %c0_173 = arith.constant 0 : index
    %309 = vector.load %arg7[%c3_172, %c0_173] : memref<8x512xf32, #tpu.memory_space<vmem>>, vector<1x512xf32>
    tpu.vector_store %arg7[%c3_172, %c0_173], %308 {strides = array<i32>} : memref<8x512xf32, #tpu.memory_space<vmem>>, vector<1x512xf32>,
    %c4_i32_174 = arith.constant 4 : i32
    %310 = arith.addi %281, %c4_i32_174 : i32
    %311 = arith.index_cast %310 : i32 to index
    %312 = memref.load %arg1[%311] : memref<64xi32, #tpu.memory_space<smem>>
    %313 = arith.index_cast %312 : i32 to index
    %c0_175 = arith.constant 0 : index
    %c0_176 = arith.constant 0 : index
    %314 = vector.load %arg2[%313, %c0_175, %c0_176] : memref<50x1x512xf32, #tpu.memory_space<vmem>>, vector<1x1x512xf32>
    %315 = vector.shape_cast %314 : vector<1x1x512xf32> to vector<1x512xf32>
    %c4_177 = arith.constant 4 : index
    %c0_178 = arith.constant 0 : index
    %316 = vector.load %arg7[%c4_177, %c0_178] : memref<8x512xf32, #tpu.memory_space<vmem>>, vector<1x512xf32>
    tpu.vector_store %arg7[%c4_177, %c0_178], %315 {strides = array<i32>} : memref<8x512xf32, #tpu.memory_space<vmem>>, vector<1x512xf32>,
    %c5_i32_179 = arith.constant 5 : i32
    %317 = arith.addi %281, %c5_i32_179 : i32
    %318 = arith.index_cast %317 : i32 to index
    %319 = memref.load %arg1[%318] : memref<64xi32, #tpu.memory_space<smem>>
    %320 = arith.index_cast %319 : i32 to index
    %c0_180 = arith.constant 0 : index
    %c0_181 = arith.constant 0 : index
    %321 = vector.load %arg2[%320, %c0_180, %c0_181] : memref<50x1x512xf32, #tpu.memory_space<vmem>>, vector<1x1x512xf32>
    %322 = vector.shape_cast %321 : vector<1x1x512xf32> to vector<1x512xf32>
    %c5_182 = arith.constant 5 : index
    %c0_183 = arith.constant 0 : index
    %323 = vector.load %arg7[%c5_182, %c0_183] : memref<8x512xf32, #tpu.memory_space<vmem>>, vector<1x512xf32>
    tpu.vector_store %arg7[%c5_182, %c0_183], %322 {strides = array<i32>} : memref<8x512xf32, #tpu.memory_space<vmem>>, vector<1x512xf32>,
    %c6_i32_184 = arith.constant 6 : i32
    %324 = arith.addi %281, %c6_i32_184 : i32
    %325 = arith.index_cast %324 : i32 to index
    %326 = memref.load %arg1[%325] : memref<64xi32, #tpu.memory_space<smem>>
    %327 = arith.index_cast %326 : i32 to index
    %c0_185 = arith.constant 0 : index
    %c0_186 = arith.constant 0 : index
    %328 = vector.load %arg2[%327, %c0_185, %c0_186] : memref<50x1x512xf32, #tpu.memory_space<vmem>>, vector<1x1x512xf32>
    %329 = vector.shape_cast %328 : vector<1x1x512xf32> to vector<1x512xf32>
    %c6_187 = arith.constant 6 : index
    %c0_188 = arith.constant 0 : index
    %330 = vector.load %arg7[%c6_187, %c0_188] : memref<8x512xf32, #tpu.memory_space<vmem>>, vector<1x512xf32>
    tpu.vector_store %arg7[%c6_187, %c0_188], %329 {strides = array<i32>} : memref<8x512xf32, #tpu.memory_space<vmem>>, vector<1x512xf32>,
    %c7_i32_189 = arith.constant 7 : i32
    %331 = arith.addi %281, %c7_i32_189 : i32
    %332 = arith.index_cast %331 : i32 to index
    %333 = memref.load %arg1[%332] : memref<64xi32, #tpu.memory_space<smem>>
    %334 = arith.index_cast %333 : i32 to index
    %c0_190 = arith.constant 0 : index
    %c0_191 = arith.constant 0 : index
    %335 = vector.load %arg2[%334, %c0_190, %c0_191] : memref<50x1x512xf32, #tpu.memory_space<vmem>>, vector<1x1x512xf32>
    %336 = vector.shape_cast %335 : vector<1x1x512xf32> to vector<1x512xf32>
    %c7_192 = arith.constant 7 : index
    %c0_193 = arith.constant 0 : index
    %337 = vector.load %arg7[%c7_192, %c0_193] : memref<8x512xf32, #tpu.memory_space<vmem>>, vector<1x512xf32>
    tpu.vector_store %arg7[%c7_192, %c0_193], %336 {strides = array<i32>} : memref<8x512xf32, #tpu.memory_space<vmem>>, vector<1x512xf32>,
    %c0_194 = arith.constant 0 : index
    %c0_195 = arith.constant 0 : index
    %338 = vector.load %arg7[%c0_194, %c0_195] : memref<8x512xf32, #tpu.memory_space<vmem>>, vector<8x512xf32>
    %339 = arith.truncf %280 : vector<8x128xf32> to vector<8x128xbf16>
    %c0_196 = arith.constant 0 : index
    %c0_197 = arith.constant 0 : index
    %340 = vector.load %arg3[%c0_196, %c0_197] : memref<128x512xbf16, #tpu.memory_space<vmem>>, vector<128x512xbf16>
    %cst_198 = arith.constant dense<0.000000e+00> : vector<8x512xf32>
    %341 = tpu.matmul %339, %340, %cst_198 {dimension_numbers = #tpu.dot_dimension_numbers<[1], [0], [0], [1], [0, 0, 1, 1], [], []>} : vector<8x128xbf16>, vector<128x512xbf16>, vector<8x512xf32> -> vector<8x512xf32>
    %342 = arith.addf %338, %341 : vector<8x512xf32>
    %343 = vector.extract_strided_slice %342 {offsets = [0, 0], sizes = [8, 128], strides = [1, 1]} : vector<8x512xf32> to vector<8x128xf32>
    %cst_199 = arith.constant 5.000000e-01 : f32
    %344 = vector.broadcast %cst_199 : f32 to vector<8x128xf32>
    %345 = arith.mulf %344, %343 : vector<8x128xf32>
    %346 = math.tanh %345 : vector<8x128xf32>
    %cst_200 = arith.constant 5.000000e-01 : f32
    %347 = vector.broadcast %cst_200 : f32 to vector<8x128xf32>
    %348 = arith.mulf %347, %346 : vector<8x128xf32>
    %cst_201 = arith.constant 5.000000e-01 : f32
    %349 = vector.broadcast %cst_201 : f32 to vector<8x128xf32>
    %350 = arith.addf %348, %349 : vector<8x128xf32>
    %351 = vector.extract_strided_slice %342 {offsets = [0, 128], sizes = [8, 128], strides = [1, 1]} : vector<8x512xf32> to vector<8x128xf32>
    %cst_202 = arith.constant 5.000000e-01 : f32
    %352 = vector.broadcast %cst_202 : f32 to vector<8x128xf32>
    %353 = arith.mulf %352, %351 : vector<8x128xf32>
    %354 = math.tanh %353 : vector<8x128xf32>
    %cst_203 = arith.constant 5.000000e-01 : f32
    %355 = vector.broadcast %cst_203 : f32 to vector<8x128xf32>
    %356 = arith.mulf %355, %354 : vector<8x128xf32>
    %cst_204 = arith.constant 5.000000e-01 : f32
    %357 = vector.broadcast %cst_204 : f32 to vector<8x128xf32>
    %358 = arith.addf %356, %357 : vector<8x128xf32>
    %359 = vector.extract_strided_slice %342 {offsets = [0, 256], sizes = [8, 128], strides = [1, 1]} : vector<8x512xf32> to vector<8x128xf32>
    %360 = math.tanh %359 : vector<8x128xf32>
    %361 = vector.extract_strided_slice %342 {offsets = [0, 384], sizes = [8, 128], strides = [1, 1]} : vector<8x512xf32> to vector<8x128xf32>
    %cst_205 = arith.constant 5.000000e-01 : f32
    %362 = vector.broadcast %cst_205 : f32 to vector<8x128xf32>
    %363 = arith.mulf %362, %361 : vector<8x128xf32>
    %364 = math.tanh %363 : vector<8x128xf32>
    %cst_206 = arith.constant 5.000000e-01 : f32
    %365 = vector.broadcast %cst_206 : f32 to vector<8x128xf32>
    %366 = arith.mulf %365, %364 : vector<8x128xf32>
    %cst_207 = arith.constant 5.000000e-01 : f32
    %367 = vector.broadcast %cst_207 : f32 to vector<8x128xf32>
    %368 = arith.addf %366, %367 : vector<8x128xf32>
    %369 = arith.mulf %358, %278 : vector<8x128xf32>
    %370 = arith.mulf %350, %360 : vector<8x128xf32>
    %371 = arith.addf %369, %370 : vector<8x128xf32>
    %372 = math.tanh %371 : vector<8x128xf32>
    %373 = arith.mulf %368, %372 : vector<8x128xf32>
    %c4_i32_208 = arith.constant 4 : i32
    %c8_i32_209 = arith.constant 8 : i32
    %374 = arith.muli %c4_i32_208, %c8_i32_209 : i32
    %c0_i32_210 = arith.constant 0 : i32
    %375 = arith.addi %374, %c0_i32_210 : i32
    %376 = arith.index_cast %375 : i32 to index
    %377 = memref.load %arg1[%376] : memref<64xi32, #tpu.memory_space<smem>>
    %378 = arith.index_cast %377 : i32 to index
    %c0_211 = arith.constant 0 : index
    %c0_212 = arith.constant 0 : index
    %379 = vector.load %arg2[%378, %c0_211, %c0_212] : memref<50x1x512xf32, #tpu.memory_space<vmem>>, vector<1x1x512xf32>
    %380 = vector.shape_cast %379 : vector<1x1x512xf32> to vector<1x512xf32>
    %c0_213 = arith.constant 0 : index
    %c0_214 = arith.constant 0 : index
    %381 = vector.load %arg7[%c0_213, %c0_214] : memref<8x512xf32, #tpu.memory_space<vmem>>, vector<1x512xf32>
    tpu.vector_store %arg7[%c0_213, %c0_214], %380 {strides = array<i32>} : memref<8x512xf32, #tpu.memory_space<vmem>>, vector<1x512xf32>,
    %c1_i32_215 = arith.constant 1 : i32
    %382 = arith.addi %374, %c1_i32_215 : i32
    %383 = arith.index_cast %382 : i32 to index
    %384 = memref.load %arg1[%383] : memref<64xi32, #tpu.memory_space<smem>>
    %385 = arith.index_cast %384 : i32 to index
    %c0_216 = arith.constant 0 : index
    %c0_217 = arith.constant 0 : index
    %386 = vector.load %arg2[%385, %c0_216, %c0_217] : memref<50x1x512xf32, #tpu.memory_space<vmem>>, vector<1x1x512xf32>
    %387 = vector.shape_cast %386 : vector<1x1x512xf32> to vector<1x512xf32>
    %c1_218 = arith.constant 1 : index
    %c0_219 = arith.constant 0 : index
    %388 = vector.load %arg7[%c1_218, %c0_219] : memref<8x512xf32, #tpu.memory_space<vmem>>, vector<1x512xf32>
    tpu.vector_store %arg7[%c1_218, %c0_219], %387 {strides = array<i32>} : memref<8x512xf32, #tpu.memory_space<vmem>>, vector<1x512xf32>,
    %c2_i32_220 = arith.constant 2 : i32
    %389 = arith.addi %374, %c2_i32_220 : i32
    %390 = arith.index_cast %389 : i32 to index
    %391 = memref.load %arg1[%390] : memref<64xi32, #tpu.memory_space<smem>>
    %392 = arith.index_cast %391 : i32 to index
    %c0_221 = arith.constant 0 : index
    %c0_222 = arith.constant 0 : index
    %393 = vector.load %arg2[%392, %c0_221, %c0_222] : memref<50x1x512xf32, #tpu.memory_space<vmem>>, vector<1x1x512xf32>
    %394 = vector.shape_cast %393 : vector<1x1x512xf32> to vector<1x512xf32>
    %c2_223 = arith.constant 2 : index
    %c0_224 = arith.constant 0 : index
    %395 = vector.load %arg7[%c2_223, %c0_224] : memref<8x512xf32, #tpu.memory_space<vmem>>, vector<1x512xf32>
    tpu.vector_store %arg7[%c2_223, %c0_224], %394 {strides = array<i32>} : memref<8x512xf32, #tpu.memory_space<vmem>>, vector<1x512xf32>,
    %c3_i32_225 = arith.constant 3 : i32
    %396 = arith.addi %374, %c3_i32_225 : i32
    %397 = arith.index_cast %396 : i32 to index
    %398 = memref.load %arg1[%397] : memref<64xi32, #tpu.memory_space<smem>>
    %399 = arith.index_cast %398 : i32 to index
    %c0_226 = arith.constant 0 : index
    %c0_227 = arith.constant 0 : index
    %400 = vector.load %arg2[%399, %c0_226, %c0_227] : memref<50x1x512xf32, #tpu.memory_space<vmem>>, vector<1x1x512xf32>
    %401 = vector.shape_cast %400 : vector<1x1x512xf32> to vector<1x512xf32>
    %c3_228 = arith.constant 3 : index
    %c0_229 = arith.constant 0 : index
    %402 = vector.load %arg7[%c3_228, %c0_229] : memref<8x512xf32, #tpu.memory_space<vmem>>, vector<1x512xf32>
    tpu.vector_store %arg7[%c3_228, %c0_229], %401 {strides = array<i32>} : memref<8x512xf32, #tpu.memory_space<vmem>>, vector<1x512xf32>,
    %c4_i32_230 = arith.constant 4 : i32
    %403 = arith.addi %374, %c4_i32_230 : i32
    %404 = arith.index_cast %403 : i32 to index
    %405 = memref.load %arg1[%404] : memref<64xi32, #tpu.memory_space<smem>>
    %406 = arith.index_cast %405 : i32 to index
    %c0_231 = arith.constant 0 : index
    %c0_232 = arith.constant 0 : index
    %407 = vector.load %arg2[%406, %c0_231, %c0_232] : memref<50x1x512xf32, #tpu.memory_space<vmem>>, vector<1x1x512xf32>
    %408 = vector.shape_cast %407 : vector<1x1x512xf32> to vector<1x512xf32>
    %c4_233 = arith.constant 4 : index
    %c0_234 = arith.constant 0 : index
    %409 = vector.load %arg7[%c4_233, %c0_234] : memref<8x512xf32, #tpu.memory_space<vmem>>, vector<1x512xf32>
    tpu.vector_store %arg7[%c4_233, %c0_234], %408 {strides = array<i32>} : memref<8x512xf32, #tpu.memory_space<vmem>>, vector<1x512xf32>,
    %c5_i32_235 = arith.constant 5 : i32
    %410 = arith.addi %374, %c5_i32_235 : i32
    %411 = arith.index_cast %410 : i32 to index
    %412 = memref.load %arg1[%411] : memref<64xi32, #tpu.memory_space<smem>>
    %413 = arith.index_cast %412 : i32 to index
    %c0_236 = arith.constant 0 : index
    %c0_237 = arith.constant 0 : index
    %414 = vector.load %arg2[%413, %c0_236, %c0_237] : memref<50x1x512xf32, #tpu.memory_space<vmem>>, vector<1x1x512xf32>
    %415 = vector.shape_cast %414 : vector<1x1x512xf32> to vector<1x512xf32>
    %c5_238 = arith.constant 5 : index
    %c0_239 = arith.constant 0 : index
    %416 = vector.load %arg7[%c5_238, %c0_239] : memref<8x512xf32, #tpu.memory_space<vmem>>, vector<1x512xf32>
    tpu.vector_store %arg7[%c5_238, %c0_239], %415 {strides = array<i32>} : memref<8x512xf32, #tpu.memory_space<vmem>>, vector<1x512xf32>,
    %c6_i32_240 = arith.constant 6 : i32
    %417 = arith.addi %374, %c6_i32_240 : i32
    %418 = arith.index_cast %417 : i32 to index
    %419 = memref.load %arg1[%418] : memref<64xi32, #tpu.memory_space<smem>>
    %420 = arith.index_cast %419 : i32 to index
    %c0_241 = arith.constant 0 : index
    %c0_242 = arith.constant 0 : index
    %421 = vector.load %arg2[%420, %c0_241, %c0_242] : memref<50x1x512xf32, #tpu.memory_space<vmem>>, vector<1x1x512xf32>
    %422 = vector.shape_cast %421 : vector<1x1x512xf32> to vector<1x512xf32>
    %c6_243 = arith.constant 6 : index
    %c0_244 = arith.constant 0 : index
    %423 = vector.load %arg7[%c6_243, %c0_244] : memref<8x512xf32, #tpu.memory_space<vmem>>, vector<1x512xf32>
    tpu.vector_store %arg7[%c6_243, %c0_244], %422 {strides = array<i32>} : memref<8x512xf32, #tpu.memory_space<vmem>>, vector<1x512xf32>,
    %c7_i32_245 = arith.constant 7 : i32
    %424 = arith.addi %374, %c7_i32_245 : i32
    %425 = arith.index_cast %424 : i32 to index
    %426 = memref.load %arg1[%425] : memref<64xi32, #tpu.memory_space<smem>>
    %427 = arith.index_cast %426 : i32 to index
    %c0_246 = arith.constant 0 : index
    %c0_247 = arith.constant 0 : index
    %428 = vector.load %arg2[%427, %c0_246, %c0_247] : memref<50x1x512xf32, #tpu.memory_space<vmem>>, vector<1x1x512xf32>
    %429 = vector.shape_cast %428 : vector<1x1x512xf32> to vector<1x512xf32>
    %c7_248 = arith.constant 7 : index
    %c0_249 = arith.constant 0 : index
    %430 = vector.load %arg7[%c7_248, %c0_249] : memref<8x512xf32, #tpu.memory_space<vmem>>, vector<1x512xf32>
    tpu.vector_store %arg7[%c7_248, %c0_249], %429 {strides = array<i32>} : memref<8x512xf32, #tpu.memory_space<vmem>>, vector<1x512xf32>,
    %c0_250 = arith.constant 0 : index
    %c0_251 = arith.constant 0 : index
    %431 = vector.load %arg7[%c0_250, %c0_251] : memref<8x512xf32, #tpu.memory_space<vmem>>, vector<8x512xf32>
    %432 = arith.truncf %373 : vector<8x128xf32> to vector<8x128xbf16>
    %c0_252 = arith.constant 0 : index
    %c0_253 = arith.constant 0 : index
    %433 = vector.load %arg3[%c0_252, %c0_253] : memref<128x512xbf16, #tpu.memory_space<vmem>>, vector<128x512xbf16>
    %cst_254 = arith.constant dense<0.000000e+00> : vector<8x512xf32>
    %434 = tpu.matmul %432, %433, %cst_254 {dimension_numbers = #tpu.dot_dimension_numbers<[1], [0], [0], [1], [0, 0, 1, 1], [], []>} : vector<8x128xbf16>, vector<128x512xbf16>, vector<8x512xf32> -> vector<8x512xf32>
    %435 = arith.addf %431, %434 : vector<8x512xf32>
    %436 = vector.extract_strided_slice %435 {offsets = [0, 0], sizes = [8, 128], strides = [1, 1]} : vector<8x512xf32> to vector<8x128xf32>
    %cst_255 = arith.constant 5.000000e-01 : f32
    %437 = vector.broadcast %cst_255 : f32 to vector<8x128xf32>
    %438 = arith.mulf %437, %436 : vector<8x128xf32>
    %439 = math.tanh %438 : vector<8x128xf32>
    %cst_256 = arith.constant 5.000000e-01 : f32
    %440 = vector.broadcast %cst_256 : f32 to vector<8x128xf32>
    %441 = arith.mulf %440, %439 : vector<8x128xf32>
    %cst_257 = arith.constant 5.000000e-01 : f32
    %442 = vector.broadcast %cst_257 : f32 to vector<8x128xf32>
    %443 = arith.addf %441, %442 : vector<8x128xf32>
    %444 = vector.extract_strided_slice %435 {offsets = [0, 128], sizes = [8, 128], strides = [1, 1]} : vector<8x512xf32> to vector<8x128xf32>
    %cst_258 = arith.constant 5.000000e-01 : f32
    %445 = vector.broadcast %cst_258 : f32 to vector<8x128xf32>
    %446 = arith.mulf %445, %444 : vector<8x128xf32>
    %447 = math.tanh %446 : vector<8x128xf32>
    %cst_259 = arith.constant 5.000000e-01 : f32
    %448 = vector.broadcast %cst_259 : f32 to vector<8x128xf32>
    %449 = arith.mulf %448, %447 : vector<8x128xf32>
    %cst_260 = arith.constant 5.000000e-01 : f32
    %450 = vector.broadcast %cst_260 : f32 to vector<8x128xf32>
    %451 = arith.addf %449, %450 : vector<8x128xf32>
    %452 = vector.extract_strided_slice %435 {offsets = [0, 256], sizes = [8, 128], strides = [1, 1]} : vector<8x512xf32> to vector<8x128xf32>
    %453 = math.tanh %452 : vector<8x128xf32>
    %454 = vector.extract_strided_slice %435 {offsets = [0, 384], sizes = [8, 128], strides = [1, 1]} : vector<8x512xf32> to vector<8x128xf32>
    %cst_261 = arith.constant 5.000000e-01 : f32
    %455 = vector.broadcast %cst_261 : f32 to vector<8x128xf32>
    %456 = arith.mulf %455, %454 : vector<8x128xf32>
    %457 = math.tanh %456 : vector<8x128xf32>
    %cst_262 = arith.constant 5.000000e-01 : f32
    %458 = vector.broadcast %cst_262 : f32 to vector<8x128xf32>
    %459 = arith.mulf %458, %457 : vector<8x128xf32>
    %cst_263 = arith.constant 5.000000e-01 : f32
    %460 = vector.broadcast %cst_263 : f32 to vector<8x128xf32>
    %461 = arith.addf %459, %460 : vector<8x128xf32>
    %462 = arith.mulf %451, %371 : vector<8x128xf32>
    %463 = arith.mulf %443, %453 : vector<8x128xf32>
    %464 = arith.addf %462, %463 : vector<8x128xf32>
    %465 = math.tanh %464 : vector<8x128xf32>
    %466 = arith.mulf %461, %465 : vector<8x128xf32>
    %c5_i32_264 = arith.constant 5 : i32
    %c8_i32_265 = arith.constant 8 : i32
    %467 = arith.muli %c5_i32_264, %c8_i32_265 : i32
    %c0_i32_266 = arith.constant 0 : i32
    %468 = arith.addi %467, %c0_i32_266 : i32
    %469 = arith.index_cast %468 : i32 to index
    %470 = memref.load %arg1[%469] : memref<64xi32, #tpu.memory_space<smem>>
    %471 = arith.index_cast %470 : i32 to index
    %c0_267 = arith.constant 0 : index
    %c0_268 = arith.constant 0 : index
    %472 = vector.load %arg2[%471, %c0_267, %c0_268] : memref<50x1x512xf32, #tpu.memory_space<vmem>>, vector<1x1x512xf32>
    %473 = vector.shape_cast %472 : vector<1x1x512xf32> to vector<1x512xf32>
    %c0_269 = arith.constant 0 : index
    %c0_270 = arith.constant 0 : index
    %474 = vector.load %arg7[%c0_269, %c0_270] : memref<8x512xf32, #tpu.memory_space<vmem>>, vector<1x512xf32>
    tpu.vector_store %arg7[%c0_269, %c0_270], %473 {strides = array<i32>} : memref<8x512xf32, #tpu.memory_space<vmem>>, vector<1x512xf32>,
    %c1_i32_271 = arith.constant 1 : i32
    %475 = arith.addi %467, %c1_i32_271 : i32
    %476 = arith.index_cast %475 : i32 to index
    %477 = memref.load %arg1[%476] : memref<64xi32, #tpu.memory_space<smem>>
    %478 = arith.index_cast %477 : i32 to index
    %c0_272 = arith.constant 0 : index
    %c0_273 = arith.constant 0 : index
    %479 = vector.load %arg2[%478, %c0_272, %c0_273] : memref<50x1x512xf32, #tpu.memory_space<vmem>>, vector<1x1x512xf32>
    %480 = vector.shape_cast %479 : vector<1x1x512xf32> to vector<1x512xf32>
    %c1_274 = arith.constant 1 : index
    %c0_275 = arith.constant 0 : index
    %481 = vector.load %arg7[%c1_274, %c0_275] : memref<8x512xf32, #tpu.memory_space<vmem>>, vector<1x512xf32>
    tpu.vector_store %arg7[%c1_274, %c0_275], %480 {strides = array<i32>} : memref<8x512xf32, #tpu.memory_space<vmem>>, vector<1x512xf32>,
    %c2_i32_276 = arith.constant 2 : i32
    %482 = arith.addi %467, %c2_i32_276 : i32
    %483 = arith.index_cast %482 : i32 to index
    %484 = memref.load %arg1[%483] : memref<64xi32, #tpu.memory_space<smem>>
    %485 = arith.index_cast %484 : i32 to index
    %c0_277 = arith.constant 0 : index
    %c0_278 = arith.constant 0 : index
    %486 = vector.load %arg2[%485, %c0_277, %c0_278] : memref<50x1x512xf32, #tpu.memory_space<vmem>>, vector<1x1x512xf32>
    %487 = vector.shape_cast %486 : vector<1x1x512xf32> to vector<1x512xf32>
    %c2_279 = arith.constant 2 : index
    %c0_280 = arith.constant 0 : index
    %488 = vector.load %arg7[%c2_279, %c0_280] : memref<8x512xf32, #tpu.memory_space<vmem>>, vector<1x512xf32>
    tpu.vector_store %arg7[%c2_279, %c0_280], %487 {strides = array<i32>} : memref<8x512xf32, #tpu.memory_space<vmem>>, vector<1x512xf32>,
    %c3_i32_281 = arith.constant 3 : i32
    %489 = arith.addi %467, %c3_i32_281 : i32
    %490 = arith.index_cast %489 : i32 to index
    %491 = memref.load %arg1[%490] : memref<64xi32, #tpu.memory_space<smem>>
    %492 = arith.index_cast %491 : i32 to index
    %c0_282 = arith.constant 0 : index
    %c0_283 = arith.constant 0 : index
    %493 = vector.load %arg2[%492, %c0_282, %c0_283] : memref<50x1x512xf32, #tpu.memory_space<vmem>>, vector<1x1x512xf32>
    %494 = vector.shape_cast %493 : vector<1x1x512xf32> to vector<1x512xf32>
    %c3_284 = arith.constant 3 : index
    %c0_285 = arith.constant 0 : index
    %495 = vector.load %arg7[%c3_284, %c0_285] : memref<8x512xf32, #tpu.memory_space<vmem>>, vector<1x512xf32>
    tpu.vector_store %arg7[%c3_284, %c0_285], %494 {strides = array<i32>} : memref<8x512xf32, #tpu.memory_space<vmem>>, vector<1x512xf32>,
    %c4_i32_286 = arith.constant 4 : i32
    %496 = arith.addi %467, %c4_i32_286 : i32
    %497 = arith.index_cast %496 : i32 to index
    %498 = memref.load %arg1[%497] : memref<64xi32, #tpu.memory_space<smem>>
    %499 = arith.index_cast %498 : i32 to index
    %c0_287 = arith.constant 0 : index
    %c0_288 = arith.constant 0 : index
    %500 = vector.load %arg2[%499, %c0_287, %c0_288] : memref<50x1x512xf32, #tpu.memory_space<vmem>>, vector<1x1x512xf32>
    %501 = vector.shape_cast %500 : vector<1x1x512xf32> to vector<1x512xf32>
    %c4_289 = arith.constant 4 : index
    %c0_290 = arith.constant 0 : index
    %502 = vector.load %arg7[%c4_289, %c0_290] : memref<8x512xf32, #tpu.memory_space<vmem>>, vector<1x512xf32>
    tpu.vector_store %arg7[%c4_289, %c0_290], %501 {strides = array<i32>} : memref<8x512xf32, #tpu.memory_space<vmem>>, vector<1x512xf32>,
    %c5_i32_291 = arith.constant 5 : i32
    %503 = arith.addi %467, %c5_i32_291 : i32
    %504 = arith.index_cast %503 : i32 to index
    %505 = memref.load %arg1[%504] : memref<64xi32, #tpu.memory_space<smem>>
    %506 = arith.index_cast %505 : i32 to index
    %c0_292 = arith.constant 0 : index
    %c0_293 = arith.constant 0 : index
    %507 = vector.load %arg2[%506, %c0_292, %c0_293] : memref<50x1x512xf32, #tpu.memory_space<vmem>>, vector<1x1x512xf32>
    %508 = vector.shape_cast %507 : vector<1x1x512xf32> to vector<1x512xf32>
    %c5_294 = arith.constant 5 : index
    %c0_295 = arith.constant 0 : index
    %509 = vector.load %arg7[%c5_294, %c0_295] : memref<8x512xf32, #tpu.memory_space<vmem>>, vector<1x512xf32>
    tpu.vector_store %arg7[%c5_294, %c0_295], %508 {strides = array<i32>} : memref<8x512xf32, #tpu.memory_space<vmem>>, vector<1x512xf32>,
    %c6_i32_296 = arith.constant 6 : i32
    %510 = arith.addi %467, %c6_i32_296 : i32
    %511 = arith.index_cast %510 : i32 to index
    %512 = memref.load %arg1[%511] : memref<64xi32, #tpu.memory_space<smem>>
    %513 = arith.index_cast %512 : i32 to index
    %c0_297 = arith.constant 0 : index
    %c0_298 = arith.constant 0 : index
    %514 = vector.load %arg2[%513, %c0_297, %c0_298] : memref<50x1x512xf32, #tpu.memory_space<vmem>>, vector<1x1x512xf32>
    %515 = vector.shape_cast %514 : vector<1x1x512xf32> to vector<1x512xf32>
    %c6_299 = arith.constant 6 : index
    %c0_300 = arith.constant 0 : index
    %516 = vector.load %arg7[%c6_299, %c0_300] : memref<8x512xf32, #tpu.memory_space<vmem>>, vector<1x512xf32>
    tpu.vector_store %arg7[%c6_299, %c0_300], %515 {strides = array<i32>} : memref<8x512xf32, #tpu.memory_space<vmem>>, vector<1x512xf32>,
    %c7_i32_301 = arith.constant 7 : i32
    %517 = arith.addi %467, %c7_i32_301 : i32
    %518 = arith.index_cast %517 : i32 to index
    %519 = memref.load %arg1[%518] : memref<64xi32, #tpu.memory_space<smem>>
    %520 = arith.index_cast %519 : i32 to index
    %c0_302 = arith.constant 0 : index
    %c0_303 = arith.constant 0 : index
    %521 = vector.load %arg2[%520, %c0_302, %c0_303] : memref<50x1x512xf32, #tpu.memory_space<vmem>>, vector<1x1x512xf32>
    %522 = vector.shape_cast %521 : vector<1x1x512xf32> to vector<1x512xf32>
    %c7_304 = arith.constant 7 : index
    %c0_305 = arith.constant 0 : index
    %523 = vector.load %arg7[%c7_304, %c0_305] : memref<8x512xf32, #tpu.memory_space<vmem>>, vector<1x512xf32>
    tpu.vector_store %arg7[%c7_304, %c0_305], %522 {strides = array<i32>} : memref<8x512xf32, #tpu.memory_space<vmem>>, vector<1x512xf32>,
    %c0_306 = arith.constant 0 : index
    %c0_307 = arith.constant 0 : index
    %524 = vector.load %arg7[%c0_306, %c0_307] : memref<8x512xf32, #tpu.memory_space<vmem>>, vector<8x512xf32>
    %525 = arith.truncf %466 : vector<8x128xf32> to vector<8x128xbf16>
    %c0_308 = arith.constant 0 : index
    %c0_309 = arith.constant 0 : index
    %526 = vector.load %arg3[%c0_308, %c0_309] : memref<128x512xbf16, #tpu.memory_space<vmem>>, vector<128x512xbf16>
    %cst_310 = arith.constant dense<0.000000e+00> : vector<8x512xf32>
    %527 = tpu.matmul %525, %526, %cst_310 {dimension_numbers = #tpu.dot_dimension_numbers<[1], [0], [0], [1], [0, 0, 1, 1], [], []>} : vector<8x128xbf16>, vector<128x512xbf16>, vector<8x512xf32> -> vector<8x512xf32>
    %528 = arith.addf %524, %527 : vector<8x512xf32>
    %529 = vector.extract_strided_slice %528 {offsets = [0, 0], sizes = [8, 128], strides = [1, 1]} : vector<8x512xf32> to vector<8x128xf32>
    %cst_311 = arith.constant 5.000000e-01 : f32
    %530 = vector.broadcast %cst_311 : f32 to vector<8x128xf32>
    %531 = arith.mulf %530, %529 : vector<8x128xf32>
    %532 = math.tanh %531 : vector<8x128xf32>
    %cst_312 = arith.constant 5.000000e-01 : f32
    %533 = vector.broadcast %cst_312 : f32 to vector<8x128xf32>
    %534 = arith.mulf %533, %532 : vector<8x128xf32>
    %cst_313 = arith.constant 5.000000e-01 : f32
    %535 = vector.broadcast %cst_313 : f32 to vector<8x128xf32>
    %536 = arith.addf %534, %535 : vector<8x128xf32>
    %537 = vector.extract_strided_slice %528 {offsets = [0, 128], sizes = [8, 128], strides = [1, 1]} : vector<8x512xf32> to vector<8x128xf32>
    %cst_314 = arith.constant 5.000000e-01 : f32
    %538 = vector.broadcast %cst_314 : f32 to vector<8x128xf32>
    %539 = arith.mulf %538, %537 : vector<8x128xf32>
    %540 = math.tanh %539 : vector<8x128xf32>
    %cst_315 = arith.constant 5.000000e-01 : f32
    %541 = vector.broadcast %cst_315 : f32 to vector<8x128xf32>
    %542 = arith.mulf %541, %540 : vector<8x128xf32>
    %cst_316 = arith.constant 5.000000e-01 : f32
    %543 = vector.broadcast %cst_316 : f32 to vector<8x128xf32>
    %544 = arith.addf %542, %543 : vector<8x128xf32>
    %545 = vector.extract_strided_slice %528 {offsets = [0, 256], sizes = [8, 128], strides = [1, 1]} : vector<8x512xf32> to vector<8x128xf32>
    %546 = math.tanh %545 : vector<8x128xf32>
    %547 = vector.extract_strided_slice %528 {offsets = [0, 384], sizes = [8, 128], strides = [1, 1]} : vector<8x512xf32> to vector<8x128xf32>
    %cst_317 = arith.constant 5.000000e-01 : f32
    %548 = vector.broadcast %cst_317 : f32 to vector<8x128xf32>
    %549 = arith.mulf %548, %547 : vector<8x128xf32>
    %550 = math.tanh %549 : vector<8x128xf32>
    %cst_318 = arith.constant 5.000000e-01 : f32
    %551 = vector.broadcast %cst_318 : f32 to vector<8x128xf32>
    %552 = arith.mulf %551, %550 : vector<8x128xf32>
    %cst_319 = arith.constant 5.000000e-01 : f32
    %553 = vector.broadcast %cst_319 : f32 to vector<8x128xf32>
    %554 = arith.addf %552, %553 : vector<8x128xf32>
    %555 = arith.mulf %544, %464 : vector<8x128xf32>
    %556 = arith.mulf %536, %546 : vector<8x128xf32>
    %557 = arith.addf %555, %556 : vector<8x128xf32>
    %558 = math.tanh %557 : vector<8x128xf32>
    %559 = arith.mulf %554, %558 : vector<8x128xf32>
    %c6_i32_320 = arith.constant 6 : i32
    %c8_i32_321 = arith.constant 8 : i32
    %560 = arith.muli %c6_i32_320, %c8_i32_321 : i32
    %c0_i32_322 = arith.constant 0 : i32
    %561 = arith.addi %560, %c0_i32_322 : i32
    %562 = arith.index_cast %561 : i32 to index
    %563 = memref.load %arg1[%562] : memref<64xi32, #tpu.memory_space<smem>>
    %564 = arith.index_cast %563 : i32 to index
    %c0_323 = arith.constant 0 : index
    %c0_324 = arith.constant 0 : index
    %565 = vector.load %arg2[%564, %c0_323, %c0_324] : memref<50x1x512xf32, #tpu.memory_space<vmem>>, vector<1x1x512xf32>
    %566 = vector.shape_cast %565 : vector<1x1x512xf32> to vector<1x512xf32>
    %c0_325 = arith.constant 0 : index
    %c0_326 = arith.constant 0 : index
    %567 = vector.load %arg7[%c0_325, %c0_326] : memref<8x512xf32, #tpu.memory_space<vmem>>, vector<1x512xf32>
    tpu.vector_store %arg7[%c0_325, %c0_326], %566 {strides = array<i32>} : memref<8x512xf32, #tpu.memory_space<vmem>>, vector<1x512xf32>,
    %c1_i32_327 = arith.constant 1 : i32
    %568 = arith.addi %560, %c1_i32_327 : i32
    %569 = arith.index_cast %568 : i32 to index
    %570 = memref.load %arg1[%569] : memref<64xi32, #tpu.memory_space<smem>>
    %571 = arith.index_cast %570 : i32 to index
    %c0_328 = arith.constant 0 : index
    %c0_329 = arith.constant 0 : index
    %572 = vector.load %arg2[%571, %c0_328, %c0_329] : memref<50x1x512xf32, #tpu.memory_space<vmem>>, vector<1x1x512xf32>
    %573 = vector.shape_cast %572 : vector<1x1x512xf32> to vector<1x512xf32>
    %c1_330 = arith.constant 1 : index
    %c0_331 = arith.constant 0 : index
    %574 = vector.load %arg7[%c1_330, %c0_331] : memref<8x512xf32, #tpu.memory_space<vmem>>, vector<1x512xf32>
    tpu.vector_store %arg7[%c1_330, %c0_331], %573 {strides = array<i32>} : memref<8x512xf32, #tpu.memory_space<vmem>>, vector<1x512xf32>,
    %c2_i32_332 = arith.constant 2 : i32
    %575 = arith.addi %560, %c2_i32_332 : i32
    %576 = arith.index_cast %575 : i32 to index
    %577 = memref.load %arg1[%576] : memref<64xi32, #tpu.memory_space<smem>>
    %578 = arith.index_cast %577 : i32 to index
    %c0_333 = arith.constant 0 : index
    %c0_334 = arith.constant 0 : index
    %579 = vector.load %arg2[%578, %c0_333, %c0_334] : memref<50x1x512xf32, #tpu.memory_space<vmem>>, vector<1x1x512xf32>
    %580 = vector.shape_cast %579 : vector<1x1x512xf32> to vector<1x512xf32>
    %c2_335 = arith.constant 2 : index
    %c0_336 = arith.constant 0 : index
    %581 = vector.load %arg7[%c2_335, %c0_336] : memref<8x512xf32, #tpu.memory_space<vmem>>, vector<1x512xf32>
    tpu.vector_store %arg7[%c2_335, %c0_336], %580 {strides = array<i32>} : memref<8x512xf32, #tpu.memory_space<vmem>>, vector<1x512xf32>,
    %c3_i32_337 = arith.constant 3 : i32
    %582 = arith.addi %560, %c3_i32_337 : i32
    %583 = arith.index_cast %582 : i32 to index
    %584 = memref.load %arg1[%583] : memref<64xi32, #tpu.memory_space<smem>>
    %585 = arith.index_cast %584 : i32 to index
    %c0_338 = arith.constant 0 : index
    %c0_339 = arith.constant 0 : index
    %586 = vector.load %arg2[%585, %c0_338, %c0_339] : memref<50x1x512xf32, #tpu.memory_space<vmem>>, vector<1x1x512xf32>
    %587 = vector.shape_cast %586 : vector<1x1x512xf32> to vector<1x512xf32>
    %c3_340 = arith.constant 3 : index
    %c0_341 = arith.constant 0 : index
    %588 = vector.load %arg7[%c3_340, %c0_341] : memref<8x512xf32, #tpu.memory_space<vmem>>, vector<1x512xf32>
    tpu.vector_store %arg7[%c3_340, %c0_341], %587 {strides = array<i32>} : memref<8x512xf32, #tpu.memory_space<vmem>>, vector<1x512xf32>,
    %c4_i32_342 = arith.constant 4 : i32
    %589 = arith.addi %560, %c4_i32_342 : i32
    %590 = arith.index_cast %589 : i32 to index
    %591 = memref.load %arg1[%590] : memref<64xi32, #tpu.memory_space<smem>>
    %592 = arith.index_cast %591 : i32 to index
    %c0_343 = arith.constant 0 : index
    %c0_344 = arith.constant 0 : index
    %593 = vector.load %arg2[%592, %c0_343, %c0_344] : memref<50x1x512xf32, #tpu.memory_space<vmem>>, vector<1x1x512xf32>
    %594 = vector.shape_cast %593 : vector<1x1x512xf32> to vector<1x512xf32>
    %c4_345 = arith.constant 4 : index
    %c0_346 = arith.constant 0 : index
    %595 = vector.load %arg7[%c4_345, %c0_346] : memref<8x512xf32, #tpu.memory_space<vmem>>, vector<1x512xf32>
    tpu.vector_store %arg7[%c4_345, %c0_346], %594 {strides = array<i32>} : memref<8x512xf32, #tpu.memory_space<vmem>>, vector<1x512xf32>,
    %c5_i32_347 = arith.constant 5 : i32
    %596 = arith.addi %560, %c5_i32_347 : i32
    %597 = arith.index_cast %596 : i32 to index
    %598 = memref.load %arg1[%597] : memref<64xi32, #tpu.memory_space<smem>>
    %599 = arith.index_cast %598 : i32 to index
    %c0_348 = arith.constant 0 : index
    %c0_349 = arith.constant 0 : index
    %600 = vector.load %arg2[%599, %c0_348, %c0_349] : memref<50x1x512xf32, #tpu.memory_space<vmem>>, vector<1x1x512xf32>
    %601 = vector.shape_cast %600 : vector<1x1x512xf32> to vector<1x512xf32>
    %c5_350 = arith.constant 5 : index
    %c0_351 = arith.constant 0 : index
    %602 = vector.load %arg7[%c5_350, %c0_351] : memref<8x512xf32, #tpu.memory_space<vmem>>, vector<1x512xf32>
    tpu.vector_store %arg7[%c5_350, %c0_351], %601 {strides = array<i32>} : memref<8x512xf32, #tpu.memory_space<vmem>>, vector<1x512xf32>,
    %c6_i32_352 = arith.constant 6 : i32
    %603 = arith.addi %560, %c6_i32_352 : i32
    %604 = arith.index_cast %603 : i32 to index
    %605 = memref.load %arg1[%604] : memref<64xi32, #tpu.memory_space<smem>>
    %606 = arith.index_cast %605 : i32 to index
    %c0_353 = arith.constant 0 : index
    %c0_354 = arith.constant 0 : index
    %607 = vector.load %arg2[%606, %c0_353, %c0_354] : memref<50x1x512xf32, #tpu.memory_space<vmem>>, vector<1x1x512xf32>
    %608 = vector.shape_cast %607 : vector<1x1x512xf32> to vector<1x512xf32>
    %c6_355 = arith.constant 6 : index
    %c0_356 = arith.constant 0 : index
    %609 = vector.load %arg7[%c6_355, %c0_356] : memref<8x512xf32, #tpu.memory_space<vmem>>, vector<1x512xf32>
    tpu.vector_store %arg7[%c6_355, %c0_356], %608 {strides = array<i32>} : memref<8x512xf32, #tpu.memory_space<vmem>>, vector<1x512xf32>,
    %c7_i32_357 = arith.constant 7 : i32
    %610 = arith.addi %560, %c7_i32_357 : i32
    %611 = arith.index_cast %610 : i32 to index
    %612 = memref.load %arg1[%611] : memref<64xi32, #tpu.memory_space<smem>>
    %613 = arith.index_cast %612 : i32 to index
    %c0_358 = arith.constant 0 : index
    %c0_359 = arith.constant 0 : index
    %614 = vector.load %arg2[%613, %c0_358, %c0_359] : memref<50x1x512xf32, #tpu.memory_space<vmem>>, vector<1x1x512xf32>
    %615 = vector.shape_cast %614 : vector<1x1x512xf32> to vector<1x512xf32>
    %c7_360 = arith.constant 7 : index
    %c0_361 = arith.constant 0 : index
    %616 = vector.load %arg7[%c7_360, %c0_361] : memref<8x512xf32, #tpu.memory_space<vmem>>, vector<1x512xf32>
    tpu.vector_store %arg7[%c7_360, %c0_361], %615 {strides = array<i32>} : memref<8x512xf32, #tpu.memory_space<vmem>>, vector<1x512xf32>,
    %c0_362 = arith.constant 0 : index
    %c0_363 = arith.constant 0 : index
    %617 = vector.load %arg7[%c0_362, %c0_363] : memref<8x512xf32, #tpu.memory_space<vmem>>, vector<8x512xf32>
    %618 = arith.truncf %559 : vector<8x128xf32> to vector<8x128xbf16>
    %c0_364 = arith.constant 0 : index
    %c0_365 = arith.constant 0 : index
    %619 = vector.load %arg3[%c0_364, %c0_365] : memref<128x512xbf16, #tpu.memory_space<vmem>>, vector<128x512xbf16>
    %cst_366 = arith.constant dense<0.000000e+00> : vector<8x512xf32>
    %620 = tpu.matmul %618, %619, %cst_366 {dimension_numbers = #tpu.dot_dimension_numbers<[1], [0], [0], [1], [0, 0, 1, 1], [], []>} : vector<8x128xbf16>, vector<128x512xbf16>, vector<8x512xf32> -> vector<8x512xf32>
    %621 = arith.addf %617, %620 : vector<8x512xf32>
    %622 = vector.extract_strided_slice %621 {offsets = [0, 0], sizes = [8, 128], strides = [1, 1]} : vector<8x512xf32> to vector<8x128xf32>
    %cst_367 = arith.constant 5.000000e-01 : f32
    %623 = vector.broadcast %cst_367 : f32 to vector<8x128xf32>
    %624 = arith.mulf %623, %622 : vector<8x128xf32>
    %625 = math.tanh %624 : vector<8x128xf32>
    %cst_368 = arith.constant 5.000000e-01 : f32
    %626 = vector.broadcast %cst_368 : f32 to vector<8x128xf32>
    %627 = arith.mulf %626, %625 : vector<8x128xf32>
    %cst_369 = arith.constant 5.000000e-01 : f32
    %628 = vector.broadcast %cst_369 : f32 to vector<8x128xf32>
    %629 = arith.addf %627, %628 : vector<8x128xf32>
    %630 = vector.extract_strided_slice %621 {offsets = [0, 128], sizes = [8, 128], strides = [1, 1]} : vector<8x512xf32> to vector<8x128xf32>
    %cst_370 = arith.constant 5.000000e-01 : f32
    %631 = vector.broadcast %cst_370 : f32 to vector<8x128xf32>
    %632 = arith.mulf %631, %630 : vector<8x128xf32>
    %633 = math.tanh %632 : vector<8x128xf32>
    %cst_371 = arith.constant 5.000000e-01 : f32
    %634 = vector.broadcast %cst_371 : f32 to vector<8x128xf32>
    %635 = arith.mulf %634, %633 : vector<8x128xf32>
    %cst_372 = arith.constant 5.000000e-01 : f32
    %636 = vector.broadcast %cst_372 : f32 to vector<8x128xf32>
    %637 = arith.addf %635, %636 : vector<8x128xf32>
    %638 = vector.extract_strided_slice %621 {offsets = [0, 256], sizes = [8, 128], strides = [1, 1]} : vector<8x512xf32> to vector<8x128xf32>
    %639 = math.tanh %638 : vector<8x128xf32>
    %640 = vector.extract_strided_slice %621 {offsets = [0, 384], sizes = [8, 128], strides = [1, 1]} : vector<8x512xf32> to vector<8x128xf32>
    %cst_373 = arith.constant 5.000000e-01 : f32
    %641 = vector.broadcast %cst_373 : f32 to vector<8x128xf32>
    %642 = arith.mulf %641, %640 : vector<8x128xf32>
    %643 = math.tanh %642 : vector<8x128xf32>
    %cst_374 = arith.constant 5.000000e-01 : f32
    %644 = vector.broadcast %cst_374 : f32 to vector<8x128xf32>
    %645 = arith.mulf %644, %643 : vector<8x128xf32>
    %cst_375 = arith.constant 5.000000e-01 : f32
    %646 = vector.broadcast %cst_375 : f32 to vector<8x128xf32>
    %647 = arith.addf %645, %646 : vector<8x128xf32>
    %648 = arith.mulf %637, %557 : vector<8x128xf32>
    %649 = arith.mulf %629, %639 : vector<8x128xf32>
    %650 = arith.addf %648, %649 : vector<8x128xf32>
    %651 = math.tanh %650 : vector<8x128xf32>
    %652 = arith.mulf %647, %651 : vector<8x128xf32>
    %c7_i32_376 = arith.constant 7 : i32
    %c8_i32_377 = arith.constant 8 : i32
    %653 = arith.muli %c7_i32_376, %c8_i32_377 : i32
    %c0_i32_378 = arith.constant 0 : i32
    %654 = arith.addi %653, %c0_i32_378 : i32
    %655 = arith.index_cast %654 : i32 to index
    %656 = memref.load %arg1[%655] : memref<64xi32, #tpu.memory_space<smem>>
    %657 = arith.index_cast %656 : i32 to index
    %c0_379 = arith.constant 0 : index
    %c0_380 = arith.constant 0 : index
    %658 = vector.load %arg2[%657, %c0_379, %c0_380] : memref<50x1x512xf32, #tpu.memory_space<vmem>>, vector<1x1x512xf32>
    %659 = vector.shape_cast %658 : vector<1x1x512xf32> to vector<1x512xf32>
    %c0_381 = arith.constant 0 : index
    %c0_382 = arith.constant 0 : index
    %660 = vector.load %arg7[%c0_381, %c0_382] : memref<8x512xf32, #tpu.memory_space<vmem>>, vector<1x512xf32>
    tpu.vector_store %arg7[%c0_381, %c0_382], %659 {strides = array<i32>} : memref<8x512xf32, #tpu.memory_space<vmem>>, vector<1x512xf32>,
    %c1_i32_383 = arith.constant 1 : i32
    %661 = arith.addi %653, %c1_i32_383 : i32
    %662 = arith.index_cast %661 : i32 to index
    %663 = memref.load %arg1[%662] : memref<64xi32, #tpu.memory_space<smem>>
    %664 = arith.index_cast %663 : i32 to index
    %c0_384 = arith.constant 0 : index
    %c0_385 = arith.constant 0 : index
    %665 = vector.load %arg2[%664, %c0_384, %c0_385] : memref<50x1x512xf32, #tpu.memory_space<vmem>>, vector<1x1x512xf32>
    %666 = vector.shape_cast %665 : vector<1x1x512xf32> to vector<1x512xf32>
    %c1_386 = arith.constant 1 : index
    %c0_387 = arith.constant 0 : index
    %667 = vector.load %arg7[%c1_386, %c0_387] : memref<8x512xf32, #tpu.memory_space<vmem>>, vector<1x512xf32>
    tpu.vector_store %arg7[%c1_386, %c0_387], %666 {strides = array<i32>} : memref<8x512xf32, #tpu.memory_space<vmem>>, vector<1x512xf32>,
    %c2_i32_388 = arith.constant 2 : i32
    %668 = arith.addi %653, %c2_i32_388 : i32
    %669 = arith.index_cast %668 : i32 to index
    %670 = memref.load %arg1[%669] : memref<64xi32, #tpu.memory_space<smem>>
    %671 = arith.index_cast %670 : i32 to index
    %c0_389 = arith.constant 0 : index
    %c0_390 = arith.constant 0 : index
    %672 = vector.load %arg2[%671, %c0_389, %c0_390] : memref<50x1x512xf32, #tpu.memory_space<vmem>>, vector<1x1x512xf32>
    %673 = vector.shape_cast %672 : vector<1x1x512xf32> to vector<1x512xf32>
    %c2_391 = arith.constant 2 : index
    %c0_392 = arith.constant 0 : index
    %674 = vector.load %arg7[%c2_391, %c0_392] : memref<8x512xf32, #tpu.memory_space<vmem>>, vector<1x512xf32>
    tpu.vector_store %arg7[%c2_391, %c0_392], %673 {strides = array<i32>} : memref<8x512xf32, #tpu.memory_space<vmem>>, vector<1x512xf32>,
    %c3_i32_393 = arith.constant 3 : i32
    %675 = arith.addi %653, %c3_i32_393 : i32
    %676 = arith.index_cast %675 : i32 to index
    %677 = memref.load %arg1[%676] : memref<64xi32, #tpu.memory_space<smem>>
    %678 = arith.index_cast %677 : i32 to index
    %c0_394 = arith.constant 0 : index
    %c0_395 = arith.constant 0 : index
    %679 = vector.load %arg2[%678, %c0_394, %c0_395] : memref<50x1x512xf32, #tpu.memory_space<vmem>>, vector<1x1x512xf32>
    %680 = vector.shape_cast %679 : vector<1x1x512xf32> to vector<1x512xf32>
    %c3_396 = arith.constant 3 : index
    %c0_397 = arith.constant 0 : index
    %681 = vector.load %arg7[%c3_396, %c0_397] : memref<8x512xf32, #tpu.memory_space<vmem>>, vector<1x512xf32>
    tpu.vector_store %arg7[%c3_396, %c0_397], %680 {strides = array<i32>} : memref<8x512xf32, #tpu.memory_space<vmem>>, vector<1x512xf32>,
    %c4_i32_398 = arith.constant 4 : i32
    %682 = arith.addi %653, %c4_i32_398 : i32
    %683 = arith.index_cast %682 : i32 to index
    %684 = memref.load %arg1[%683] : memref<64xi32, #tpu.memory_space<smem>>
    %685 = arith.index_cast %684 : i32 to index
    %c0_399 = arith.constant 0 : index
    %c0_400 = arith.constant 0 : index
    %686 = vector.load %arg2[%685, %c0_399, %c0_400] : memref<50x1x512xf32, #tpu.memory_space<vmem>>, vector<1x1x512xf32>
    %687 = vector.shape_cast %686 : vector<1x1x512xf32> to vector<1x512xf32>
    %c4_401 = arith.constant 4 : index
    %c0_402 = arith.constant 0 : index
    %688 = vector.load %arg7[%c4_401, %c0_402] : memref<8x512xf32, #tpu.memory_space<vmem>>, vector<1x512xf32>
    tpu.vector_store %arg7[%c4_401, %c0_402], %687 {strides = array<i32>} : memref<8x512xf32, #tpu.memory_space<vmem>>, vector<1x512xf32>,
    %c5_i32_403 = arith.constant 5 : i32
    %689 = arith.addi %653, %c5_i32_403 : i32
    %690 = arith.index_cast %689 : i32 to index
    %691 = memref.load %arg1[%690] : memref<64xi32, #tpu.memory_space<smem>>
    %692 = arith.index_cast %691 : i32 to index
    %c0_404 = arith.constant 0 : index
    %c0_405 = arith.constant 0 : index
    %693 = vector.load %arg2[%692, %c0_404, %c0_405] : memref<50x1x512xf32, #tpu.memory_space<vmem>>, vector<1x1x512xf32>
    %694 = vector.shape_cast %693 : vector<1x1x512xf32> to vector<1x512xf32>
    %c5_406 = arith.constant 5 : index
    %c0_407 = arith.constant 0 : index
    %695 = vector.load %arg7[%c5_406, %c0_407] : memref<8x512xf32, #tpu.memory_space<vmem>>, vector<1x512xf32>
    tpu.vector_store %arg7[%c5_406, %c0_407], %694 {strides = array<i32>} : memref<8x512xf32, #tpu.memory_space<vmem>>, vector<1x512xf32>,
    %c6_i32_408 = arith.constant 6 : i32
    %696 = arith.addi %653, %c6_i32_408 : i32
    %697 = arith.index_cast %696 : i32 to index
    %698 = memref.load %arg1[%697] : memref<64xi32, #tpu.memory_space<smem>>
    %699 = arith.index_cast %698 : i32 to index
    %c0_409 = arith.constant 0 : index
    %c0_410 = arith.constant 0 : index
    %700 = vector.load %arg2[%699, %c0_409, %c0_410] : memref<50x1x512xf32, #tpu.memory_space<vmem>>, vector<1x1x512xf32>
    %701 = vector.shape_cast %700 : vector<1x1x512xf32> to vector<1x512xf32>
    %c6_411 = arith.constant 6 : index
    %c0_412 = arith.constant 0 : index
    %702 = vector.load %arg7[%c6_411, %c0_412] : memref<8x512xf32, #tpu.memory_space<vmem>>, vector<1x512xf32>
    tpu.vector_store %arg7[%c6_411, %c0_412], %701 {strides = array<i32>} : memref<8x512xf32, #tpu.memory_space<vmem>>, vector<1x512xf32>,
    %c7_i32_413 = arith.constant 7 : i32
    %703 = arith.addi %653, %c7_i32_413 : i32
    %704 = arith.index_cast %703 : i32 to index
    %705 = memref.load %arg1[%704] : memref<64xi32, #tpu.memory_space<smem>>
    %706 = arith.index_cast %705 : i32 to index
    %c0_414 = arith.constant 0 : index
    %c0_415 = arith.constant 0 : index
    %707 = vector.load %arg2[%706, %c0_414, %c0_415] : memref<50x1x512xf32, #tpu.memory_space<vmem>>, vector<1x1x512xf32>
    %708 = vector.shape_cast %707 : vector<1x1x512xf32> to vector<1x512xf32>
    %c7_416 = arith.constant 7 : index
    %c0_417 = arith.constant 0 : index
    %709 = vector.load %arg7[%c7_416, %c0_417] : memref<8x512xf32, #tpu.memory_space<vmem>>, vector<1x512xf32>
    tpu.vector_store %arg7[%c7_416, %c0_417], %708 {strides = array<i32>} : memref<8x512xf32, #tpu.memory_space<vmem>>, vector<1x512xf32>,
    %c0_418 = arith.constant 0 : index
    %c0_419 = arith.constant 0 : index
    %710 = vector.load %arg7[%c0_418, %c0_419] : memref<8x512xf32, #tpu.memory_space<vmem>>, vector<8x512xf32>
    %711 = arith.truncf %652 : vector<8x128xf32> to vector<8x128xbf16>
    %c0_420 = arith.constant 0 : index
    %c0_421 = arith.constant 0 : index
    %712 = vector.load %arg3[%c0_420, %c0_421] : memref<128x512xbf16, #tpu.memory_space<vmem>>, vector<128x512xbf16>
    %cst_422 = arith.constant dense<0.000000e+00> : vector<8x512xf32>
    %713 = tpu.matmul %711, %712, %cst_422 {dimension_numbers = #tpu.dot_dimension_numbers<[1], [0], [0], [1], [0, 0, 1, 1], [], []>} : vector<8x128xbf16>, vector<128x512xbf16>, vector<8x512xf32> -> vector<8x512xf32>
    %714 = arith.addf %710, %713 : vector<8x512xf32>
    %715 = vector.extract_strided_slice %714 {offsets = [0, 0], sizes = [8, 128], strides = [1, 1]} : vector<8x512xf32> to vector<8x128xf32>
    %cst_423 = arith.constant 5.000000e-01 : f32
    %716 = vector.broadcast %cst_423 : f32 to vector<8x128xf32>
    %717 = arith.mulf %716, %715 : vector<8x128xf32>
    %718 = math.tanh %717 : vector<8x128xf32>
    %cst_424 = arith.constant 5.000000e-01 : f32
    %719 = vector.broadcast %cst_424 : f32 to vector<8x128xf32>
    %720 = arith.mulf %719, %718 : vector<8x128xf32>
    %cst_425 = arith.constant 5.000000e-01 : f32
    %721 = vector.broadcast %cst_425 : f32 to vector<8x128xf32>
    %722 = arith.addf %720, %721 : vector<8x128xf32>
    %723 = vector.extract_strided_slice %714 {offsets = [0, 128], sizes = [8, 128], strides = [1, 1]} : vector<8x512xf32> to vector<8x128xf32>
    %cst_426 = arith.constant 5.000000e-01 : f32
    %724 = vector.broadcast %cst_426 : f32 to vector<8x128xf32>
    %725 = arith.mulf %724, %723 : vector<8x128xf32>
    %726 = math.tanh %725 : vector<8x128xf32>
    %cst_427 = arith.constant 5.000000e-01 : f32
    %727 = vector.broadcast %cst_427 : f32 to vector<8x128xf32>
    %728 = arith.mulf %727, %726 : vector<8x128xf32>
    %cst_428 = arith.constant 5.000000e-01 : f32
    %729 = vector.broadcast %cst_428 : f32 to vector<8x128xf32>
    %730 = arith.addf %728, %729 : vector<8x128xf32>
    %731 = vector.extract_strided_slice %714 {offsets = [0, 256], sizes = [8, 128], strides = [1, 1]} : vector<8x512xf32> to vector<8x128xf32>
    %732 = math.tanh %731 : vector<8x128xf32>
    %733 = vector.extract_strided_slice %714 {offsets = [0, 384], sizes = [8, 128], strides = [1, 1]} : vector<8x512xf32> to vector<8x128xf32>
    %cst_429 = arith.constant 5.000000e-01 : f32
    %734 = vector.broadcast %cst_429 : f32 to vector<8x128xf32>
    %735 = arith.mulf %734, %733 : vector<8x128xf32>
    %736 = math.tanh %735 : vector<8x128xf32>
    %cst_430 = arith.constant 5.000000e-01 : f32
    %737 = vector.broadcast %cst_430 : f32 to vector<8x128xf32>
    %738 = arith.mulf %737, %736 : vector<8x128xf32>
    %cst_431 = arith.constant 5.000000e-01 : f32
    %739 = vector.broadcast %cst_431 : f32 to vector<8x128xf32>
    %740 = arith.addf %738, %739 : vector<8x128xf32>
    %741 = arith.mulf %730, %650 : vector<8x128xf32>
    %742 = arith.mulf %722, %732 : vector<8x128xf32>
    %743 = arith.addf %741, %742 : vector<8x128xf32>
    %744 = math.tanh %743 : vector<8x128xf32>
    %745 = arith.mulf %740, %744 : vector<8x128xf32>
    %c8_i32_432 = arith.constant 8 : i32
    %746 = arith.truncf %745 : vector<8x128xf32> to vector<8x128xbf16>
    %c0_433 = arith.constant 0 : index
    %c0_434 = arith.constant 0 : index
    %747 = vector.load %arg4[%c0_433, %c0_434] : memref<128x128xbf16, #tpu.memory_space<vmem>>, vector<128x128xbf16>
    %cst_435 = arith.constant dense<0.000000e+00> : vector<8x128xf32>
    %748 = tpu.matmul %746, %747, %cst_435 {dimension_numbers = #tpu.dot_dimension_numbers<[1], [0], [0], [1], [0, 0, 1, 1], [], []>} : vector<8x128xbf16>, vector<128x128xbf16>, vector<8x128xf32> -> vector<8x128xf32>
    %c0_436 = arith.constant 0 : index
    %c0_437 = arith.constant 0 : index
    %749 = vector.load %arg5[%c0_436, %c0_437] : memref<1x128xf32, #tpu.memory_space<vmem>>, vector<1x128xf32>
    %750 = vector.broadcast %749 : vector<1x128xf32> to vector<8x128xf32>
    %751 = arith.addf %748, %750 : vector<8x128xf32>
    %c0_438 = arith.constant 0 : index
    %c0_439 = arith.constant 0 : index
    %752 = vector.load %arg6[%c0_438, %c0_439] : memref<8x128xf32, #tpu.memory_space<vmem>>, vector<8x128xf32>
    tpu.vector_store %arg6[%c0_438, %c0_439], %751 {strides = array<i32>} : memref<8x128xf32, #tpu.memory_space<vmem>>, vector<8x128xf32>,
    return
  }
  func.func @transform_0(%arg0: i32, %arg1: memref<64xi32, #tpu.memory_space<smem>>) -> (i32, i32, i32) {
    %c0_i32 = arith.constant 0 : i32
    %c0_i32_0 = arith.constant 0 : i32
    %c0_i32_1 = arith.constant 0 : i32
    %c0_i32_2 = arith.constant 0 : i32
    return %c0_i32, %c0_i32_0, %c0_i32_1 : i32, i32, i32
  }
  func.func @transform_1(%arg0: i32, %arg1: memref<64xi32, #tpu.memory_space<smem>>) -> (i32, i32) {
    %c0_i32 = arith.constant 0 : i32
    %c0_i32_0 = arith.constant 0 : i32
    %c0_i32_1 = arith.constant 0 : i32
    return %c0_i32, %c0_i32_0 : i32, i32
  }
  func.func @transform_2(%arg0: i32, %arg1: memref<64xi32, #tpu.memory_space<smem>>) -> (i32, i32) {
    %c0_i32 = arith.constant 0 : i32
    %c0_i32_0 = arith.constant 0 : i32
    %c0_i32_1 = arith.constant 0 : i32
    return %c0_i32, %c0_i32_0 : i32, i32
  }
  func.func @transform_3(%arg0: i32, %arg1: memref<64xi32, #tpu.memory_space<smem>>) -> (i32, i32) {
    %c0_i32 = arith.constant 0 : i32
    %c0_i32_0 = arith.constant 0 : i32
    %c0_i32_1 = arith.constant 0 : i32
    return %c0_i32, %c0_i32_0 : i32, i32
  }
  func.func @transform_4(%arg0: i32, %arg1: memref<64xi32, #tpu.memory_space<smem>>) -> (i32, i32) {
    %c0_i32 = arith.constant 0 : i32
    %c0_i32_0 = arith.constant 0 : i32
    %c0_i32_1 = arith.constant 0 : i32
    return %c0_i32, %c0_i32_0 : i32, i32
  }
}

</mosaic_0001>

<bundles_post_ra>
// kernel: model_forward.1
= control target key start
LH: loop header
LB: loop body
LE: loop exit
PB: predicated region body
PF: predicated region fallthrough
CT: control target
= control target key end

     0   :  { %s4657_s0 = inlined_call_operand.vmem [shape: s32[64], index: 0, kind: input, shape index: {}]   ;;  %s4658_s1 = inlined_call_operand.hbm [shape: f32[50,1,512], index: 1, kind: input, shape index: {}]   ;;  %s4659_s2 = inlined_call_operand.hbm [shape: bf16[128,512], index: 2, kind: input, shape index: {}]   ;;  %s4660_s3 = inlined_call_operand.hbm [shape: bf16[128,128], index: 3, kind: input, shape index: {}]   ;;  %s4661_s4 = inlined_call_operand.vmem [shape: f32[1,128], index: 4, kind: input, shape index: {}]   ;;  %s4662_s5 = inlined_call_operand.vmem [shape: f32[8,128], index: 5, kind: output, shape index: {}]  }
   0x1   :  { %s10_s20 = sshll.u32 %s4657_s0, 4  ;;  %s11_s20 = int_to_ptr.vmem [resolvable:$true] %s10_s20 }
   0x2   :  { %s3779_s21 = scalar_lea.vmem %s11_s20, 16  ;;  %p3784_p1 = scmp.lt.s32.totalorder %s11_s20, %s11_s20 }
   0x3   :  { %p3780_p0 = scmp.ne.s32.totalorder %s11_s20, %s3779_s21  ;;  %p3785_p2 = scmp.lt.s32.totalorder %s3779_s21, %s3779_s21 }
   0x5   :  { %p3786_p3 = por %p3785_p2, %p3784_p1 }
   0x7   :  { %p3787_p4 = pnand %p3786_p3, %p3780_p0 }
   0x9   :  { %3790 = shalt.err (!%p3787_p4)  }
   0xa   :  { %s3863_s22 = smov [#allocation4]  }
   0xb   :  { %13 = dma.vmem_to_smem %s11_s20, 16, %s3863_s22, [#allocation3] }
   0xc   :  { %3857 = dma.done.wait [#allocation3], 16 }
   0xd   :  { %3858 = vsyncadd [#allocation3], 4294967280 }
   0xe   :  { %15 = sfence }
   0xf   :  { %16 = vsyncpa [#allocation6], 0 }
  0x10   :  { %17 = vsyncpa [#allocation8], 0  ;;  %s3864_s23 = smov [#allocation7]   ;;  %s3791_s26 = scalar_lea.hbm %s4659_s2, 4096 }
  0x11   :  { %s35_s24 = sshll.u32 %s3864_s23, 4  ;;  %p3792_p5 = scmp.ne.s32.totalorder %s4659_s2, %s3791_s26  ;;  %s36_s24 = int_to_ptr.vmem [resolvable:$true] %s35_s24 }
  0x12   :  { %p3795_p6 = scmp.lt.u32.totalorder %s3791_s26, %s4659_s2 }
  0x14   :  { %p3797_p7 = pnand %p3795_p6, %p3792_p5 }
  0x16   :  { %3800 = shalt.err (!%p3797_p7)
}
  0x17   :  { %s3801_s6 = scalar_lea.vmem %s36_s24, 4096  ;;  %p3806_p9 = scmp.lt.s32.totalorder %s36_s24, %s36_s24 }
  0x18   :  { %p3802_p8 = scmp.ne.s32.totalorder %s36_s24, %s3801_s6  ;;  %p3807_p10 = scmp.lt.s32.totalorder %s3801_s6, %s3801_s6 }
  0x1a   :  { %p3808_p11 = por %p3807_p10, %p3806_p9 }
  0x1c   :  { %p3809_p12 = pnand %p3808_p11, %p3802_p8 }
  0x1e   :  { %3812 = shalt.err (!%p3809_p12)
}
  0x1f   :  { %s3865_s7 = smov 256   ;;  %s3866_s8 = smov 16  }
  0x20   :  { %41 = dma.hbm_to_vmem [thread:$0]  %s4659_s2, 4096, %s36_s24, [#allocation8], %s3865_s7, %s3865_s7, %s3866_s8  }
  0x21   :  { %s3867_s11 = smov [#allocation5]   ;;  %s3813_s15 = scalar_lea.hbm %s4658_s1, 3200 }
  0x22   :  { %s23_s12 = sshll.u32 %s3867_s11, 4  ;;  %p3814_p13 = scmp.ne.s32.totalorder %s4658_s1, %s3813_s15  ;;  %s24_s12 = int_to_ptr.vmem [resolvable:$true] %s23_s12 }
  0x23   :  { %p3817_p0 = scmp.lt.u32.totalorder %s3813_s15, %s4658_s1 }
  0x25   :  { %p3819_p1 = pnand %p3817_p0, %p3814_p13 }
  0x27   :  { %3822 = shalt.err (!%p3819_p1)
}
  0x28   :  { %s3823_s20 = scalar_lea.vmem %s24_s12, 3200  ;;  %p3828_p3 = scmp.lt.s32.totalorder %s24_s12, %s24_s12 }
  0x29   :  { %p3824_p2 = scmp.ne.s32.totalorder %s24_s12, %s3823_s20  ;;  %p3829_p4 = scmp.lt.s32.totalorder %s3823_s20, %s3823_s20 }
  0x2b   :  { %p3830_p5 = por %p3829_p4, %p3828_p3 }
  0x2d   :  { %p3831_p6 = pnand %p3830_p5, %p3824_p2 }
  0x2f   :  { %3834 = shalt.err (!%p3831_p6)
}
  0x30   :  { %s3868_s2 = smov 64   ;;  %s3869_s21 = smov 4  }
  0x31   :  { %29 = dma.hbm_to_vmem [thread:$0]  %s4658_s1, 3200, %s24_s12, [#allocation6], %s3868_s2, %s3868_s2, %s3869_s21  }
  0x32   :  { %s3870_s24 = smov [#allocation9]   ;;  %s3835_s27 = scalar_lea.hbm %s4660_s3, 1024 }
  0x33   :  { %s47_s25 = sshll.u32 %s3870_s24, 4  ;;  %p3836_p7 = scmp.ne.s32.totalorder %s4660_s3, %s3835_s27  ;;  %s48_s25 = int_to_ptr.vmem [resolvable:$true] %s47_s25 }
  0x34   :  { %p3839_p8 = scmp.lt.u32.totalorder %s3835_s27, %s4660_s3 }
  0x36   :  { %p3841_p9 = pnand %p3839_p8, %p3836_p7 }
  0x38   :  { %3844 = shalt.err (!%p3841_p9)
}
  0x39   :  { %s3845_s7 = scalar_lea.vmem %s48_s25, 1024  ;;  %p3850_p11 = scmp.lt.s32.totalorder %s48_s25, %s48_s25 }
  0x3a   :  { %p3846_p10 = scmp.ne.s32.totalorder %s48_s25, %s3845_s7  ;;  %p3851_p12 = scmp.lt.s32.totalorder %s3845_s7, %s3845_s7 }
  0x3c   :  { %p3852_p13 = por %p3851_p12, %p3850_p11 }
  0x3e   :  { %p3853_p0 = pnand %p3852_p13, %p3846_p10 }
  0x40   :  { %3856 = shalt.err (!%p3853_p0)
}
  0x41   :  { %53 = dma.hbm_to_vmem [thread:$0]  %s4660_s3, 1024, %s48_s25, [#allocation8], %s3868_s2, %s3868_s2, %s3869_s21  }
  0x42   :  { %3859 = dma.done.wait [#allocation6], 3200  }
  0x43   :  { %3860 = vsyncadd [#allocation6], 4294964096 }
  0x44   :  { %3861 = dma.done.wait [#allocation8], 5120  }
  0x45   :  { %3862 = vsyncadd [#allocation8], 4294962176  ;;  %v3871_v0 = vmov 0   ;;  %v3945_v1 = vld [vmem:[#allocation7 + $0x4] ss:$16 sps:$4 sm:$0xff]   ;;  %s3947_s9 = sld [smem:[#allocation4]]  ;;  %v70_v17 = vlaneseq }
  0x46   :  { %353 = vmatprep.mubr.bf16.mxu0 %v3871_v0  ;;  %394 = vmatprep.mubr.bf16.mxu1 %v3871_v0  ;;  %v3949_v2 = vld [vmem:[#allocation7] ss:$16 sps:$4 sm:$0xff]   ;;  %s3951_s10 = sld [smem:[#allocation4 + $0x1]]  ;;  %v3954_v3 = vld [vmem:[#allocation7 + $0x24] ss:$16 sps:$4 sm:$0xff]   ;;  %s3956_s3 = sld [smem:[#allocation4 + $0x2]] }
  0x47   :  { %321 = vmatprep.subr.bf16.mxu0 %v3945_v1  ;;  %v3959_v4 = vld [vmem:[#allocation7 + $0xc] ss:$16 sps:$4 sm:$0xff]   ;;  %v3961_v5 = vld [vmem:[#allocation7 + $0x20] ss:$16 sps:$4 sm:$0xff]   ;;  %v3963_v6 = vld [vmem:[#allocation7 + $0x8] ss:$16 sps:$4 sm:$0xff]  }
  0x48   :  { %322 = vmatpush1.bf16.msra.mxu0 %v3949_v2  ;;  %v3966_v7 = vld [vmem:[#allocation7 + $0x44] ss:$16 sps:$4 sm:$0xff]   ;;  %s3968_s11 = sld [smem:[#allocation4 + $0x3]]  ;;  %362 = vmatprep.subr.bf16.mxu1 %v3959_v4  ;;  %v3971_v8 = vld [vmem:[#allocation7 + $0x2c] ss:$16 sps:$4 sm:$0xff]   ;;  %s3973_s12 = sld [smem:[#allocation4 + $0x4]] }
  0x49   :  { %323 = vmatprep.subr.bf16.mxu0 %v3954_v3  ;;  %363 = vmatpush1.bf16.msra.mxu1 %v3963_v6  ;;  %v3976_v9 = vld [vmem:[#allocation7 + $0x28] ss:$16 sps:$4 sm:$0xff]   ;;  %s3978_s13 = sld [smem:[#allocation4 + $0x5]]  ;;  %v3982_v10 = vld [vmem:[#allocation7 + $0x40] ss:$16 sps:$4 sm:$0xff]   ;;  %s3984_s14 = sld [smem:[#allocation4 + $0x6]] }
  0x4a   :  { %364 = vmatprep.subr.bf16.mxu1 %v3971_v8  ;;  %v3987_v11 = vld [vmem:[#allocation7 + $0x64] ss:$16 sps:$4 sm:$0xff]   ;;  %v3989_v12 = vld [vmem:[#allocation7 + $0x4c] ss:$16 sps:$4 sm:$0xff]   ;;  %s3992_s16 = sld [smem:[#allocation4 + $0x7]]  ;;  %vm4023_vm0 = vcmp.lt.s32.totalorder %v70_v17, 512 }
  0x4b   :  { %s3115_s15 = sshll.u32 %s3947_s9, 2  ;;  %v3995_v13 = vld [vmem:[#allocation7 + $0x48] ss:$16 sps:$4 sm:$0xff]   ;;  %v3999_v14 = vld [vmem:[#allocation7 + $0x60] ss:$16 sps:$4 sm:$0xff]   ;;  %s3162_s30 = sld [smem:[#allocation4 + $0x8]] }
  0x4c   :  { %324 = vmatpush1.bf16.msra.mxu0 %v3961_v5  ;;  %v4001_v15 = vld [vmem:[#allocation7 + $0x6c] ss:$16 sps:$4 sm:$0xff]   ;;  %s3117_s17 = sshll.u32 %s3951_s10, 2  ;;  %v4005_v16 = vld [vmem:[#allocation7 + $0x84] ss:$16 sps:$4 sm:$0xff]   ;;  %s3119_s18 = sshll.u32 %s3956_s3, 2 }
  0x4d   :  { %325 = vmatprep.subr.bf16.mxu0 %v3966_v7  ;;  %365 = vmatpush1.bf16.msra.mxu1 %v3976_v9  ;;  %v4010_v18 = vld [vmem:[#allocation7 + $0x80] ss:$16 sps:$4 sm:$0xff]   ;;  %v4012_v19 = vld [vmem:[#allocation7 + $0x68] ss:$16 sps:$4 sm:$0xff]   ;;  %v4016_v20 = vld [vmem:[#allocation7 + $0x8c] ss:$16 sps:$4 sm:$0xff]  }
  0x4e   :  { %366 = vmatprep.subr.bf16.mxu1 %v3989_v12  ;;  %s3121_s19 = sshll.u32 %s3968_s11, 2  ;;  %s3123_s20 = sshll.u32 %s3973_s12, 2  ;;  %v4021_v21 = vld [vmem:[#allocation7 + $0xa4] ss:$16 sps:$4 sm:$0xff]   ;;  %v4030_v23 = vld [vmem:[#allocation7 + $0x88] ss:$16 sps:$4 sm:$0xff]  }
  0x4f   :  { %s3125_s2 = sshll.u32 %s3978_s13, 2  ;;  %s3127_s21 = sshll.u32 %s3984_s14, 2  ;;  %v4034_v24 = vld [vmem:[#allocation7 + $0xa0] ss:$16 sps:$4 sm:$0xff]   ;;  %v4036_v25 = vld [vmem:[#allocation7 + $0xc4] ss:$16 sps:$4 sm:$0xff]  }
  0x50   :  { %326 = vmatpush1.bf16.msra.mxu0 %v3982_v10  ;;  %s3129_s22 = sshll.u32 %s3992_s16, 2  ;;  %v4038_v26 = vld [vmem:[#allocation7 + $0xac] ss:$16 sps:$4 sm:$0xff]   ;;  %v4041_v27 = vld [vmem:[#allocation7 + $0xa8] ss:$16 sps:$4 sm:$0xff]   ;;  %s68_s23 = scalar_lea.vmem [#allocation5], %s3115_s15 }
  0x51   :  { %327 = vmatprep.subr.bf16.mxu0 %v3987_v11  ;;  %367 = vmatpush1.bf16.msra.mxu1 %v3995_v13  ;;  %v4043_v28 = vld [vmem:[#allocation7 + $0xc0] ss:$16 sps:$4 sm:$0xff]   ;;  %v4045_v29 = vld [vmem:[#allocation7 + $0xcc] ss:$16 sps:$4 sm:$0xff]   ;;  %v69_v30 = vld [vmem:[%s68_s23] sm:$0xf] }
  0x52   :  { %368 = vmatprep.subr.bf16.mxu1 %v4001_v15  ;;  %s78_s24 = scalar_lea.vmem [#allocation5], %s3117_s17  ;;  %v4052_v32 = vld [vmem:[#allocation7 + $0xe4] ss:$16 sps:$4 sm:$0xff]   ;;  %74 = vst.msk [vmem:[#allocation2] ss:$8 sm:$0xf] %vm4023_vm0, %v69_v30 }
  0x53   :  { %v79_v31 = vld [vmem:[%s78_s24] sm:$0xf]  ;;  %s85_s25 = scalar_lea.vmem [#allocation5], %s3119_s18  ;;  %s92_s0 = scalar_lea.vmem [#allocation5], %s3121_s19  ;;  %v4087_v40 = vld [vmem:[#allocation7 + $0xe0] ss:$16 sps:$4 sm:$0xff]  }
  0x54   :  { %328 = vmatpush1.bf16.msra.mxu0 %v3999_v14  ;;  %81 = vst.msk [vmem:[#allocation2 + $0x1] ss:$8 sm:$0xf] %vm4023_vm0, %v79_v31  ;;  %v86_v33 = vld [vmem:[%s85_s25] sm:$0xf]  ;;  %s99_s26 = scalar_lea.vmem [#allocation5], %s3123_s20 }
  0x55   :  { %329 = vmatprep.subr.bf16.mxu0 %v4005_v16  ;;  %369 = vmatpush1.bf16.msra.mxu1 %v4012_v19  ;;  %v93_v34 = vld [vmem:[%s92_s0] sm:$0xf]  ;;  %88 = vst.msk [vmem:[#allocation2 + $0x2] ss:$8 sm:$0xf] %vm4023_vm0, %v86_v33  ;;  %s106_s27 = scalar_lea.vmem [#allocation5], %s3125_s2 }
  0x56   :  { %370 = vmatprep.subr.bf16.mxu1 %v4016_v20  ;;  %v100_v35 = vld [vmem:[%s99_s26] sm:$0xf]  ;;  %95 = vst.msk [vmem:[#allocation2 + $0x3] ss:$8 sm:$0xf] %vm4023_vm0, %v93_v34  ;;  %s113_s28 = scalar_lea.vmem [#allocation5], %s3127_s21 }
  0x57   :  { %102 = vst.msk [vmem:[#allocation2 + $0x4] ss:$8 sm:$0xf] %vm4023_vm0, %v100_v35  ;;  %v107_v36 = vld [vmem:[%s106_s27] sm:$0xf]  ;;  %s120_s29 = scalar_lea.vmem [#allocation5], %s3129_s22 }
  0x58   :  { %330 = vmatpush1.bf16.msra.mxu0 %v4010_v18  ;;  %v114_v37 = vld [vmem:[%s113_s28] sm:$0xf]  ;;  %109 = vst.msk [vmem:[#allocation2 + $0x5] ss:$8 sm:$0xf] %vm4023_vm0, %v107_v36  ;;  %s3164_s6 = sld [smem:[#allocation4 + $0x9]] }
  0x59   :  { %331 = vmatprep.subr.bf16.mxu0 %v4021_v21  ;;  %371 = vmatpush1.bf16.msra.mxu1 %v4030_v23  ;;  %v121_v38 = vld [vmem:[%s120_s29] sm:$0xf]  ;;  %116 = vst.msk [vmem:[#allocation2 + $0x6] ss:$8 sm:$0xf] %vm4023_vm0, %v114_v37  ;;  %s3166_s7 = sld [smem:[#allocation4 + $0xa]] }
  0x5a   :  { %372 = vmatprep.subr.bf16.mxu1 %v4038_v26  ;;  %v4079_v39 = vld [vmem:[#allocation7 + $0xc8] ss:$16 sps:$4 sm:$0xff]   ;;  %123 = vst.msk [vmem:[#allocation2 + $0x7] ss:$8 sm:$0xf] %vm4023_vm0, %v121_v38  ;;  %s3168_s1 = sld [smem:[#allocation4 + $0xb]] }
  0x5b   :  { %v4089_v41 = vld [vmem:[#allocation7 + $0xec] ss:$16 sps:$4 sm:$0xff]   ;;  %v4095_v42 = vld [vmem:[#allocation7 + $0xe8] ss:$16 sps:$4 sm:$0xff]   ;;  %s3170_s8 = sld [smem:[#allocation4 + $0xc]]  ;;  %s3172_s9 = sld [smem:[#allocation4 + $0xd]] }
  0x5c   :  { %332 = vmatpush1.bf16.msra.mxu0 %v4034_v24  ;;  %s4139_s10 = sld [smem:[#allocation4 + $0xe]]  ;;  %s4141_s3 = sld [smem:[#allocation4 + $0xf]]  ;;  %vm3873_vm1 = vmmov 0  }
  0x5d   :  { %333 = vmatprep.subr.bf16.mxu0 %v4036_v25  ;;  %373 = vmatpush1.bf16.msra.mxu1 %v4041_v27  ;;  %s3163_s11 = sshll.u32 %s3162_s30, 2  ;;  %s3210_s0 = sld [smem:[#allocation4 + $0x10]] }
  0x5e   :  { %374 = vmatprep.subr.bf16.mxu1 %v4045_v29  ;;  %s3165_s12 = sshll.u32 %s3164_s6, 2  ;;  %s427_s13 = scalar_lea.vmem [#allocation5], %s3163_s11 }
  0x5f   :  { %v428_v47 = vld [vmem:[%s427_s13] sm:$0xf]  ;;  %s433_s14 = scalar_lea.vmem [#allocation5], %s3165_s12  ;;  %s3167_s15 = sshll.u32 %s3166_s7, 2 }
  0x60   :  { %334 = vmatpush1.bf16.msra.mxu0 %v4043_v28  ;;  %v434_v48 = vld [vmem:[%s433_s14] sm:$0xf]  ;;  %s3169_s16 = sshll.u32 %s3168_s1, 2  ;;  %s439_s17 = scalar_lea.vmem [#allocation5], %s3167_s15 }
  0x61   :  { %335 = vmatprep.subr.bf16.mxu0 %v4052_v32  ;;  %375 = vmatpush1.bf16.msra.mxu1 %v4079_v39  ;;  %v125_v43 = vld [vmem:[#allocation2] sm:$0xff]  ;;  %v126_v44 = vld [vmem:[#allocation2 + $0x8] sm:$0xff]  ;;  %v127_v45 = vld [vmem:[#allocation2 + $0x10] sm:$0xff]  ;;  %s445_s18 = scalar_lea.vmem [#allocation5], %s3169_s16  ;;  %s3171_s19 = sshll.u32 %s3170_s8, 2 }
  0x62   :  { %376 = vmatprep.subr.bf16.mxu1 %v4089_v41  ;;  %v128_v46 = vld [vmem:[#allocation2 + $0x18] sm:$0xff]  ;;  %v440_v49 = vld [vmem:[%s439_s17] sm:$0xf]  ;;  %s3173_s20 = sshll.u32 %s3172_s9, 2  ;;  %s451_s2 = scalar_lea.vmem [#allocation5], %s3171_s19 }
  0x63   :  { %429 = vst.msk [vmem:[#allocation2] ss:$8 sm:$0xf] %vm4023_vm0, %v428_v47  ;;  %435 = vst.msk [vmem:[#allocation2 + $0x1] ss:$8 sm:$0xf] %vm4023_vm0, %v434_v48 }
  0x64   :  { %336 = vmatpush1.bf16.msra.mxu0 %v4087_v40  ;;  %v446_v50 = vld [vmem:[%s445_s18] sm:$0xf]  ;;  %441 = vst.msk [vmem:[#allocation2 + $0x2] ss:$8 sm:$0xf] %vm4023_vm0, %v440_v49  ;;  %s457_s21 = scalar_lea.vmem [#allocation5], %s3173_s20 }
  0x65   :  { %670 = vmatprep.subr.bf16.mxu0 %v3945_v1  ;;  %377 = vmatpush1.bf16.msra.mxu1 %v4095_v42  ;;  %447 = vst.msk [vmem:[#allocation2 + $0x3] ss:$8 sm:$0xf] %vm4023_vm0, %v446_v50  ;;  %v452_v51 = vld [vmem:[%s451_s2] sm:$0xf]  ;;  %s3175_s22 = sshll.u32 %s4139_s10, 2 }
  0x66   :  { %711 = vmatprep.subr.bf16.mxu1 %v3959_v4  ;;  %v458_v52 = vld [vmem:[%s457_s21] sm:$0xf]  ;;  %s3177_s23 = sshll.u32 %s4141_s3, 2  ;;  %453 = vst.msk [vmem:[#allocation2 + $0x4] ss:$8 sm:$0xf] %vm4023_vm0, %v452_v51 }
  0x67   :  { %354 = vmatmul.mubr.bf16.vlgmr.msra.gmra.mrb[0].mxu0 %v3871_v0  ;;  %459 = vst.msk [vmem:[#allocation2 + $0x5] ss:$8 sm:$0xf] %vm4023_vm0, %v458_v52  ;;  %s463_s24 = scalar_lea.vmem [#allocation5], %s3175_s22  ;;  %s469_s25 = scalar_lea.vmem [#allocation5], %s3177_s23 }
  0x68   :  { %671 = vmatpush1.bf16.msra.mxu0 %v3949_v2  ;;  %702 = vmatprep.mubr.bf16.mxu0 %v3871_v0  ;;  %v464_v53 = vld [vmem:[%s463_s24] sm:$0xf]  ;;  %s3212_s26 = sld [smem:[#allocation4 + $0x11]]  ;;  %s3214_s27 = sld [smem:[#allocation4 + $0x12]] }
  0x69   :  { %672 = vmatprep.subr.bf16.mxu0 %v3954_v3  ;;  %395 = vmatmul.mubr.bf16.vlgmr.msra.gmra.mrb[0].mxu1 %v3871_v0  ;;  %v470_v54 = vld [vmem:[%s469_s25] sm:$0xf]  ;;  %465 = vst.msk [vmem:[#allocation2 + $0x6] ss:$8 sm:$0xf] %vm4023_vm0, %v464_v53  ;;  %s3216_s28 = sld [smem:[#allocation4 + $0x13]] }
  0x6a   :  { %712 = vmatpush1.bf16.msra.mxu1 %v3963_v6  ;;  %743 = vmatprep.mubr.bf16.mxu1 %v3871_v0  ;;  %471 = vst.msk [vmem:[#allocation2 + $0x7] ss:$8 sm:$0xf] %vm4023_vm0, %v470_v54  ;;  %s3218_s29 = sld [smem:[#allocation4 + $0x14]]  ;;  %s3220_s30 = sld [smem:[#allocation4 + $0x15]] }
  0x6b   :  { %713 = vmatprep.subr.bf16.mxu1 %v3971_v8  ;;  %s4196_s6 = sld [smem:[#allocation4 + $0x16]]  ;;  %s4198_s7 = sld [smem:[#allocation4 + $0x17]] }
  0x6c   :  { %673 = vmatpush1.bf16.msra.mxu0 %v3961_v5  ;;  %s3211_s1 = sshll.u32 %s3210_s0, 2  ;;  %s3258_s21 = sld [smem:[#allocation4 + $0x18]] }
  0x6d   :  { %674 = vmatprep.subr.bf16.mxu0 %v3966_v7  ;;  %s776_s9 = scalar_lea.vmem [#allocation5], %s3211_s1  ;;  %s3260_s22 = sld [smem:[#allocation4 + $0x19]] }
  0x6e   :  { %714 = vmatpush1.bf16.msra.mxu1 %v3976_v9  ;;  %s3213_s8 = sshll.u32 %s3212_s26, 2  ;;  %s3215_s3 = sshll.u32 %s3214_s27, 2 }
  0x6f   :  { %715 = vmatprep.subr.bf16.mxu1 %v3989_v12  ;;  %s782_s10 = scalar_lea.vmem [#allocation5], %s3213_s8  ;;  %s3217_s11 = sshll.u32 %s3216_s28, 2 }
  0x70   :  { %675 = vmatpush1.bf16.msra.mxu0 %v3982_v10  ;;  %s788_s12 = scalar_lea.vmem [#allocation5], %s3215_s3  ;;  %s794_s13 = scalar_lea.vmem [#allocation5], %s3217_s11 }
  0x71   :  { %676 = vmatprep.subr.bf16.mxu0 %v3987_v11  ;;  %s3219_s14 = sshll.u32 %s3218_s29, 2  ;;  %s3221_s15 = sshll.u32 %s3220_s30, 2 }
  0x72   :  { %716 = vmatpush1.bf16.msra.mxu1 %v3995_v13  ;;  %s800_s16 = scalar_lea.vmem [#allocation5], %s3219_s14  ;;  %s806_s17 = scalar_lea.vmem [#allocation5], %s3221_s15 }
  0x73   :  { %717 = vmatprep.subr.bf16.mxu1 %v4001_v15  ;;  %s3223_s18 = sshll.u32 %s4196_s6, 2  ;;  %s3225_s19 = sshll.u32 %s4198_s7, 2 }
  0x74   :  { %677 = vmatpush1.bf16.msra.mxu0 %v3999_v14  ;;  %s812_s20 = scalar_lea.vmem [#allocation5], %s3223_s18  ;;  %s818_s2 = scalar_lea.vmem [#allocation5], %s3225_s19 }
  0x75   :  { %678 = vmatprep.subr.bf16.mxu0 %v4005_v16  ;;  %s3262_s23 = sld [smem:[#allocation4 + $0x1a]]  ;;  %s3264_s24 = sld [smem:[#allocation4 + $0x1b]] }
  0x76   :  { %718 = vmatpush1.bf16.msra.mxu1 %v4012_v19  ;;  %s3266_s25 = sld [smem:[#allocation4 + $0x1c]]  ;;  %s3268_s0 = sld [smem:[#allocation4 + $0x1d]] }
  0x77   :  { %719 = vmatprep.subr.bf16.mxu1 %v4016_v20  ;;  %s4322_s26 = sld [smem:[#allocation4 + $0x1e]]  ;;  %s4324_s27 = sld [smem:[#allocation4 + $0x1f]] }
  0x78   :  { %679 = vmatpush1.bf16.msra.mxu0 %v4010_v18  ;;  %s3259_s28 = sshll.u32 %s3258_s21, 2  ;;  %s3261_s29 = sshll.u32 %s3260_s22, 2 }
  0x79   :  { %680 = vmatprep.subr.bf16.mxu0 %v4021_v21  ;;  %s1125_s30 = scalar_lea.vmem [#allocation5], %s3259_s28  ;;  %s1131_s6 = scalar_lea.vmem [#allocation5], %s3261_s29 }
  0x7a   :  { %720 = vmatpush1.bf16.msra.mxu1 %v4030_v23  ;;  %s3308_s18 = sld [smem:[#allocation4 + $0x21]]  ;;  %s3310_s19 = sld [smem:[#allocation4 + $0x22]] }
  0x7b   :  { %721 = vmatprep.subr.bf16.mxu1 %v4038_v26  ;;  %s3263_s7 = sshll.u32 %s3262_s23, 2  ;;  %s3265_s1 = sshll.u32 %s3264_s24, 2 }
  0x7c   :  { %681 = vmatpush1.bf16.msra.mxu0 %v4034_v24  ;;  %s1137_s8 = scalar_lea.vmem [#allocation5], %s3263_s7  ;;  %s3269_s3 = sshll.u32 %s3268_s0, 2 }
  0x7d   :  { %682 = vmatprep.subr.bf16.mxu0 %v4036_v25  ;;  %s3273_s14 = sshll.u32 %s4324_s27, 2  ;;  %s3316_s21 = sld [smem:[#allocation4 + $0x25]] }
  0x7e   :  { %722 = vmatpush1.bf16.msra.mxu1 %v4041_v27  ;;  %s4382_s22 = sld [smem:[#allocation4 + $0x26]]  ;;  %s4384_s23 = sld [smem:[#allocation4 + $0x27]] }
  0x7f   :  { %723 = vmatprep.subr.bf16.mxu1 %v4045_v29 }
  0x80   :  { %683 = vmatpush1.bf16.msra.mxu0 %v4043_v28  ;;  %s3311_s27 = sshll.u32 %s3310_s19, 2  ;;  %s4442_s19 = sld [smem:[#allocation4 + $0x2f]] }
  0x81   :  { %684 = vmatprep.subr.bf16.mxu0 %v4052_v32  ;;  %s1486_s29 = scalar_lea.vmem [#allocation5], %s3311_s27 }
  0x82   :  { %724 = vmatpush1.bf16.msra.mxu1 %v4079_v39 }
  0x83   :  { %725 = vmatprep.subr.bf16.mxu1 %v4089_v41  ;;  %s3317_s7 = sshll.u32 %s3316_s21, 2 }
  0x84   :  { %685 = vmatpush1.bf16.msra.mxu0 %v4087_v40 }
  0x85   :  { %1019 = vmatprep.subr.bf16.mxu0 %v3945_v1 }
  0x86   :  { %726 = vmatpush1.bf16.msra.mxu1 %v4095_v42 }
  0x87   :  { %1060 = vmatprep.subr.bf16.mxu1 %v3959_v4 }
 0x13a   :  { %v355_v55 = vpop.f32.mrb[0].mxu0 }
 0x13b   :  { %v403_v56 = vadd.f32 %v355_v55, %v125_v43  ;;  %v357_v57 = vpop.f32.mrb[1].mxu0 }
 0x13c   :  { %v404_v58 = vadd.f32 %v357_v57, %v126_v44  ;;  %v359_v59 = vpop.f32.mrb[2].mxu0  ;;  %v396_v62 = vpop.f32.mrb[0].mxu1 }
 0x13d   :  { %v407_v60 = vmul.f32 0.5, %v403_v56  ;;  %v360_v61 = vpop.f32.mrb[3].mxu0  ;;  %v405_v1 = vadd.f32 %v396_v62, %v127_v45  ;;  %v398_v4 = vpop.f32.mrb[1].mxu1 }
 0x13e   :  { %v411_v63 = vmul.f32 0.5, %v404_v58  ;;  %v400_v17 = vpop.f32.mrb[2].mxu1  ;;  %v406_v31 = vadd.f32 %v398_v4, %v128_v46 }
 0x13f   :  { %3699 = vtanh.f32 %v407_v60  ;;  %v401_v30 = vpop.f32.mrb[3].mxu1 }
 0x140   :  { %3701 = vtanh.f32 %v411_v63  ;;  %v416_v33 = vmul.f32 0.5, %v406_v31  ;;  %v4224_v30 = vld [vmem:[#allocation7 + $0x4] ss:$16 sps:$4 sm:$0xff]   ;;  %v4226_v31 = vld [vmem:[#allocation7 + $0xc] ss:$16 sps:$4 sm:$0xff]  }
 0x141   :  { %3703 = vtanh.f32 %v405_v1 }
 0x142   :  { %3705 = vtanh.f32 %v416_v33  ;;  %v4228_v33 = vld [vmem:[#allocation7] ss:$16 sps:$4 sm:$0xff]  }
 0x149   :  { %v3700_v34 = vpop.eup %3699 }
 0x14a   :  { %v3702_v35 = vpop.eup %3701  ;;  %v409_v36 = vmul.f32 0.5, %v3700_v34  ;;  %v4230_v34 = vld [vmem:[#allocation7 + $0x8] ss:$16 sps:$4 sm:$0xff]  }
 0x14b   :  { %v3704_v37 = vpop.eup %3703  ;;  %v413_v38 = vmul.f32 0.5, %v3702_v35  ;;  %v4236_v35 = vld [vmem:[#allocation7 + $0x24] ss:$16 sps:$4 sm:$0xff]  }
 0x14c   :  { %v410_v43 = vadd.f32 0.5, %v409_v36  ;;  %v3706_v45 = vpop.eup %3705  ;;  %v4238_v36 = vld [vmem:[#allocation7 + $0x2c] ss:$16 sps:$4 sm:$0xff]  }
 0x14d   :  { %v414_v44 = vadd.f32 0.5, %v413_v38  ;;  %v418_v50 = vmul.f32 0.5, %v3706_v45  ;;  %v4242_v38 = vld [vmem:[#allocation7 + $0x28] ss:$16 sps:$4 sm:$0xff]   ;;  %v4262_v45 = vld [vmem:[#allocation7 + $0x6c] ss:$16 sps:$4 sm:$0xff]  }
 0x14e   :  { %v421_v47 = vmul.f32 %v3704_v37, %v410_v43  ;;  %v4240_v37 = vld [vmem:[#allocation7 + $0x20] ss:$16 sps:$4 sm:$0xff]   ;;  %v4248_v43 = vld [vmem:[#allocation7 + $0x44] ss:$16 sps:$4 sm:$0xff]  }
 0x14f   :  { %v420_v48 = vmul.f32 0.0, %v414_v44  ;;  %v419_v51 = vadd.f32 0.5, %v418_v50  ;;  %v4250_v44 = vld [vmem:[#allocation7 + $0x4c] ss:$16 sps:$4 sm:$0xff]   ;;  %v4264_v50 = vld [vmem:[#allocation7 + $0x60] ss:$16 sps:$4 sm:$0xff]  }
 0x151   :  { %v4161_v49 = vadd.f32 %v421_v47, %v420_v48  ;;  %v4252_v47 = vld [vmem:[#allocation7 + $0x40] ss:$16 sps:$4 sm:$0xff]   ;;  %v4254_v48 = vld [vmem:[#allocation7 + $0x48] ss:$16 sps:$4 sm:$0xff]  }
 0x153   :  { %3707 = vtanh.f32 %v4161_v49 }
 0x15d   :  { %v3708_v52 = vpop.eup %3707 }
 0x15e   :  { %v424_v46 = vmul.f32 %v3708_v52, %v419_v51  ;;  %v4266_v51 = vld [vmem:[#allocation7 + $0x68] ss:$16 sps:$4 sm:$0xff]   ;;  %v4272_v52 = vld [vmem:[#allocation7 + $0x84] ss:$16 sps:$4 sm:$0xff]  }
 0x160   :  { %v477_v53 = vpack.c.bf16 %v424_v46, %v424_v46  ;;  %v4274_v46 = vld [vmem:[#allocation7 + $0x8c] ss:$16 sps:$4 sm:$0xff]  }
 0x162   :  { %703 = vmatmul.mubr.bf16.vlgmr.msra.gmra.mrb[4].mxu0 %v477_v53  ;;  %744 = vmatmul.mubr.bf16.vlgmr.msra.gmra.mrb[4].mxu1 %v477_v53  ;;  %v4276_v53 = vld [vmem:[#allocation7 + $0x80] ss:$16 sps:$4 sm:$0xff]  }
 0x163   :  { %1020 = vmatpush1.bf16.msra.mxu0 %v3949_v2  ;;  %1061 = vmatpush1.bf16.msra.mxu1 %v3963_v6  ;;  %v473_v2 = vld [vmem:[#allocation2] sm:$0xff]  ;;  %v476_v6 = vld [vmem:[#allocation2 + $0x18] sm:$0xff] }
 0x164   :  { %1021 = vmatprep.subr.bf16.mxu0 %v3954_v3  ;;  %1062 = vmatprep.subr.bf16.mxu1 %v3971_v8  ;;  %v475_v3 = vld [vmem:[#allocation2 + $0x10] sm:$0xff]  ;;  %v783_v8 = vld [vmem:[%s782_s10] sm:$0xf]  ;;  %s3267_s10 = sshll.u32 %s3266_s25, 2  ;;  %s3309_s25 = sshll.u32 %s3308_s18, 2 }
 0x165   :  { %1051 = vmatprep.mubr.bf16.mxu0 %v3871_v0  ;;  %1092 = vmatprep.mubr.bf16.mxu1 %v3871_v0  ;;  %s1149_s11 = scalar_lea.vmem [#allocation5], %s3267_s10  ;;  %s3321_s10 = sshll.u32 %s4384_s23, 2 }
 0x166   :  { %s4440_s18 = sld [smem:[#allocation4 + $0x2e]] }
 0x167   :  { %1022 = vmatpush1.bf16.msra.mxu0 %v3961_v5  ;;  %1063 = vmatpush1.bf16.msra.mxu1 %v3976_v9  ;;  %v474_v5 = vld [vmem:[#allocation2 + $0x8] sm:$0xff]  ;;  %v789_v9 = vld [vmem:[%s788_s12] sm:$0xf]  ;;  %s1155_s12 = scalar_lea.vmem [#allocation5], %s3269_s3 }
 0x168   :  { %1023 = vmatprep.subr.bf16.mxu0 %v3966_v7  ;;  %1064 = vmatprep.subr.bf16.mxu1 %v3989_v12  ;;  %v777_v7 = vld [vmem:[%s776_s9] sm:$0xf]  ;;  %784 = vst.msk [vmem:[#allocation2 + $0x1] ss:$8 sm:$0xf] %vm4023_vm0, %v783_v8  ;;  %s1143_s9 = scalar_lea.vmem [#allocation5], %s3265_s1 }
 0x169   :  { %778 = vst.msk [vmem:[#allocation2] ss:$8 sm:$0xf] %vm4023_vm0, %v777_v7  ;;  %790 = vst.msk [vmem:[#allocation2 + $0x2] ss:$8 sm:$0xf] %vm4023_vm0, %v789_v9 }
 0x16a   :  { %v807_v12 = vld [vmem:[%s806_s17] sm:$0xf]  ;;  %v4296_v8 = vld [vmem:[#allocation7 + $0xc4] ss:$16 sps:$4 sm:$0xff]   ;;  %v4298_v9 = vld [vmem:[#allocation7 + $0xcc] ss:$16 sps:$4 sm:$0xff]  }
 0x16b   :  { %1024 = vmatpush1.bf16.msra.mxu0 %v3982_v10  ;;  %1065 = vmatpush1.bf16.msra.mxu1 %v3995_v13  ;;  %v795_v10 = vld [vmem:[%s794_s13] sm:$0xf]  ;;  %808 = vst.msk [vmem:[#allocation2 + $0x5] ss:$8 sm:$0xf] %vm4023_vm0, %v807_v12  ;;  %s3271_s13 = sshll.u32 %s4322_s26, 2 }
 0x16c   :  { %1025 = vmatprep.subr.bf16.mxu0 %v3987_v11  ;;  %1066 = vmatprep.subr.bf16.mxu1 %v4001_v15  ;;  %796 = vst.msk [vmem:[#allocation2 + $0x3] ss:$8 sm:$0xf] %vm4023_vm0, %v795_v10  ;;  %v801_v11 = vld [vmem:[%s800_s16] sm:$0xf]  ;;  %s1161_s15 = scalar_lea.vmem [#allocation5], %s3271_s13 }
 0x16d   :  { %802 = vst.msk [vmem:[#allocation2 + $0x4] ss:$8 sm:$0xf] %vm4023_vm0, %v801_v11  ;;  %v813_v13 = vld [vmem:[%s812_s20] sm:$0xf]  ;;  %s1167_s16 = scalar_lea.vmem [#allocation5], %s3273_s14 }
 0x16e   :  { %814 = vst.msk [vmem:[#allocation2 + $0x6] ss:$8 sm:$0xf] %vm4023_vm0, %v813_v13  ;;  %v4290_v7 = vld [vmem:[#allocation7 + $0xa8] ss:$16 sps:$4 sm:$0xff]   ;;  %s3306_s17 = sld [smem:[#allocation4 + $0x20]] }
 0x16f   :  { %1026 = vmatpush1.bf16.msra.mxu0 %v3999_v14  ;;  %1067 = vmatpush1.bf16.msra.mxu1 %v4012_v19  ;;  %v819_v14 = vld [vmem:[%s818_s2] sm:$0xf]  ;;  %v4300_v10 = vld [vmem:[#allocation7 + $0xc0] ss:$16 sps:$4 sm:$0xff]   ;;  %v4308_v12 = vld [vmem:[#allocation7 + $0xe4] ss:$16 sps:$4 sm:$0xff]  }
 0x170   :  { %1027 = vmatprep.subr.bf16.mxu0 %v4005_v16  ;;  %1068 = vmatprep.subr.bf16.mxu1 %v4016_v20  ;;  %820 = vst.msk [vmem:[#allocation2 + $0x7] ss:$8 sm:$0xf] %vm4023_vm0, %v819_v14  ;;  %v4302_v11 = vld [vmem:[#allocation7 + $0xc8] ss:$16 sps:$4 sm:$0xff]   ;;  %s3312_s20 = sld [smem:[#allocation4 + $0x23]] }
 0x171   :  { %v4310_v13 = vld [vmem:[#allocation7 + $0xec] ss:$16 sps:$4 sm:$0xff]   ;;  %v4312_v14 = vld [vmem:[#allocation7 + $0xe0] ss:$16 sps:$4 sm:$0xff]   ;;  %s3314_s2 = sld [smem:[#allocation4 + $0x24]]  ;;  %s1480_s26 = scalar_lea.vmem [#allocation5], %s3309_s25 }
 0x172   :  { %s3356_s13 = sld [smem:[#allocation4 + $0x29]]  ;;  %s3358_s14 = sld [smem:[#allocation4 + $0x2a]] }
 0x173   :  { %1028 = vmatpush1.bf16.msra.mxu0 %v4010_v18  ;;  %1069 = vmatpush1.bf16.msra.mxu1 %v4030_v23 }
 0x174   :  { %1029 = vmatprep.subr.bf16.mxu0 %v4021_v21  ;;  %1070 = vmatprep.subr.bf16.mxu1 %v4038_v26  ;;  %s3307_s24 = sshll.u32 %s3306_s17, 2  ;;  %s3364_s17 = sld [smem:[#allocation4 + $0x2d]] }
 0x175   :  { %s1474_s0 = scalar_lea.vmem [#allocation5], %s3307_s24 }
 0x176   :  { %s3313_s28 = sshll.u32 %s3312_s20, 2 }
 0x177   :  { %1030 = vmatpush1.bf16.msra.mxu0 %v4034_v24  ;;  %1071 = vmatpush1.bf16.msra.mxu1 %v4041_v27 }
 0x178   :  { %1031 = vmatprep.subr.bf16.mxu0 %v4036_v25  ;;  %1072 = vmatprep.subr.bf16.mxu1 %v4045_v29  ;;  %s3359_s23 = sshll.u32 %s3358_s14, 2  ;;  %s4568_s14 = sld [smem:[#allocation4 + $0x37]] }
 0x179   :  { %s1835_s25 = scalar_lea.vmem [#allocation5], %s3359_s23 }
 0x17a   :  { %s3365_s27 = sshll.u32 %s3364_s17, 2 }
 0x17b   :  { %1032 = vmatpush1.bf16.msra.mxu0 %v4043_v28  ;;  %1073 = vmatpush1.bf16.msra.mxu1 %v4079_v39 }
 0x17c   :  { %1033 = vmatprep.subr.bf16.mxu0 %v4052_v32  ;;  %1074 = vmatprep.subr.bf16.mxu1 %v4089_v41 }
 0x17f   :  { %1034 = vmatpush1.bf16.msra.mxu0 %v4087_v40  ;;  %1075 = vmatpush1.bf16.msra.mxu1 %v4095_v42 }
 0x180   :  { %1368 = vmatprep.subr.bf16.mxu0 %v4224_v30  ;;  %1409 = vmatprep.subr.bf16.mxu1 %v4226_v31 }
 0x235   :  { %v704_v15 = vpop.f32.mrb[4].mxu0  ;;  %v745_v16 = vpop.f32.mrb[4].mxu1 }
 0x236   :  { %v752_v18 = vadd.f32 %v704_v15, %v473_v2  ;;  %v706_v19 = vpop.f32.mrb[5].mxu0  ;;  %v747_v20 = vpop.f32.mrb[5].mxu1  ;;  %v754_v29 = vadd.f32 %v745_v16, %v475_v3  ;;  %v4278_v2 = vld [vmem:[#allocation7 + $0x88] ss:$16 sps:$4 sm:$0xff]   ;;  %v4284_v3 = vld [vmem:[#allocation7 + $0xa4] ss:$16 sps:$4 sm:$0xff]  }
 0x237   :  { %v753_v21 = vadd.f32 %v706_v19, %v474_v5  ;;  %v708_v23 = vpop.f32.mrb[6].mxu0  ;;  %v749_v24 = vpop.f32.mrb[6].mxu1  ;;  %v755_v32 = vadd.f32 %v747_v20, %v476_v6  ;;  %v4286_v5 = vld [vmem:[#allocation7 + $0xac] ss:$16 sps:$4 sm:$0xff]   ;;  %v4288_v6 = vld [vmem:[#allocation7 + $0xa0] ss:$16 sps:$4 sm:$0xff]  }
 0x238   :  { %v756_v25 = vmul.f32 0.5, %v752_v18  ;;  %v709_v26 = vpop.f32.mrb[7].mxu0  ;;  %v750_v27 = vpop.f32.mrb[7].mxu1  ;;  %v4314_v15 = vld [vmem:[#allocation7 + $0xe8] ss:$16 sps:$4 sm:$0xff]   ;;  %v823_v19 = vld [vmem:[#allocation2 + $0x8] sm:$0xff] }
 0x239   :  { %v760_v28 = vmul.f32 0.5, %v753_v21  ;;  %v765_v39 = vmul.f32 0.5, %v755_v32  ;;  %v822_v16 = vld [vmem:[#allocation2] sm:$0xff]  ;;  %v824_v18 = vld [vmem:[#allocation2 + $0x10] sm:$0xff]  ;;  %v825_v20 = vld [vmem:[#allocation2 + $0x18] sm:$0xff] }
 0x23a   :  { %3709 = vtanh.f32 %v756_v25  ;;  %v1126_v21 = vld [vmem:[%s1125_s30] sm:$0xf]  ;;  %s1492_s30 = scalar_lea.vmem [#allocation5], %s3313_s28 }
 0x23b   :  { %3711 = vtanh.f32 %v760_v28  ;;  %v1132_v23 = vld [vmem:[%s1131_s6] sm:$0xf]  ;;  %1127 = vst.msk [vmem:[#allocation2] ss:$8 sm:$0xf] %vm4023_vm0, %v1126_v21  ;;  %s3315_s6 = sshll.u32 %s3314_s2, 2 }
 0x23c   :  { %3713 = vtanh.f32 %v754_v29  ;;  %1133 = vst.msk [vmem:[#allocation2 + $0x1] ss:$8 sm:$0xf] %vm4023_vm0, %v1132_v23  ;;  %v1138_v24 = vld [vmem:[%s1137_s8] sm:$0xf]  ;;  %s1498_s1 = scalar_lea.vmem [#allocation5], %s3315_s6 }
 0x23d   :  { %3715 = vtanh.f32 %v765_v39  ;;  %v1144_v25 = vld [vmem:[%s1143_s9] sm:$0xf]  ;;  %1139 = vst.msk [vmem:[#allocation2 + $0x2] ss:$8 sm:$0xf] %vm4023_vm0, %v1138_v24  ;;  %s1504_s8 = scalar_lea.vmem [#allocation5], %s3317_s7 }
 0x23e   :  { %1145 = vst.msk [vmem:[#allocation2 + $0x3] ss:$8 sm:$0xf] %vm4023_vm0, %v1144_v25  ;;  %v1150_v26 = vld [vmem:[%s1149_s11] sm:$0xf]  ;;  %s3319_s9 = sshll.u32 %s4382_s22, 2 }
 0x23f   :  { %v1156_v27 = vld [vmem:[%s1155_s12] sm:$0xf]  ;;  %1151 = vst.msk [vmem:[#allocation2 + $0x4] ss:$8 sm:$0xf] %vm4023_vm0, %v1150_v26  ;;  %s1510_s3 = scalar_lea.vmem [#allocation5], %s3319_s9 }
 0x240   :  { %1157 = vst.msk [vmem:[#allocation2 + $0x5] ss:$8 sm:$0xf] %vm4023_vm0, %v1156_v27  ;;  %v1162_v28 = vld [vmem:[%s1161_s15] sm:$0xf]  ;;  %s1516_s11 = scalar_lea.vmem [#allocation5], %s3321_s10 }
 0x241   :  { %v1168_v29 = vld [vmem:[%s1167_s16] sm:$0xf]  ;;  %1163 = vst.msk [vmem:[#allocation2 + $0x6] ss:$8 sm:$0xf] %vm4023_vm0, %v1162_v28  ;;  %s3354_s12 = sld [smem:[#allocation4 + $0x28]] }
 0x242   :  { %1169 = vst.msk [vmem:[#allocation2 + $0x7] ss:$8 sm:$0xf] %vm4023_vm0, %v1168_v29  ;;  %s3360_s15 = sld [smem:[#allocation4 + $0x2b]]  ;;  %s3362_s16 = sld [smem:[#allocation4 + $0x2c]] }
 0x243   :  { %s3357_s2 = sshll.u32 %s3356_s13, 2  ;;  %s3369_s6 = sshll.u32 %s4442_s19, 2 }
 0x244   :  { %v3710_v40 = vpop.eup %3709  ;;  %s1829_s22 = scalar_lea.vmem [#allocation5], %s3357_s2  ;;  %s3404_s9 = sld [smem:[#allocation4 + $0x31]] }
 0x245   :  { %v3712_v41 = vpop.eup %3711  ;;  %v758_v42 = vmul.f32 0.5, %v3710_v40  ;;  %s3406_s10 = sld [smem:[#allocation4 + $0x32]]  ;;  %s4566_s13 = sld [smem:[#allocation4 + $0x36]] }
 0x246   :  { %v762_v54 = vmul.f32 0.5, %v3712_v41  ;;  %v3714_v56 = vpop.eup %3713 }
 0x247   :  { %v759_v55 = vadd.f32 0.5, %v758_v42  ;;  %v3716_v61 = vpop.eup %3715  ;;  %s3355_s20 = sshll.u32 %s3354_s12, 2  ;;  %s3412_s12 = sld [smem:[#allocation4 + $0x35]] }
 0x248   :  { %v763_v57 = vadd.f32 0.5, %v762_v54  ;;  %v767_v62 = vmul.f32 0.5, %v3716_v61  ;;  %s1823_s21 = scalar_lea.vmem [#allocation5], %s3355_s20  ;;  %s3361_s24 = sshll.u32 %s3360_s15, 2 }
 0x249   :  { %v770_v58 = vmul.f32 %v3714_v56, %v759_v55 }
 0x24a   :  { %v769_v59 = vmul.f32 %v763_v57, %v4161_v49  ;;  %v768_v63 = vadd.f32 0.5, %v767_v62  ;;  %v4260_v49 = vld [vmem:[#allocation7 + $0x64] ss:$16 sps:$4 sm:$0xff]  }
 0x24b   :  { %s3407_s19 = sshll.u32 %s3406_s10, 2  ;;  %s4626_s10 = sld [smem:[#allocation4 + $0x3f]] }
 0x24c   :  { %v4219_v60 = vadd.f32 %v770_v58, %v769_v59  ;;  %s2184_s2 = scalar_lea.vmem [#allocation5], %s3407_s19 }
 0x24d   :  { %s3413_s23 = sshll.u32 %s3412_s12, 2 }
 0x24e   :  { %3717 = vtanh.f32 %v4219_v60 }
 0x258   :  { %v3718_v1 = vpop.eup %3717 }
 0x259   :  { %v773_v4 = vmul.f32 %v3718_v1, %v768_v63 }
 0x25b   :  { %v826_v17 = vpack.c.bf16 %v773_v4, %v773_v4 }
 0x25d   :  { %1052 = vmatmul.mubr.bf16.vlgmr.msra.gmra.mrb[8].mxu0 %v826_v17  ;;  %1093 = vmatmul.mubr.bf16.vlgmr.msra.gmra.mrb[8].mxu1 %v826_v17 }
 0x25e   :  { %1400 = vmatprep.mubr.bf16.mxu0 %v3871_v0  ;;  %1441 = vmatprep.mubr.bf16.mxu1 %v3871_v0 }
 0x25f   :  { %1369 = vmatpush1.bf16.msra.mxu0 %v4228_v33  ;;  %1410 = vmatpush1.bf16.msra.mxu1 %v4230_v34 }
 0x260   :  { %1370 = vmatprep.subr.bf16.mxu0 %v4236_v35  ;;  %1411 = vmatprep.subr.bf16.mxu1 %v4238_v36 }
 0x263   :  { %1371 = vmatpush1.bf16.msra.mxu0 %v4240_v37  ;;  %1412 = vmatpush1.bf16.msra.mxu1 %v4242_v38 }
 0x264   :  { %1372 = vmatprep.subr.bf16.mxu0 %v4248_v43  ;;  %1413 = vmatprep.subr.bf16.mxu1 %v4250_v44 }
 0x267   :  { %1373 = vmatpush1.bf16.msra.mxu0 %v4252_v47  ;;  %1414 = vmatpush1.bf16.msra.mxu1 %v4254_v48 }
 0x268   :  { %1374 = vmatprep.subr.bf16.mxu0 %v4260_v49  ;;  %1415 = vmatprep.subr.bf16.mxu1 %v4262_v45 }
 0x26b   :  { %1375 = vmatpush1.bf16.msra.mxu0 %v4264_v50  ;;  %1416 = vmatpush1.bf16.msra.mxu1 %v4266_v51 }
 0x26c   :  { %1376 = vmatprep.subr.bf16.mxu0 %v4272_v52  ;;  %1417 = vmatprep.subr.bf16.mxu1 %v4274_v46 }
 0x26f   :  { %1377 = vmatpush1.bf16.msra.mxu0 %v4276_v53  ;;  %1418 = vmatpush1.bf16.msra.mxu1 %v4278_v2 }
 0x270   :  { %1378 = vmatprep.subr.bf16.mxu0 %v4284_v3  ;;  %1419 = vmatprep.subr.bf16.mxu1 %v4286_v5 }
 0x273   :  { %1379 = vmatpush1.bf16.msra.mxu0 %v4288_v6  ;;  %1420 = vmatpush1.bf16.msra.mxu1 %v4290_v7 }
 0x274   :  { %1380 = vmatprep.subr.bf16.mxu0 %v4296_v8  ;;  %1421 = vmatprep.subr.bf16.mxu1 %v4298_v9 }
 0x277   :  { %1381 = vmatpush1.bf16.msra.mxu0 %v4300_v10  ;;  %1422 = vmatpush1.bf16.msra.mxu1 %v4302_v11 }
 0x278   :  { %1382 = vmatprep.subr.bf16.mxu0 %v4308_v12  ;;  %1423 = vmatprep.subr.bf16.mxu1 %v4310_v13 }
 0x27b   :  { %1383 = vmatpush1.bf16.msra.mxu0 %v4312_v14  ;;  %1424 = vmatpush1.bf16.msra.mxu1 %v4314_v15 }
 0x27c   :  { %1717 = vmatprep.subr.bf16.mxu0 %v4224_v30  ;;  %1758 = vmatprep.subr.bf16.mxu1 %v4226_v31 }
 0x330   :  { %v1053_v32 = vpop.f32.mrb[8].mxu0  ;;  %v1094_v39 = vpop.f32.mrb[8].mxu1 }
 0x331   :  { %v1101_v40 = vadd.f32 %v1053_v32, %v822_v16  ;;  %v1055_v41 = vpop.f32.mrb[9].mxu0  ;;  %v1096_v42 = vpop.f32.mrb[9].mxu1  ;;  %v1103_v62 = vadd.f32 %v1094_v39, %v824_v18 }
 0x332   :  { %v1102_v54 = vadd.f32 %v1055_v41, %v823_v19  ;;  %v1057_v55 = vpop.f32.mrb[10].mxu0  ;;  %v1098_v56 = vpop.f32.mrb[10].mxu1  ;;  %v1104_v63 = vadd.f32 %v1096_v42, %v825_v20  ;;  %v1172_v41 = vld [vmem:[#allocation2 + $0x8] sm:$0xff]  ;;  %v1174_v42 = vld [vmem:[#allocation2 + $0x18] sm:$0xff] }
 0x333   :  { %v1105_v57 = vmul.f32 0.5, %v1101_v40  ;;  %v1058_v58 = vpop.f32.mrb[11].mxu0  ;;  %v1099_v59 = vpop.f32.mrb[11].mxu1  ;;  %v1173_v40 = vld [vmem:[#allocation2 + $0x10] sm:$0xff]  ;;  %v1493_v55 = vld [vmem:[%s1492_s30] sm:$0xf] }
 0x334   :  { %v1109_v61 = vmul.f32 0.5, %v1102_v54  ;;  %v1114_v1 = vmul.f32 0.5, %v1104_v63  ;;  %v1487_v54 = vld [vmem:[%s1486_s29] sm:$0xf]  ;;  %s1853_s29 = scalar_lea.vmem [#allocation5], %s3365_s27  ;;  %s3367_s30 = sshll.u32 %s4440_s18, 2 }
 0x335   :  { %3719 = vtanh.f32 %v1105_v57  ;;  %v1499_v56 = vld [vmem:[%s1498_s1] sm:$0xf]  ;;  %s1859_s7 = scalar_lea.vmem [#allocation5], %s3367_s30  ;;  %s1865_s1 = scalar_lea.vmem [#allocation5], %s3369_s6 }
 0x336   :  { %3721 = vtanh.f32 %v1109_v61  ;;  %v1505_v57 = vld [vmem:[%s1504_s8] sm:$0xf]  ;;  %s3402_s8 = sld [smem:[#allocation4 + $0x30]]  ;;  %s3452_s30 = sld [smem:[#allocation4 + $0x39]] }
 0x337   :  { %3723 = vtanh.f32 %v1103_v62  ;;  %v1511_v58 = vld [vmem:[%s1510_s3] sm:$0xf]  ;;  %s3408_s3 = sld [smem:[#allocation4 + $0x33]]  ;;  %s3454_s6 = sld [smem:[#allocation4 + $0x3a]] }
 0x338   :  { %3725 = vtanh.f32 %v1114_v1  ;;  %v1517_v59 = vld [vmem:[%s1516_s11] sm:$0xf]  ;;  %s3410_s11 = sld [smem:[#allocation4 + $0x34]] }
 0x33c   :  { %s3403_s15 = sshll.u32 %s3402_s8, 2  ;;  %s3460_s8 = sld [smem:[#allocation4 + $0x3d]] }
 0x33d   :  { %s2172_s17 = scalar_lea.vmem [#allocation5], %s3403_s15  ;;  %s3409_s20 = sshll.u32 %s3408_s3, 2 }
 0x33f   :  { %v3720_v4 = vpop.eup %3719 }
 0x340   :  { %v3722_v17 = vpop.eup %3721  ;;  %v1107_v21 = vmul.f32 0.5, %v3720_v4 }
 0x341   :  { %v1111_v23 = vmul.f32 0.5, %v3722_v17  ;;  %v3724_v24 = vpop.eup %3723 }
 0x342   :  { %v1108_v16 = vadd.f32 0.5, %v1107_v21  ;;  %v3726_v18 = vpop.eup %3725  ;;  %s3461_s19 = sshll.u32 %s3460_s8, 2 }
 0x343   :  { %v1112_v19 = vadd.f32 0.5, %v1111_v23  ;;  %v1116_v28 = vmul.f32 0.5, %v3726_v18 }
 0x344   :  { %v1119_v25 = vmul.f32 %v3724_v24, %v1108_v16 }
 0x345   :  { %v1118_v26 = vmul.f32 %v1112_v19, %v4219_v60  ;;  %v1117_v29 = vadd.f32 0.5, %v1116_v28  ;;  %v1171_v60 = vld [vmem:[#allocation2] sm:$0xff] }
 0x346   :  { %1488 = vst.msk [vmem:[#allocation2 + $0x2] ss:$8 sm:$0xf] %vm4023_vm0, %v1487_v54  ;;  %1494 = vst.msk [vmem:[#allocation2 + $0x3] ss:$8 sm:$0xf] %vm4023_vm0, %v1493_v55 }
 0x347   :  { %v4345_v27 = vadd.f32 %v1119_v25, %v1118_v26  ;;  %1500 = vst.msk [vmem:[#allocation2 + $0x4] ss:$8 sm:$0xf] %vm4023_vm0, %v1499_v56  ;;  %1506 = vst.msk [vmem:[#allocation2 + $0x5] ss:$8 sm:$0xf] %vm4023_vm0, %v1505_v57 }
 0x348   :  { %1512 = vst.msk [vmem:[#allocation2 + $0x6] ss:$8 sm:$0xf] %vm4023_vm0, %v1511_v58  ;;  %1518 = vst.msk [vmem:[#allocation2 + $0x7] ss:$8 sm:$0xf] %vm4023_vm0, %v1517_v59 }
 0x349   :  { %3727 = vtanh.f32 %v4345_v27 }
 0x353   :  { %v3728_v20 = vpop.eup %3727 }
 0x354   :  { %v1122_v32 = vmul.f32 %v3728_v20, %v1117_v29 }
 0x356   :  { %v1175_v39 = vpack.c.bf16 %v1122_v32, %v1122_v32 }
 0x358   :  { %1401 = vmatmul.mubr.bf16.vlgmr.msra.gmra.mrb[12].mxu0 %v1175_v39  ;;  %1442 = vmatmul.mubr.bf16.vlgmr.msra.gmra.mrb[12].mxu1 %v1175_v39 }
 0x359   :  { %1718 = vmatpush1.bf16.msra.mxu0 %v4228_v33  ;;  %1759 = vmatpush1.bf16.msra.mxu1 %v4230_v34 }
 0x35a   :  { %1719 = vmatprep.subr.bf16.mxu0 %v4236_v35  ;;  %1760 = vmatprep.subr.bf16.mxu1 %v4238_v36 }
 0x35b   :  { %1749 = vmatprep.mubr.bf16.mxu0 %v3871_v0  ;;  %1790 = vmatprep.mubr.bf16.mxu1 %v3871_v0 }
 0x35d   :  { %1720 = vmatpush1.bf16.msra.mxu0 %v4240_v37  ;;  %1761 = vmatpush1.bf16.msra.mxu1 %v4242_v38 }
 0x35e   :  { %1721 = vmatprep.subr.bf16.mxu0 %v4248_v43  ;;  %1762 = vmatprep.subr.bf16.mxu1 %v4250_v44 }
 0x361   :  { %1722 = vmatpush1.bf16.msra.mxu0 %v4252_v47  ;;  %1763 = vmatpush1.bf16.msra.mxu1 %v4254_v48 }
 0x362   :  { %1723 = vmatprep.subr.bf16.mxu0 %v4260_v49  ;;  %1764 = vmatprep.subr.bf16.mxu1 %v4262_v45 }
 0x365   :  { %1724 = vmatpush1.bf16.msra.mxu0 %v4264_v50  ;;  %1765 = vmatpush1.bf16.msra.mxu1 %v4266_v51 }
 0x366   :  { %1725 = vmatprep.subr.bf16.mxu0 %v4272_v52  ;;  %1766 = vmatprep.subr.bf16.mxu1 %v4274_v46 }
 0x369   :  { %1726 = vmatpush1.bf16.msra.mxu0 %v4276_v53  ;;  %1767 = vmatpush1.bf16.msra.mxu1 %v4278_v2 }
 0x36a   :  { %1727 = vmatprep.subr.bf16.mxu0 %v4284_v3  ;;  %1768 = vmatprep.subr.bf16.mxu1 %v4286_v5 }
 0x36d   :  { %1728 = vmatpush1.bf16.msra.mxu0 %v4288_v6  ;;  %1769 = vmatpush1.bf16.msra.mxu1 %v4290_v7 }
 0x36e   :  { %1729 = vmatprep.subr.bf16.mxu0 %v4296_v8  ;;  %1770 = vmatprep.subr.bf16.mxu1 %v4298_v9 }
 0x371   :  { %1730 = vmatpush1.bf16.msra.mxu0 %v4300_v10  ;;  %1771 = vmatpush1.bf16.msra.mxu1 %v4302_v11 }
 0x372   :  { %1731 = vmatprep.subr.bf16.mxu0 %v4308_v12  ;;  %1772 = vmatprep.subr.bf16.mxu1 %v4310_v13 }
 0x375   :  { %1732 = vmatpush1.bf16.msra.mxu0 %v4312_v14  ;;  %1773 = vmatpush1.bf16.msra.mxu1 %v4314_v15 }
 0x376   :  { %2066 = vmatprep.subr.bf16.mxu0 %v4224_v30  ;;  %2107 = vmatprep.subr.bf16.mxu1 %v4226_v31  ;;  %v1475_v30 = vld [vmem:[%s1474_s0] sm:$0xf]  ;;  %s1841_s0 = scalar_lea.vmem [#allocation5], %s3361_s24 }
 0x377   :  { %v1481_v31 = vld [vmem:[%s1480_s26] sm:$0xf]  ;;  %1476 = vst.msk [vmem:[#allocation2] ss:$8 sm:$0xf] %vm4023_vm0, %v1475_v30  ;;  %s3363_s26 = sshll.u32 %s3362_s16, 2 }
 0x378   :  { %1482 = vst.msk [vmem:[#allocation2 + $0x1] ss:$8 sm:$0xf] %vm4023_vm0, %v1481_v31  ;;  %s1847_s28 = scalar_lea.vmem [#allocation5], %s3363_s26  ;;  %s3405_s16 = sshll.u32 %s3404_s9, 2 }
 0x379   :  { %s2178_s18 = scalar_lea.vmem [#allocation5], %s3405_s16  ;;  %s3417_s26 = sshll.u32 %s4568_s14, 2 }
 0x37a   :  { %s4624_s9 = sld [smem:[#allocation4 + $0x3e]]  ;;  %s3455_s14 = sshll.u32 %s3454_s6, 2 }
 0x37b   :  { %s2533_s16 = scalar_lea.vmem [#allocation5], %s3455_s14 }
 0x42b   :  { %v1402_v61 = vpop.f32.mrb[12].mxu0  ;;  %v1443_v62 = vpop.f32.mrb[12].mxu1 }
 0x42c   :  { %v1450_v63 = vadd.f32 %v1402_v61, %v1171_v60  ;;  %v1404_v1 = vpop.f32.mrb[13].mxu0  ;;  %v1445_v4 = vpop.f32.mrb[13].mxu1  ;;  %v1452_v26 = vadd.f32 %v1443_v62, %v1173_v40 }
 0x42d   :  { %v1451_v17 = vadd.f32 %v1404_v1, %v1172_v41  ;;  %v1406_v21 = vpop.f32.mrb[14].mxu0  ;;  %v1447_v23 = vpop.f32.mrb[14].mxu1  ;;  %v1453_v18 = vadd.f32 %v1445_v4, %v1174_v42 }
 0x42e   :  { %v1454_v16 = vmul.f32 0.5, %v1450_v63  ;;  %v1407_v24 = vpop.f32.mrb[15].mxu0  ;;  %v1448_v19 = vpop.f32.mrb[15].mxu1 }
 0x42f   :  { %v1458_v25 = vmul.f32 0.5, %v1451_v17  ;;  %v1463_v28 = vmul.f32 0.5, %v1453_v18  ;;  %v4470_v18 = vld [vmem:[#allocation7 + $0xc] ss:$16 sps:$4 sm:$0xff]  }
 0x430   :  { %3729 = vtanh.f32 %v1454_v16 }
 0x431   :  { %3731 = vtanh.f32 %v1458_v25 }
 0x432   :  { %3733 = vtanh.f32 %v1452_v26  ;;  %v4468_v26 = vld [vmem:[#allocation7 + $0x4] ss:$16 sps:$4 sm:$0xff]  }
 0x433   :  { %3735 = vtanh.f32 %v1463_v28  ;;  %v4472_v28 = vld [vmem:[#allocation7] ss:$16 sps:$4 sm:$0xff]  }
 0x43a   :  { %v3730_v29 = vpop.eup %3729 }
 0x43b   :  { %v3732_v20 = vpop.eup %3731  ;;  %v1456_v32 = vmul.f32 0.5, %v3730_v29  ;;  %v4474_v29 = vld [vmem:[#allocation7 + $0x8] ss:$16 sps:$4 sm:$0xff]  }
 0x43c   :  { %v1460_v39 = vmul.f32 0.5, %v3732_v20  ;;  %v3734_v30 = vpop.eup %3733  ;;  %v4480_v20 = vld [vmem:[#allocation7 + $0x24] ss:$16 sps:$4 sm:$0xff]  }
 0x43d   :  { %v1457_v60 = vadd.f32 0.5, %v1456_v32  ;;  %v3736_v40 = vpop.eup %3735  ;;  %v4482_v32 = vld [vmem:[#allocation7 + $0x2c] ss:$16 sps:$4 sm:$0xff]  }
 0x43e   :  { %v1461_v41 = vadd.f32 0.5, %v1460_v39  ;;  %v1465_v56 = vmul.f32 0.5, %v3736_v40  ;;  %v4484_v39 = vld [vmem:[#allocation7 + $0x20] ss:$16 sps:$4 sm:$0xff]   ;;  %v4506_v40 = vld [vmem:[#allocation7 + $0x6c] ss:$16 sps:$4 sm:$0xff]  }
 0x43f   :  { %v1468_v31 = vmul.f32 %v3734_v30, %v1457_v60  ;;  %v4486_v60 = vld [vmem:[#allocation7 + $0x28] ss:$16 sps:$4 sm:$0xff]   ;;  %v4492_v30 = vld [vmem:[#allocation7 + $0x44] ss:$16 sps:$4 sm:$0xff]  }
 0x440   :  { %v1467_v54 = vmul.f32 %v1461_v41, %v4345_v27  ;;  %v1466_v57 = vadd.f32 0.5, %v1465_v56  ;;  %v4494_v41 = vld [vmem:[#allocation7 + $0x4c] ss:$16 sps:$4 sm:$0xff]   ;;  %v4508_v56 = vld [vmem:[#allocation7 + $0x60] ss:$16 sps:$4 sm:$0xff]  }
 0x442   :  { %v4405_v55 = vadd.f32 %v1468_v31, %v1467_v54  ;;  %v4496_v31 = vld [vmem:[#allocation7 + $0x40] ss:$16 sps:$4 sm:$0xff]   ;;  %v4498_v54 = vld [vmem:[#allocation7 + $0x48] ss:$16 sps:$4 sm:$0xff]  }
 0x444   :  { %3737 = vtanh.f32 %v4405_v55 }
 0x44e   :  { %v3738_v42 = vpop.eup %3737 }
 0x44f   :  { %v1471_v58 = vmul.f32 %v3738_v42, %v1466_v57  ;;  %v4510_v57 = vld [vmem:[#allocation7 + $0x68] ss:$16 sps:$4 sm:$0xff]   ;;  %v4516_v42 = vld [vmem:[#allocation7 + $0x84] ss:$16 sps:$4 sm:$0xff]  }
 0x451   :  { %v1524_v59 = vpack.c.bf16 %v1471_v58, %v1471_v58  ;;  %v4518_v58 = vld [vmem:[#allocation7 + $0x8c] ss:$16 sps:$4 sm:$0xff]  }
 0x453   :  { %1750 = vmatmul.mubr.bf16.vlgmr.msra.gmra.mrb[16].mxu0 %v1524_v59  ;;  %1791 = vmatmul.mubr.bf16.vlgmr.msra.gmra.mrb[16].mxu1 %v1524_v59  ;;  %v4520_v59 = vld [vmem:[#allocation7 + $0x80] ss:$16 sps:$4 sm:$0xff]  }
 0x454   :  { %2067 = vmatpush1.bf16.msra.mxu0 %v4228_v33  ;;  %2108 = vmatpush1.bf16.msra.mxu1 %v4230_v34  ;;  %v1520_v33 = vld [vmem:[#allocation2] sm:$0xff]  ;;  %v1522_v34 = vld [vmem:[#allocation2 + $0x10] sm:$0xff] }
 0x455   :  { %2068 = vmatprep.subr.bf16.mxu0 %v4236_v35  ;;  %2109 = vmatprep.subr.bf16.mxu1 %v4238_v36  ;;  %v1521_v35 = vld [vmem:[#allocation2 + $0x8] sm:$0xff]  ;;  %v1523_v36 = vld [vmem:[#allocation2 + $0x18] sm:$0xff] }
 0x456   :  { %2098 = vmatprep.mubr.bf16.mxu0 %v3871_v0  ;;  %2139 = vmatprep.mubr.bf16.mxu1 %v3871_v0 }
 0x458   :  { %2069 = vmatpush1.bf16.msra.mxu0 %v4240_v37  ;;  %2110 = vmatpush1.bf16.msra.mxu1 %v4242_v38  ;;  %v1824_v37 = vld [vmem:[%s1823_s21] sm:$0xf]  ;;  %s2190_s21 = scalar_lea.vmem [#allocation5], %s3409_s20 }
 0x459   :  { %2070 = vmatprep.subr.bf16.mxu0 %v4248_v43  ;;  %2111 = vmatprep.subr.bf16.mxu1 %v4250_v44  ;;  %v1830_v38 = vld [vmem:[%s1829_s22] sm:$0xf]  ;;  %1825 = vst.msk [vmem:[#allocation2] ss:$8 sm:$0xf] %vm4023_vm0, %v1824_v37  ;;  %s3411_s22 = sshll.u32 %s3410_s11, 2 }
 0x45a   :  { %1831 = vst.msk [vmem:[#allocation2 + $0x1] ss:$8 sm:$0xf] %vm4023_vm0, %v1830_v38  ;;  %v1836_v43 = vld [vmem:[%s1835_s25] sm:$0xf]  ;;  %s2196_s24 = scalar_lea.vmem [#allocation5], %s3411_s22 }
 0x45b   :  { %v1842_v44 = vld [vmem:[%s1841_s0] sm:$0xf]  ;;  %1837 = vst.msk [vmem:[#allocation2 + $0x2] ss:$8 sm:$0xf] %vm4023_vm0, %v1836_v43  ;;  %s2202_s25 = scalar_lea.vmem [#allocation5], %s3413_s23 }
 0x45c   :  { %2071 = vmatpush1.bf16.msra.mxu0 %v4252_v47  ;;  %2112 = vmatpush1.bf16.msra.mxu1 %v4254_v48  ;;  %1843 = vst.msk [vmem:[#allocation2 + $0x3] ss:$8 sm:$0xf] %vm4023_vm0, %v1842_v44  ;;  %v1848_v47 = vld [vmem:[%s1847_s28] sm:$0xf]  ;;  %s3415_s0 = sshll.u32 %s4566_s13, 2 }
 0x45d   :  { %2072 = vmatprep.subr.bf16.mxu0 %v4260_v49  ;;  %2113 = vmatprep.subr.bf16.mxu1 %v4262_v45  ;;  %v1854_v48 = vld [vmem:[%s1853_s29] sm:$0xf]  ;;  %1849 = vst.msk [vmem:[#allocation2 + $0x4] ss:$8 sm:$0xf] %vm4023_vm0, %v1848_v47  ;;  %s2208_s27 = scalar_lea.vmem [#allocation5], %s3415_s0 }
 0x45e   :  { %1855 = vst.msk [vmem:[#allocation2 + $0x5] ss:$8 sm:$0xf] %vm4023_vm0, %v1854_v48  ;;  %v1860_v49 = vld [vmem:[%s1859_s7] sm:$0xf]  ;;  %s2214_s28 = scalar_lea.vmem [#allocation5], %s3417_s26 }
 0x45f   :  { %v1866_v45 = vld [vmem:[%s1865_s1] sm:$0xf]  ;;  %1861 = vst.msk [vmem:[#allocation2 + $0x6] ss:$8 sm:$0xf] %vm4023_vm0, %v1860_v49  ;;  %s3450_s29 = sld [smem:[#allocation4 + $0x38]] }
 0x460   :  { %2073 = vmatpush1.bf16.msra.mxu0 %v4264_v50  ;;  %2114 = vmatpush1.bf16.msra.mxu1 %v4266_v51  ;;  %1867 = vst.msk [vmem:[#allocation2 + $0x7] ss:$8 sm:$0xf] %vm4023_vm0, %v1866_v45  ;;  %v4534_v37 = vld [vmem:[#allocation7 + $0xa8] ss:$16 sps:$4 sm:$0xff]   ;;  %s3456_s7 = sld [smem:[#allocation4 + $0x3b]] }
 0x461   :  { %2074 = vmatprep.subr.bf16.mxu0 %v4272_v52  ;;  %2115 = vmatprep.subr.bf16.mxu1 %v4274_v46  ;;  %v4540_v38 = vld [vmem:[#allocation7 + $0xc4] ss:$16 sps:$4 sm:$0xff]   ;;  %v4542_v43 = vld [vmem:[#allocation7 + $0xcc] ss:$16 sps:$4 sm:$0xff]   ;;  %v4544_v44 = vld [vmem:[#allocation7 + $0xc0] ss:$16 sps:$4 sm:$0xff]  }
 0x462   :  { %v4546_v47 = vld [vmem:[#allocation7 + $0xc8] ss:$16 sps:$4 sm:$0xff]   ;;  %v4552_v48 = vld [vmem:[#allocation7 + $0xe4] ss:$16 sps:$4 sm:$0xff]   ;;  %v4554_v49 = vld [vmem:[#allocation7 + $0xec] ss:$16 sps:$4 sm:$0xff]  }
 0x463   :  { %v4556_v45 = vld [vmem:[#allocation7 + $0xe0] ss:$16 sps:$4 sm:$0xff]   ;;  %s3458_s1 = sld [smem:[#allocation4 + $0x3c]]  ;;  %s3453_s11 = sshll.u32 %s3452_s30, 2 }
 0x464   :  { %2075 = vmatpush1.bf16.msra.mxu0 %v4276_v53  ;;  %2116 = vmatpush1.bf16.msra.mxu1 %v4278_v2  ;;  %s2527_s13 = scalar_lea.vmem [#allocation5], %s3453_s11  ;;  %s3465_s22 = sshll.u32 %s4626_s10, 2 }
 0x465   :  { %2076 = vmatprep.subr.bf16.mxu0 %v4284_v3  ;;  %2117 = vmatprep.subr.bf16.mxu1 %v4286_v5  ;;  %s3451_s3 = sshll.u32 %s3450_s29, 2 }
 0x466   :  { %s2521_s12 = scalar_lea.vmem [#allocation5], %s3451_s3  ;;  %s3457_s15 = sshll.u32 %s3456_s7, 2 }
 0x468   :  { %2077 = vmatpush1.bf16.msra.mxu0 %v4288_v6  ;;  %2118 = vmatpush1.bf16.msra.mxu1 %v4290_v7 }
 0x469   :  { %2078 = vmatprep.subr.bf16.mxu0 %v4296_v8  ;;  %2119 = vmatprep.subr.bf16.mxu1 %v4298_v9 }
 0x46c   :  { %2079 = vmatpush1.bf16.msra.mxu0 %v4300_v10  ;;  %2120 = vmatpush1.bf16.msra.mxu1 %v4302_v11 }
 0x46d   :  { %2080 = vmatprep.subr.bf16.mxu0 %v4308_v12  ;;  %2121 = vmatprep.subr.bf16.mxu1 %v4310_v13 }
 0x470   :  { %2081 = vmatpush1.bf16.msra.mxu0 %v4312_v14  ;;  %2122 = vmatpush1.bf16.msra.mxu1 %v4314_v15 }
 0x471   :  { %2415 = vmatprep.subr.bf16.mxu0 %v4468_v26  ;;  %2456 = vmatprep.subr.bf16.mxu1 %v4470_v18 }
 0x526   :  { %v1751_v50 = vpop.f32.mrb[16].mxu0  ;;  %v1792_v51 = vpop.f32.mrb[16].mxu1 }
 0x527   :  { %v1799_v52 = vadd.f32 %v1751_v50, %v1520_v33  ;;  %v1753_v46 = vpop.f32.mrb[17].mxu0  ;;  %v1794_v53 = vpop.f32.mrb[17].mxu1  ;;  %v1801_v10 = vadd.f32 %v1792_v51, %v1522_v34  ;;  %v4522_v33 = vld [vmem:[#allocation7 + $0x88] ss:$16 sps:$4 sm:$0xff]   ;;  %v4528_v34 = vld [vmem:[#allocation7 + $0xa4] ss:$16 sps:$4 sm:$0xff]  }
 0x528   :  { %v1800_v2 = vadd.f32 %v1753_v46, %v1521_v35  ;;  %v1755_v3 = vpop.f32.mrb[18].mxu0  ;;  %v1796_v5 = vpop.f32.mrb[18].mxu1  ;;  %v1802_v11 = vadd.f32 %v1794_v53, %v1523_v36  ;;  %v4530_v35 = vld [vmem:[#allocation7 + $0xac] ss:$16 sps:$4 sm:$0xff]   ;;  %v4532_v36 = vld [vmem:[#allocation7 + $0xa0] ss:$16 sps:$4 sm:$0xff]  }
 0x529   :  { %v1803_v6 = vmul.f32 0.5, %v1799_v52  ;;  %v1756_v7 = vpop.f32.mrb[19].mxu0  ;;  %v1797_v8 = vpop.f32.mrb[19].mxu1  ;;  %v4558_v50 = vld [vmem:[#allocation7 + $0xe8] ss:$16 sps:$4 sm:$0xff]   ;;  %v1870_v46 = vld [vmem:[#allocation2 + $0x8] sm:$0xff] }
 0x52a   :  { %v1807_v9 = vmul.f32 0.5, %v1800_v2  ;;  %v1812_v12 = vmul.f32 0.5, %v1802_v11  ;;  %v1869_v51 = vld [vmem:[#allocation2] sm:$0xff]  ;;  %v1871_v52 = vld [vmem:[#allocation2 + $0x10] sm:$0xff]  ;;  %v1872_v53 = vld [vmem:[#allocation2 + $0x18] sm:$0xff] }
 0x52b   :  { %3739 = vtanh.f32 %v1803_v6  ;;  %v2173_v2 = vld [vmem:[%s2172_s17] sm:$0xf]  ;;  %s2539_s17 = scalar_lea.vmem [#allocation5], %s3457_s15 }
 0x52c   :  { %3741 = vtanh.f32 %v1807_v9  ;;  %v2179_v3 = vld [vmem:[%s2178_s18] sm:$0xf]  ;;  %2174 = vst.msk [vmem:[#allocation2] ss:$8 sm:$0xf] %vm4023_vm0, %v2173_v2  ;;  %s3459_s18 = sshll.u32 %s3458_s1, 2 }
 0x52d   :  { %3743 = vtanh.f32 %v1801_v10  ;;  %2180 = vst.msk [vmem:[#allocation2 + $0x1] ss:$8 sm:$0xf] %vm4023_vm0, %v2179_v3  ;;  %v2185_v5 = vld [vmem:[%s2184_s2] sm:$0xf]  ;;  %s2545_s20 = scalar_lea.vmem [#allocation5], %s3459_s18 }
 0x52e   :  { %3745 = vtanh.f32 %v1812_v12  ;;  %v2191_v6 = vld [vmem:[%s2190_s21] sm:$0xf]  ;;  %2186 = vst.msk [vmem:[#allocation2 + $0x2] ss:$8 sm:$0xf] %vm4023_vm0, %v2185_v5  ;;  %s2551_s2 = scalar_lea.vmem [#allocation5], %s3461_s19 }
 0x52f   :  { %2192 = vst.msk [vmem:[#allocation2 + $0x3] ss:$8 sm:$0xf] %vm4023_vm0, %v2191_v6  ;;  %v2197_v7 = vld [vmem:[%s2196_s24] sm:$0xf]  ;;  %s3463_s21 = sshll.u32 %s4624_s9, 2 }
 0x530   :  { %v2203_v8 = vld [vmem:[%s2202_s25] sm:$0xf]  ;;  %2198 = vst.msk [vmem:[#allocation2 + $0x4] ss:$8 sm:$0xf] %vm4023_vm0, %v2197_v7  ;;  %s2557_s23 = scalar_lea.vmem [#allocation5], %s3463_s21 }
 0x531   :  { %2204 = vst.msk [vmem:[#allocation2 + $0x5] ss:$8 sm:$0xf] %vm4023_vm0, %v2203_v8  ;;  %v2209_v9 = vld [vmem:[%s2208_s27] sm:$0xf]  ;;  %s2563_s24 = scalar_lea.vmem [#allocation5], %s3465_s22 }
 0x532   :  { %v2215_v10 = vld [vmem:[%s2214_s28] sm:$0xf]  ;;  %2210 = vst.msk [vmem:[#allocation2 + $0x6] ss:$8 sm:$0xf] %vm4023_vm0, %v2209_v9 }
 0x533   :  { %2216 = vst.msk [vmem:[#allocation2 + $0x7] ss:$8 sm:$0xf] %vm4023_vm0, %v2215_v10 }
 0x535   :  { %v3740_v13 = vpop.eup %3739 }
 0x536   :  { %v3742_v14 = vpop.eup %3741  ;;  %v1805_v15 = vmul.f32 0.5, %v3740_v13 }
 0x537   :  { %v1809_v27 = vmul.f32 0.5, %v3742_v14  ;;  %v3744_v62 = vpop.eup %3743 }
 0x538   :  { %v1806_v61 = vadd.f32 0.5, %v1805_v15  ;;  %v3746_v21 = vpop.eup %3745 }
 0x539   :  { %v1810_v63 = vadd.f32 0.5, %v1809_v27  ;;  %v1814_v23 = vmul.f32 0.5, %v3746_v21 }
 0x53a   :  { %v1817_v1 = vmul.f32 %v3744_v62, %v1806_v61 }
 0x53b   :  { %v1816_v4 = vmul.f32 %v1810_v63, %v4405_v55  ;;  %v1815_v16 = vadd.f32 0.5, %v1814_v23  ;;  %v4504_v55 = vld [vmem:[#allocation7 + $0x64] ss:$16 sps:$4 sm:$0xff]  }
 0x53d   :  { %v4463_v17 = vadd.f32 %v1817_v1, %v1816_v4 }
 0x53f   :  { %3747 = vtanh.f32 %v4463_v17 }
 0x549   :  { %v3748_v24 = vpop.eup %3747 }
 0x54a   :  { %v1820_v19 = vmul.f32 %v3748_v24, %v1815_v16 }
 0x54c   :  { %v1873_v25 = vpack.c.bf16 %v1820_v19, %v1820_v19 }
 0x54e   :  { %2099 = vmatmul.mubr.bf16.vlgmr.msra.gmra.mrb[20].mxu0 %v1873_v25  ;;  %2140 = vmatmul.mubr.bf16.vlgmr.msra.gmra.mrb[20].mxu1 %v1873_v25 }
 0x54f   :  { %2447 = vmatprep.mubr.bf16.mxu0 %v3871_v0  ;;  %2488 = vmatprep.mubr.bf16.mxu1 %v3871_v0 }
 0x550   :  { %2416 = vmatpush1.bf16.msra.mxu0 %v4472_v28  ;;  %2457 = vmatpush1.bf16.msra.mxu1 %v4474_v29 }
 0x551   :  { %2417 = vmatprep.subr.bf16.mxu0 %v4480_v20  ;;  %2458 = vmatprep.subr.bf16.mxu1 %v4482_v32 }
 0x554   :  { %2418 = vmatpush1.bf16.msra.mxu0 %v4484_v39  ;;  %2459 = vmatpush1.bf16.msra.mxu1 %v4486_v60 }
 0x555   :  { %2419 = vmatprep.subr.bf16.mxu0 %v4492_v30  ;;  %2460 = vmatprep.subr.bf16.mxu1 %v4494_v41 }
 0x558   :  { %2420 = vmatpush1.bf16.msra.mxu0 %v4496_v31  ;;  %2461 = vmatpush1.bf16.msra.mxu1 %v4498_v54 }
 0x559   :  { %2421 = vmatprep.subr.bf16.mxu0 %v4504_v55  ;;  %2462 = vmatprep.subr.bf16.mxu1 %v4506_v40 }
 0x55c   :  { %2422 = vmatpush1.bf16.msra.mxu0 %v4508_v56  ;;  %2463 = vmatpush1.bf16.msra.mxu1 %v4510_v57 }
 0x55d   :  { %2423 = vmatprep.subr.bf16.mxu0 %v4516_v42  ;;  %2464 = vmatprep.subr.bf16.mxu1 %v4518_v58 }
 0x560   :  { %2424 = vmatpush1.bf16.msra.mxu0 %v4520_v59  ;;  %2465 = vmatpush1.bf16.msra.mxu1 %v4522_v33 }
 0x561   :  { %2425 = vmatprep.subr.bf16.mxu0 %v4528_v34  ;;  %2466 = vmatprep.subr.bf16.mxu1 %v4530_v35 }
 0x564   :  { %2426 = vmatpush1.bf16.msra.mxu0 %v4532_v36  ;;  %2467 = vmatpush1.bf16.msra.mxu1 %v4534_v37 }
 0x565   :  { %2427 = vmatprep.subr.bf16.mxu0 %v4540_v38  ;;  %2468 = vmatprep.subr.bf16.mxu1 %v4542_v43 }
 0x568   :  { %2428 = vmatpush1.bf16.msra.mxu0 %v4544_v44  ;;  %2469 = vmatpush1.bf16.msra.mxu1 %v4546_v47 }
 0x569   :  { %2429 = vmatprep.subr.bf16.mxu0 %v4552_v48  ;;  %2470 = vmatprep.subr.bf16.mxu1 %v4554_v49 }
 0x56c   :  { %2430 = vmatpush1.bf16.msra.mxu0 %v4556_v45  ;;  %2471 = vmatpush1.bf16.msra.mxu1 %v4558_v50 }
 0x56d   :  { %2764 = vmatprep.subr.bf16.mxu0 %v4468_v26  ;;  %2805 = vmatprep.subr.bf16.mxu1 %v4470_v18 }
 0x621   :  { %v2100_v11 = vpop.f32.mrb[20].mxu0  ;;  %v2141_v12 = vpop.f32.mrb[20].mxu1 }
 0x622   :  { %v2148_v13 = vadd.f32 %v2100_v11, %v1869_v51  ;;  %v2102_v14 = vpop.f32.mrb[21].mxu0  ;;  %v2143_v15 = vpop.f32.mrb[21].mxu1  ;;  %v2150_v23 = vadd.f32 %v2141_v12, %v1871_v52 }
 0x623   :  { %v2149_v27 = vadd.f32 %v2102_v14, %v1870_v46  ;;  %v2104_v61 = vpop.f32.mrb[22].mxu0  ;;  %v2145_v62 = vpop.f32.mrb[22].mxu1  ;;  %v2151_v16 = vadd.f32 %v2143_v15, %v1872_v53 }
 0x624   :  { %v2152_v63 = vmul.f32 0.5, %v2148_v13  ;;  %v2105_v1 = vpop.f32.mrb[23].mxu0  ;;  %v2146_v4 = vpop.f32.mrb[23].mxu1 }
 0x625   :  { %v2156_v21 = vmul.f32 0.5, %v2149_v27  ;;  %v2161_v24 = vmul.f32 0.5, %v2151_v16  ;;  %v3691_v4 = vld [vmem:[#allocation9] sm:$0xff]   ;;  %v3693_v16 = vld [vmem:[#allocation9 + $0x10] sm:$0xff]  }
 0x626   :  { %3749 = vtanh.f32 %v2152_v63 }
 0x627   :  { %3751 = vtanh.f32 %v2156_v21  ;;  %v3872_v21 = vmov 0.0  }
 0x628   :  { %3753 = vtanh.f32 %v2150_v23  ;;  %v3692_v23 = vld [vmem:[#allocation9 + $0x8] sm:$0xff]  }
 0x629   :  { %3755 = vtanh.f32 %v2161_v24  ;;  %v3694_v24 = vld [vmem:[#allocation9 + $0x18] sm:$0xff]  }
 0x630   :  { %v3750_v19 = vpop.eup %3749 }
 0x631   :  { %v3752_v25 = vpop.eup %3751  ;;  %v2154_v26 = vmul.f32 0.5, %v3750_v19  ;;  %v3695_v19 = vld [vmem:[#allocation9 + $0x20] sm:$0xff]  }
 0x632   :  { %v2158_v18 = vmul.f32 0.5, %v3752_v25  ;;  %v3754_v2 = vpop.eup %3753  ;;  %v3696_v25 = vld [vmem:[#allocation9 + $0x28] sm:$0xff]  }
 0x633   :  { %v2155_v51 = vadd.f32 0.5, %v2154_v26  ;;  %v3756_v52 = vpop.eup %3755  ;;  %v3697_v26 = vld [vmem:[#allocation9 + $0x30] sm:$0xff]  }
 0x634   :  { %v2159_v46 = vadd.f32 0.5, %v2158_v18  ;;  %v2163_v7 = vmul.f32 0.5, %v3756_v52  ;;  %v3698_v18 = vld [vmem:[#allocation9 + $0x38] sm:$0xff]  }
 0x635   :  { %v2166_v3 = vmul.f32 %v3754_v2, %v2155_v51 }
 0x636   :  { %v2165_v5 = vmul.f32 %v2159_v46, %v4463_v17  ;;  %v2164_v8 = vadd.f32 0.5, %v2163_v7  ;;  %v2220_v17 = vld [vmem:[#allocation2 + $0x10] sm:$0xff] }
 0x638   :  { %v4589_v6 = vadd.f32 %v2166_v3, %v2165_v5 }
 0x63a   :  { %3757 = vtanh.f32 %v4589_v6 }
 0x644   :  { %v3758_v53 = vpop.eup %3757 }
 0x645   :  { %v2169_v9 = vmul.f32 %v3758_v53, %v2164_v8 }
 0x647   :  { %v2222_v10 = vpack.c.bf16 %v2169_v9, %v2169_v9 }
 0x649   :  { %2448 = vmatmul.mubr.bf16.vlgmr.msra.gmra.mrb[24].mxu0 %v2222_v10  ;;  %2489 = vmatmul.mubr.bf16.vlgmr.msra.gmra.mrb[24].mxu1 %v2222_v10 }
 0x64a   :  { %2765 = vmatpush1.bf16.msra.mxu0 %v4472_v28  ;;  %2806 = vmatpush1.bf16.msra.mxu1 %v4474_v29  ;;  %v2219_v28 = vld [vmem:[#allocation2 + $0x8] sm:$0xff]  ;;  %v2221_v29 = vld [vmem:[#allocation2 + $0x18] sm:$0xff] }
 0x64b   :  { %2766 = vmatprep.subr.bf16.mxu0 %v4480_v20  ;;  %2807 = vmatprep.subr.bf16.mxu1 %v4482_v32  ;;  %v2522_v20 = vld [vmem:[%s2521_s12] sm:$0xf] }
 0x64c   :  { %2796 = vmatprep.mubr.bf16.mxu0 %v3871_v0  ;;  %2837 = vmatprep.mubr.bf16.mxu1 %v3871_v0  ;;  %v2218_v0 = vld [vmem:[#allocation2] sm:$0xff] }
 0x64d   :  { %v2528_v32 = vld [vmem:[%s2527_s13] sm:$0xf]  ;;  %2523 = vst.msk [vmem:[#allocation2] ss:$8 sm:$0xf] %vm4023_vm0, %v2522_v20 }
 0x64e   :  { %2767 = vmatpush1.bf16.msra.mxu0 %v4484_v39  ;;  %2808 = vmatpush1.bf16.msra.mxu1 %v4486_v60  ;;  %2529 = vst.msk [vmem:[#allocation2 + $0x1] ss:$8 sm:$0xf] %vm4023_vm0, %v2528_v32  ;;  %v2534_v39 = vld [vmem:[%s2533_s16] sm:$0xf] }
 0x64f   :  { %2768 = vmatprep.subr.bf16.mxu0 %v4492_v30  ;;  %2809 = vmatprep.subr.bf16.mxu1 %v4494_v41  ;;  %v2540_v60 = vld [vmem:[%s2539_s17] sm:$0xf]  ;;  %2535 = vst.msk [vmem:[#allocation2 + $0x2] ss:$8 sm:$0xf] %vm4023_vm0, %v2534_v39 }
 0x650   :  { %2541 = vst.msk [vmem:[#allocation2 + $0x3] ss:$8 sm:$0xf] %vm4023_vm0, %v2540_v60  ;;  %v2546_v30 = vld [vmem:[%s2545_s20] sm:$0xf] }
 0x651   :  { %v2552_v41 = vld [vmem:[%s2551_s2] sm:$0xf]  ;;  %2547 = vst.msk [vmem:[#allocation2 + $0x4] ss:$8 sm:$0xf] %vm4023_vm0, %v2546_v30 }
 0x652   :  { %2769 = vmatpush1.bf16.msra.mxu0 %v4496_v31  ;;  %2810 = vmatpush1.bf16.msra.mxu1 %v4498_v54  ;;  %2553 = vst.msk [vmem:[#allocation2 + $0x5] ss:$8 sm:$0xf] %vm4023_vm0, %v2552_v41  ;;  %v2558_v31 = vld [vmem:[%s2557_s23] sm:$0xf] }
 0x653   :  { %2770 = vmatprep.subr.bf16.mxu0 %v4504_v55  ;;  %2811 = vmatprep.subr.bf16.mxu1 %v4506_v40  ;;  %v2564_v54 = vld [vmem:[%s2563_s24] sm:$0xf]  ;;  %2559 = vst.msk [vmem:[#allocation2 + $0x6] ss:$8 sm:$0xf] %vm4023_vm0, %v2558_v31 }
 0x654   :  { %2565 = vst.msk [vmem:[#allocation2 + $0x7] ss:$8 sm:$0xf] %vm4023_vm0, %v2564_v54 }
 0x656   :  { %2771 = vmatpush1.bf16.msra.mxu0 %v4508_v56  ;;  %2812 = vmatpush1.bf16.msra.mxu1 %v4510_v57 }
 0x657   :  { %2772 = vmatprep.subr.bf16.mxu0 %v4516_v42  ;;  %2813 = vmatprep.subr.bf16.mxu1 %v4518_v58 }
 0x65a   :  { %2773 = vmatpush1.bf16.msra.mxu0 %v4520_v59  ;;  %2814 = vmatpush1.bf16.msra.mxu1 %v4522_v33 }
 0x65b   :  { %2774 = vmatprep.subr.bf16.mxu0 %v4528_v34  ;;  %2815 = vmatprep.subr.bf16.mxu1 %v4530_v35  ;;  %v2567_v51 = vld [vmem:[#allocation2] sm:$0xff]  ;;  %v2568_v2 = vld [vmem:[#allocation2 + $0x8] sm:$0xff]  ;;  %v2569_v7 = vld [vmem:[#allocation2 + $0x10] sm:$0xff] }
 0x65c   :  { %v2570_v20 = vld [vmem:[#allocation2 + $0x18] sm:$0xff] }
 0x65e   :  { %2775 = vmatpush1.bf16.msra.mxu0 %v4532_v36  ;;  %2816 = vmatpush1.bf16.msra.mxu1 %v4534_v37 }
 0x65f   :  { %2776 = vmatprep.subr.bf16.mxu0 %v4540_v38  ;;  %2817 = vmatprep.subr.bf16.mxu1 %v4542_v43 }
 0x662   :  { %2777 = vmatpush1.bf16.msra.mxu0 %v4544_v44  ;;  %2818 = vmatpush1.bf16.msra.mxu1 %v4546_v47 }
 0x663   :  { %2778 = vmatprep.subr.bf16.mxu0 %v4552_v48  ;;  %2819 = vmatprep.subr.bf16.mxu1 %v4554_v49 }
 0x666   :  { %2779 = vmatpush1.bf16.msra.mxu0 %v4556_v45  ;;  %2820 = vmatpush1.bf16.msra.mxu1 %v4558_v50 }
 0x667   :  { %3516 = vmatprep.subr.bf16.mxu0 %v3872_v21 }
 0x71c   :  { %v2449_v55 = vpop.f32.mrb[24].mxu0  ;;  %v2490_v40 = vpop.f32.mrb[24].mxu1 }
 0x71d   :  { %v2497_v56 = vadd.f32 %v2449_v55, %v2218_v0  ;;  %v2451_v57 = vpop.f32.mrb[25].mxu0  ;;  %v2492_v42 = vpop.f32.mrb[25].mxu1  ;;  %v2499_v38 = vadd.f32 %v2490_v40, %v2220_v17 }
 0x71e   :  { %v2498_v58 = vadd.f32 %v2451_v57, %v2219_v28  ;;  %v2453_v59 = vpop.f32.mrb[26].mxu0  ;;  %v2494_v33 = vpop.f32.mrb[26].mxu1  ;;  %v2500_v43 = vadd.f32 %v2492_v42, %v2221_v29 }
 0x71f   :  { %v2501_v34 = vmul.f32 0.5, %v2497_v56  ;;  %v2454_v35 = vpop.f32.mrb[27].mxu0  ;;  %v2495_v36 = vpop.f32.mrb[27].mxu1 }
 0x720   :  { %v2505_v37 = vmul.f32 0.5, %v2498_v58  ;;  %v2510_v44 = vmul.f32 0.5, %v2500_v43 }
 0x721   :  { %3759 = vtanh.f32 %v2501_v34 }
 0x722   :  { %3761 = vtanh.f32 %v2505_v37  ;;  %v3498_v37 = vld [vmem:[%s4661_s4] ss:$0 sm:$0xff] }
 0x723   :  { %3763 = vtanh.f32 %v2499_v38 }
 0x724   :  { %3765 = vtanh.f32 %v2510_v44 }
 0x72b   :  { %v3760_v22 = vpop.eup %3759 }
 0x72c   :  { %v3762_v47 = vpop.eup %3761  ;;  %v2503_v48 = vmul.f32 0.5, %v3760_v22 }
 0x72d   :  { %v2507_v49 = vmul.f32 0.5, %v3762_v47  ;;  %v3764_v50 = vpop.eup %3763 }
 0x72e   :  { %v2504_v45 = vadd.f32 0.5, %v2503_v48  ;;  %v3766_v15 = vpop.eup %3765 }
 0x72f   :  { %v2508_v11 = vadd.f32 0.5, %v2507_v49  ;;  %v2512_v27 = vmul.f32 0.5, %v3766_v15 }
 0x730   :  { %v2515_v12 = vmul.f32 %v3764_v50, %v2504_v45 }
 0x731   :  { %v2514_v13 = vmul.f32 %v2508_v11, %v4589_v6  ;;  %v2513_v61 = vadd.f32 0.5, %v2512_v27 }
 0x733   :  { %v4647_v14 = vadd.f32 %v2515_v12, %v2514_v13 }
 0x735   :  { %3767 = vtanh.f32 %v4647_v14 }
 0x73f   :  { %v3768_v62 = vpop.eup %3767 }
 0x740   :  { %v2518_v63 = vmul.f32 %v3768_v62, %v2513_v61 }
 0x742   :  { %v2571_v1 = vpack.c.bf16 %v2518_v63, %v2518_v63 }
 0x744   :  { %2797 = vmatmul.mubr.bf16.vlgmr.msra.gmra.mrb[28].mxu0 %v2571_v1  ;;  %2838 = vmatmul.mubr.bf16.vlgmr.msra.gmra.mrb[28].mxu1 %v2571_v1 }
 0x745   :  { %3517 = vmatpush3.bf16.msra.mxu0 %v3691_v4  ;;  %3532 = vmatprep.mubr.msk.bf16.mxu0 %vm3873_vm1, %v3872_v21 }
 0x746   :  { %3518 = vmatprep.subr.bf16.mxu0 %v3872_v21 }
 0x749   :  { %3519 = vmatpush3.bf16.msra.mxu0 %v3692_v23 }
 0x74a   :  { %3520 = vmatprep.subr.bf16.mxu0 %v3872_v21 }
 0x74d   :  { %3521 = vmatpush3.bf16.msra.mxu0 %v3693_v16 }
 0x74e   :  { %3522 = vmatprep.subr.bf16.mxu0 %v3872_v21 }
 0x751   :  { %3523 = vmatpush3.bf16.msra.mxu0 %v3694_v24 }
 0x752   :  { %3524 = vmatprep.subr.bf16.mxu0 %v3872_v21 }
 0x755   :  { %3525 = vmatpush3.bf16.msra.mxu0 %v3695_v19 }
 0x756   :  { %3526 = vmatprep.subr.bf16.mxu0 %v3872_v21 }
 0x759   :  { %3527 = vmatpush3.bf16.msra.mxu0 %v3696_v25 }
 0x75a   :  { %3528 = vmatprep.subr.bf16.mxu0 %v3872_v21 }
 0x75d   :  { %3529 = vmatpush3.bf16.msra.mxu0 %v3697_v26 }
 0x75e   :  { %3530 = vmatprep.subr.bf16.mxu0 %v3872_v21 }
 0x761   :  { %3531 = vmatpush3.bf16.msra.mxu0 %v3698_v18 }
 0x817   :  { %v2798_v46 = vpop.f32.mrb[28].mxu0  ;;  %v2839_v3 = vpop.f32.mrb[28].mxu1 }
 0x818   :  { %v2846_v5 = vadd.f32 %v2798_v46, %v2567_v51  ;;  %v2800_v6 = vpop.f32.mrb[29].mxu0  ;;  %v2841_v52 = vpop.f32.mrb[29].mxu1  ;;  %v2848_v29 = vadd.f32 %v2839_v3, %v2569_v7 }
 0x819   :  { %v2847_v8 = vadd.f32 %v2800_v6, %v2568_v2  ;;  %v2802_v53 = vpop.f32.mrb[30].mxu0  ;;  %v2843_v9 = vpop.f32.mrb[30].mxu1  ;;  %v2849_v32 = vadd.f32 %v2841_v52, %v2570_v20 }
 0x81a   :  { %v2850_v10 = vmul.f32 0.5, %v2846_v5  ;;  %v2803_v0 = vpop.f32.mrb[31].mxu0  ;;  %v2844_v17 = vpop.f32.mrb[31].mxu1 }
 0x81b   :  { %v2854_v28 = vmul.f32 0.5, %v2847_v8  ;;  %v2859_v39 = vmul.f32 0.5, %v2849_v32 }
 0x81c   :  { %3769 = vtanh.f32 %v2850_v10 }
 0x81d   :  { %3771 = vtanh.f32 %v2854_v28 }
 0x81e   :  { %3773 = vtanh.f32 %v2848_v29 }
 0x81f   :  { %3775 = vtanh.f32 %v2859_v39 }
 0x826   :  { %v3770_v60 = vpop.eup %3769 }
 0x827   :  { %v3772_v30 = vpop.eup %3771  ;;  %v2852_v41 = vmul.f32 0.5, %v3770_v60 }
 0x828   :  { %v2856_v31 = vmul.f32 0.5, %v3772_v30  ;;  %v3774_v55 = vpop.eup %3773 }
 0x829   :  { %v2853_v54 = vadd.f32 0.5, %v2852_v41  ;;  %v3776_v58 = vpop.eup %3775 }
 0x82a   :  { %v2857_v40 = vadd.f32 0.5, %v2856_v31  ;;  %v2861_v59 = vmul.f32 0.5, %v3776_v58 }
 0x82b   :  { %v2864_v56 = vmul.f32 %v3774_v55, %v2853_v54 }
 0x82c   :  { %v2863_v57 = vmul.f32 %v2857_v40, %v4647_v14  ;;  %v2862_v33 = vadd.f32 0.5, %v2861_v59 }
 0x82e   :  { %v2865_v42 = vadd.f32 %v2864_v56, %v2863_v57 }
 0x830   :  { %3777 = vtanh.f32 %v2865_v42 }
 0x83a   :  { %v3778_v34 = vpop.eup %3777 }
 0x83b   :  { %v2867_v35 = vmul.f32 %v3778_v34, %v2862_v33 }
 0x83d   :  { %v2868_v36 = vpack.c.bf16 %v2867_v35, %v2867_v35 }
 0x83f   :  { %3533 = vmatmul.mubr.bf16.vlgmr.msra.gmra.mrb[32].mxu0 %v2868_v36 }
 0x912   :  { %v2974_v38 = vpop.f32.mrb[32].mxu0 }
 0x913   :  { %v2975_v43 = vadd.f32 %v3498_v37, %v2974_v38  ;;  %v3534_v44 = vpop.f32.mrb[33].mxu0 }
 0x914   :  { %v2977_v22 = vpop.f32.mrb[34].mxu0 }
 0x915   :  { %2980 = vst [vmem:[%s4662_s5] sm:$0xff] %v2975_v43  ;;  %v3535_v47 = vpop.f32.mrb[35].mxu0 }
 0x916   :  { %2985 = vsyncpa [#allocation6], 1 }
 0x917   :  { %2986 = vsyncpa [#allocation8], 1 }

</bundles_post_ra>
